<compile_context>
chip_gen: v6e
topology: v6e:2x2x1
jax: 0.10.0
libtpu: 0.0.40
codegen_flags: <defaults>
</compile_context>

<pallas_src>
import jax
import jax.numpy as jnp
from jax.experimental import pallas as pl
from jax.experimental.pallas import tpu as pltpu


def model_kernel(xp_ref, wc_ref, bc_ref, wf_ref, bf_ref, o_ref):
    # xp_ref: (N, Cin)      f32  globally-avg-pooled input (pool done in wrapper)
    # wc_ref: (Cin, Coutp)  bf16 padded 1x1-conv weight, transposed
    # bc_ref: (1, Coutp)    f32
    # wf_ref: (Coutp, TN)   bf16 padded fc-weight column block, transposed
    # bf_ref: (1, TN)       f32
    # o_ref : (N, TN)       f32
    #
    # 1x1 conv applied to the pooled vector (exact, since pool <-> 1x1 conv commute).
    hidden = jnp.dot(xp_ref[...].astype(jnp.bfloat16), wc_ref[...],
                     preferred_element_type=jnp.float32) + bc_ref[...]

    # Dropout(0.2) in eval mode is identity.

    # Linear(1000, 1000) — this grid block computes TN output columns.
    out = jnp.dot(hidden.astype(jnp.bfloat16), wf_ref[...],
                  preferred_element_type=jnp.float32) + bf_ref[...]
    o_ref[...] = out.astype(o_ref.dtype)


def _pad_up(n, m):
    return ((n + m - 1) // m) * m


def prepare_params(w_conv, b_conv, w_fc, b_fc):
    """One-time weight prep (pad, transpose, bf16 cast). Call once, reuse."""
    Cout, Cin, kh, kw = w_conv.shape
    # Pool-before-conv commutation requires a 1x1, stride-1, pad-0 conv
    # (stride/pad are fixed by the module; assert the kernel size here).
    assert (kh, kw) == (1, 1), "pool-first rewrite only valid for 1x1 conv"
    Cout2 = w_fc.shape[0]
    assert w_fc.shape[1] == Cout

    Coutp = _pad_up(Cout, 128)     # 1000 -> 1024
    Cout2p = _pad_up(Cout2, 128)   # 1000 -> 1024

    wc_t = jnp.zeros((Cin, Coutp), jnp.bfloat16).at[:, :Cout].set(
        w_conv.reshape(Cout, Cin).T.astype(jnp.bfloat16))
    bc2 = jnp.zeros((1, Coutp), jnp.float32).at[:, :Cout].set(
        b_conv.astype(jnp.float32))
    wf_t = jnp.zeros((Coutp, Cout2p), jnp.bfloat16).at[:Cout, :Cout2].set(
        w_fc.T.astype(jnp.bfloat16))
    bf2 = jnp.zeros((1, Cout2p), jnp.float32).at[:, :Cout2].set(
        b_fc.astype(jnp.float32))

    return {"wc_t": wc_t, "bc2": bc2, "wf_t": wf_t, "bf2": bf2,
            "Cin": Cin, "Cout2": Cout2, "Coutp": Coutp, "Cout2p": Cout2p}


def _default_tn(cout2p):
    # Multi-TensorCore chips (v7x) benefit from a 2-wide parallel grid that
    # shards the fc-weight DMA; single-TC chips (v5e/v6e) want a single block.
    try:
        kind = jax.devices()[0].device_kind.lower()
    except Exception:
        kind = ""
    if "v7" in kind or "7x" in kind:
        return min(512, cout2p)
    return cout2p


def model_forward(x_nchw, params, *, tn=None):
    # x_nchw: (N, Cin, H, W) f32
    N, Cin, H, W = x_nchw.shape
    assert Cin == params["Cin"]
    Coutp, Cout2p = params["Coutp"], params["Cout2p"]

    if tn is None:
        tn = _default_tn(Cout2p)
    tn = min(tn, Cout2p)
    assert Cout2p % tn == 0
    n_blocks = Cout2p // tn

    # AdaptiveAvgPool2d((1,1)) done in the wrapper: (N, Cin, H, W) -> (N, Cin).
    # Exact, since global average pooling commutes with the 1x1 s=1 p=0 conv.
    pooled = jnp.mean(x_nchw.astype(jnp.float32), axis=(2, 3))   # (N, Cin)

    out_padded = pl.pallas_call(
        model_kernel,
        out_shape=jax.ShapeDtypeStruct((N, Cout2p), jnp.float32),
        grid=(n_blocks,),
        in_specs=[
            pl.BlockSpec((N, Cin), lambda j: (0, 0)),        # pooled x (tiny)
            pl.BlockSpec((Cin, Coutp), lambda j: (0, 0)),    # wc replicated
            pl.BlockSpec((1, Coutp), lambda j: (0, 0)),      # bc replicated
            pl.BlockSpec((Coutp, tn), lambda j: (0, j)),     # wf column block
            pl.BlockSpec((1, tn), lambda j: (0, j)),         # bf column block
        ],
        out_specs=pl.BlockSpec((N, tn), lambda j: (0, j)),
        compiler_params=pltpu.CompilerParams(
            dimension_semantics=("parallel",)),
    )(pooled, params["wc_t"], params["bc2"], params["wf_t"], params["bf2"])

    return out_padded[:, :params["Cout2"]]


if __name__ == "__main__":
    key = jax.random.PRNGKey(0)
    k_x, k_wc, k_bc, k_wf, k_bf = jax.random.split(key, 5)

    # Channel sizes fixed by the module (Conv2d(512, 1000, 1), Linear(1000,
    # 1000)); small batch / spatial for the test.
    N, Cin, H, W = 2, 512, 8, 8
    Cout, Cout2 = 1000, 1000

    x = jax.random.normal(k_x, (N, Cin, H, W), dtype=jnp.float32)
    w_conv = jax.random.normal(k_wc, (Cout, Cin, 1, 1), dtype=jnp.float32) * 0.02
    b_conv = jax.random.normal(k_bc, (Cout,), dtype=jnp.float32) * 0.02
    w_fc = jax.random.normal(k_wf, (Cout2, Cout), dtype=jnp.float32) * 0.02
    b_fc = jax.random.normal(k_bf, (Cout2,), dtype=jnp.float32) * 0.02

    # One-time weight preparation (hoisted out of the per-call path).
    params = jax.tree_util.tree_map(jax.block_until_ready,
                                    prepare_params(w_conv, b_conv, w_fc, b_fc))

    out = model_forward(x, params)
    out = jax.block_until_ready(out)

    # Pure-JAX f32 reference (conv1x1 -> global avg pool -> fc, dropout=id).
    conv_ref = jnp.einsum("nchw,kc->nkhw", x, w_conv.reshape(Cout, Cin)) \
               + b_conv[None, :, None, None]
    pooled_ref = conv_ref.mean(axis=(2, 3))
    ref = pooled_ref @ w_fc.T + b_fc

    assert out.shape == (N, Cout2)
    # Weights run on the MXU in bf16 -> tolerances relaxed vs f32 reference.
    assert jnp.allclose(out, ref, atol=5e-3, rtol=2e-2), \
        float(jnp.max(jnp.abs(out - ref)))
    print("KERNEL_OK")
</pallas_src>

<mosaic_0001>
module attributes {stable_mosaic.version = 11 : i64} {
  func.func @model_kernel(%arg0: i32, %arg1: memref<2x512xf32, #tpu.memory_space<vmem>>, %arg2: memref<512x1024xbf16, #tpu.memory_space<vmem>>, %arg3: memref<1x1024xf32, #tpu.memory_space<vmem>>, %arg4: memref<1024x1024xbf16, #tpu.memory_space<vmem>>, %arg5: memref<1x1024xf32, #tpu.memory_space<vmem>>, %arg6: memref<2x1024xf32, #tpu.memory_space<vmem>>) attributes {dimension_semantics = [#tpu.dimension_semantics<parallel>], iteration_bounds = array<i64: 1>, scalar_prefetch = 0 : i64, scratch_operands = 0 : i64, tpu.core_type = #tpu.core_type<tc>, window_params = [{pipeline_mode = #tpu.pipeline_mode<synchronous>, transform_indices = @transform_0, window_bounds = array<i64: 2, 512>}, {pipeline_mode = #tpu.pipeline_mode<synchronous>, transform_indices = @transform_1, window_bounds = array<i64: 512, 1024>}, {pipeline_mode = #tpu.pipeline_mode<synchronous>, transform_indices = @transform_2, window_bounds = array<i64: 1, 1024>}, {transform_indices = @transform_3, window_bounds = array<i64: 1024, 1024>}, {transform_indices = @transform_4, window_bounds = array<i64: 1, 1024>}, {transform_indices = @transform_5, window_bounds = array<i64: 2, 1024>}]} {
    %c0 = arith.constant 0 : index
    %c0_0 = arith.constant 0 : index
    %0 = vector.load %arg1[%c0, %c0_0] : memref<2x512xf32, #tpu.memory_space<vmem>>, vector<2x512xf32>
    %1 = arith.truncf %0 : vector<2x512xf32> to vector<2x512xbf16>
    %c0_1 = arith.constant 0 : index
    %c0_2 = arith.constant 0 : index
    %2 = vector.load %arg2[%c0_1, %c0_2] : memref<512x1024xbf16, #tpu.memory_space<vmem>>, vector<512x1024xbf16>
    %cst = arith.constant dense<0.000000e+00> : vector<2x1024xf32>
    %3 = tpu.matmul %1, %2, %cst {dimension_numbers = #tpu.dot_dimension_numbers<[1], [0], [0], [1], [0, 0, 1, 1], [], []>} : vector<2x512xbf16>, vector<512x1024xbf16>, vector<2x1024xf32> -> vector<2x1024xf32>
    %c0_3 = arith.constant 0 : index
    %c0_4 = arith.constant 0 : index
    %4 = vector.load %arg3[%c0_3, %c0_4] : memref<1x1024xf32, #tpu.memory_space<vmem>>, vector<1x1024xf32>
    %5 = vector.broadcast %4 : vector<1x1024xf32> to vector<2x1024xf32>
    %6 = arith.addf %3, %5 : vector<2x1024xf32>
    %7 = arith.truncf %6 : vector<2x1024xf32> to vector<2x1024xbf16>
    %c0_5 = arith.constant 0 : index
    %c0_6 = arith.constant 0 : index
    %8 = vector.load %arg4[%c0_5, %c0_6] : memref<1024x1024xbf16, #tpu.memory_space<vmem>>, vector<1024x1024xbf16>
    %cst_7 = arith.constant dense<0.000000e+00> : vector<2x1024xf32>
    %9 = tpu.matmul %7, %8, %cst_7 {dimension_numbers = #tpu.dot_dimension_numbers<[1], [0], [0], [1], [0, 0, 1, 1], [], []>} : vector<2x1024xbf16>, vector<1024x1024xbf16>, vector<2x1024xf32> -> vector<2x1024xf32>
    %c0_8 = arith.constant 0 : index
    %c0_9 = arith.constant 0 : index
    %10 = vector.load %arg5[%c0_8, %c0_9] : memref<1x1024xf32, #tpu.memory_space<vmem>>, vector<1x1024xf32>
    %11 = vector.broadcast %10 : vector<1x1024xf32> to vector<2x1024xf32>
    %12 = arith.addf %9, %11 : vector<2x1024xf32>
    %c0_10 = arith.constant 0 : index
    %c0_11 = arith.constant 0 : index
    %13 = vector.load %arg6[%c0_10, %c0_11] : memref<2x1024xf32, #tpu.memory_space<vmem>>, vector<2x1024xf32>
    tpu.vector_store %arg6[%c0_10, %c0_11], %12 {strides = array<i32>} : memref<2x1024xf32, #tpu.memory_space<vmem>>, vector<2x1024xf32>,
    return
  }
  func.func @transform_0(%arg0: i32) -> (i32, i32) {
    %c0_i32 = arith.constant 0 : i32
    %c0_i32_0 = arith.constant 0 : i32
    %c0_i32_1 = arith.constant 0 : i32
    return %c0_i32, %c0_i32_0 : i32, i32
  }
  func.func @transform_1(%arg0: i32) -> (i32, i32) {
    %c0_i32 = arith.constant 0 : i32
    %c0_i32_0 = arith.constant 0 : i32
    %c0_i32_1 = arith.constant 0 : i32
    return %c0_i32, %c0_i32_0 : i32, i32
  }
  func.func @transform_2(%arg0: i32) -> (i32, i32) {
    %c0_i32 = arith.constant 0 : i32
    %c0_i32_0 = arith.constant 0 : i32
    %c0_i32_1 = arith.constant 0 : i32
    return %c0_i32, %c0_i32_0 : i32, i32
  }
  func.func @transform_3(%arg0: i32) -> (i32, i32) {
    %c0_i32 = arith.constant 0 : i32
    %c0_i32_0 = arith.constant 0 : i32
    return %c0_i32, %arg0 : i32, i32
  }
  func.func @transform_4(%arg0: i32) -> (i32, i32) {
    %c0_i32 = arith.constant 0 : i32
    %c0_i32_0 = arith.constant 0 : i32
    return %c0_i32, %arg0 : i32, i32
  }
  func.func @transform_5(%arg0: i32) -> (i32, i32) {
    %c0_i32 = arith.constant 0 : i32
    %c0_i32_0 = arith.constant 0 : i32
    return %c0_i32, %arg0 : i32, i32
  }
}

</mosaic_0001>

<bundles_post_ra>
// kernel: tpu_custom_call.1
= control target key start
LH: loop header
LB: loop body
LE: loop exit
PB: predicated region body
PF: predicated region fallthrough
CT: control target
= control target key end

     0   :  { %10 = vsyncpa [#allocation3], 0  ;;  %s7040_s0 = inlined_call_operand.hbm [shape: f32[2,512], index: 0, kind: input, shape index: {}]   ;;  %s7041_s1 = inlined_call_operand.hbm [shape: bf16[512,1024], index: 1, kind: input, shape index: {}]   ;;  %s7042_s2 = inlined_call_operand.hbm [shape: f32[1,1024], index: 2, kind: input, shape index: {}]   ;;  %s7043_s3 = inlined_call_operand.hbm [shape: bf16[1024,1024], index: 3, kind: input, shape index: {}]   ;;  %s7044_s4 = inlined_call_operand.hbm [shape: f32[1,1024], index: 4, kind: input, shape index: {}]   ;;  %s7045_s5 = inlined_call_operand.hbm [shape: f32[2,1024], index: 5, kind: output, shape index: {}]  }
   0x1   :  { %11 = vsyncpa [#allocation6], 0 }
   0x2   :  { %12 = vsyncpa [#allocation9], 0 }
   0x3   :  { %13 = vsyncpa [#allocation4], 0  ;;  %s6765_s18 = smov [#allocation5]  }
   0x4   :  { %s29_s19 = sshll.u32 %s6765_s18, 4  ;;  %s30_s19 = int_to_ptr.vmem [resolvable:$true] %s29_s19 }
   0x5   :  { %s6645_s20 = scalar_lea.vmem %s30_s19, 32768  ;;  %p6650_p1 = scmp.lt.s32.totalorder %s30_s19, %s30_s19 }
   0x6   :  { %p6646_p0 = scmp.ne.s32.totalorder %s30_s19, %s6645_s20  ;;  %p6651_p2 = scmp.lt.s32.totalorder %s6645_s20, %s6645_s20 }
   0x8   :  { %p6652_p3 = por %p6651_p2, %p6650_p1 }
   0xa   :  { %p6653_p4 = pnand %p6652_p3, %p6646_p0 }
   0xc   :  { %6656 = shalt.err (!%p6653_p4)
}
   0xd   :  { %s6766_s21 = smov 512   ;;  %s6767_s22 = smov 32  }
   0xe   :  { %35 = dma.hbm_to_vmem [thread:$0]  %s7041_s1, 32768, %s30_s19, [#allocation6], %s6766_s21, %s6766_s21, %s6767_s22  }
   0xf   :  { %s6768_s25 = smov [#allocation8]   ;;  %s6769_s27 = smov [#allocation2]  }
  0x10   :  { %s51_s26 = sshll.u32 %s6768_s25, 4  ;;  %s20_s28 = sshll.u32 %s6769_s27, 4  ;;  %s52_s26 = int_to_ptr.vmem [resolvable:$true] %s51_s26  ;;  %s21_s28 = int_to_ptr.vmem [resolvable:$true] %s20_s28 }
  0x11   :  { %s6665_s29 = scalar_lea.vmem %s52_s26, 65536  ;;  %p6670_p6 = scmp.lt.s32.totalorder %s52_s26, %s52_s26 }
  0x12   :  { %p6666_p5 = scmp.ne.s32.totalorder %s52_s26, %s6665_s29  ;;  %p6671_p7 = scmp.lt.s32.totalorder %s6665_s29, %s6665_s29 }
  0x14   :  { %p6672_p8 = por %p6671_p7, %p6670_p6 }
  0x16   :  { %p6673_p9 = pnand %p6672_p8, %p6666_p5 }
  0x18   :  { %6676 = shalt.err (!%p6673_p9)
}
  0x19   :  { %57 = dma.hbm_to_vmem [thread:$0]  %s7043_s3, 65536, %s52_s26, [#allocation9], %s6766_s21, %s6766_s21, %s6767_s22  }
  0x1a   :  { %s6685_s7 = scalar_lea.vmem %s21_s28, 128  ;;  %p6690_p11 = scmp.lt.s32.totalorder %s21_s28, %s21_s28 }
  0x1b   :  { %p6686_p10 = scmp.ne.s32.totalorder %s21_s28, %s6685_s7  ;;  %p6691_p12 = scmp.lt.s32.totalorder %s6685_s7, %s6685_s7 }
  0x1d   :  { %p6692_p13 = por %p6691_p12, %p6690_p11 }
  0x1f   :  { %p6693_p0 = pnand %p6692_p13, %p6686_p10 }
  0x21   :  { %6696 = shalt.err (!%p6693_p0)
}
  0x22   :  { %23 = dma.hbm_to_vmem [thread:$0]  %s7040_s0, 128, %s21_s28, [#allocation3]  }
  0x23   :  { %s6770_s9 = smov [#allocation7]   ;;  %s6771_s11 = smov [#allocation10]  }
  0x24   :  { %s42_s10 = sshll.u32 %s6770_s9, 4  ;;  %s64_s12 = sshll.u32 %s6771_s11, 4  ;;  %s43_s10 = int_to_ptr.vmem [resolvable:$true] %s42_s10  ;;  %s65_s12 = int_to_ptr.vmem [resolvable:$true] %s64_s12 }
  0x25   :  { %s6705_s13 = scalar_lea.vmem %s43_s10, 128  ;;  %p6710_p2 = scmp.lt.s32.totalorder %s43_s10, %s43_s10 }
  0x26   :  { %p6706_p1 = scmp.ne.s32.totalorder %s43_s10, %s6705_s13  ;;  %p6711_p3 = scmp.lt.s32.totalorder %s6705_s13, %s6705_s13 }
  0x28   :  { %p6712_p4 = por %p6711_p3, %p6710_p2 }
  0x2a   :  { %p6713_p5 = pnand %p6712_p4, %p6706_p1 }
  0x2c   :  { %6716 = shalt.err (!%p6713_p5)
}
  0x2d   :  { %45 = dma.hbm_to_vmem [thread:$0]  %s7042_s2, 128, %s43_s10, [#allocation6]  }
  0x2e   :  { %s6725_s15 = scalar_lea.vmem %s65_s12, 128  ;;  %p6730_p7 = scmp.lt.s32.totalorder %s65_s12, %s65_s12 }
  0x2f   :  { %p6726_p6 = scmp.ne.s32.totalorder %s65_s12, %s6725_s15  ;;  %p6731_p8 = scmp.lt.s32.totalorder %s6725_s15, %s6725_s15 }
  0x31   :  { %p6732_p9 = por %p6731_p8, %p6730_p7 }
  0x33   :  { %p6733_p10 = pnand %p6732_p9, %p6726_p6 }
  0x35   :  { %6736 = shalt.err (!%p6733_p10)
}
  0x36   :  { %67 = dma.hbm_to_vmem [thread:$0]  %s7044_s4, 128, %s65_s12, [#allocation9]  }
  0x37   :  { %6757 = dma.done.wait [#allocation3], 128  }
  0x38   :  { %6758 = vsyncadd [#allocation3], 4294967168 }
  0x39   :  { %6759 = dma.done.wait [#allocation6], 32896  }
  0x3a   :  { %6760 = vsyncadd [#allocation6], 4294934400 }
  0x3b   :  { %6761 = dma.done.wait [#allocation9], 65664  }
  0x3c   :  { %6762 = vsyncadd [#allocation9], 4294901632  ;;  %v166_v0 = vld [vmem:[#allocation5 + $0x1c0] sm:$0xff]  ;;  %v6772_v32 = vmov 1983009808   ;;  %v89_v34 = vlaneseq  ;;  %v83_v59 = vld [vmem:[#allocation2] sm:$0xff] }
  0x3d   :  { %v170_v1 = vld [vmem:[#allocation5 + $0x1e0] sm:$0xff]  ;;  %v87_v33 = vunpack.c.l.s4 %v6772_v32  ;;  %s6773_s2 = smov [#allocation11]  }
  0x3e   :  { %v294_v2 = vld [vmem:[#allocation5 + $0x5c0] sm:$0xff]  ;;  %v5914_v3 = vcombine.high %v166_v0, %v170_v1  ;;  %v5913_v5 = vcombine.low %v166_v0, %v170_v1  ;;  %v6819_v44 = vshrl.u32 %v89_v34, 7  ;;  %v85_v0 = vcombine.high %v83_v59, %v83_v59  ;;  %s5846_s4 = sshll.u32 %s6773_s2, 4  ;;  %s5847_s4 = int_to_ptr.vmem [resolvable:$true] %s5846_s4 }
  0x3f   :  { %v298_v4 = vld [vmem:[#allocation5 + $0x5e0] sm:$0xff]  ;;  %v88_v43 = vunpack.c.0.s8 %v87_v33  ;;  %s6737_s17 = scalar_lea.vmem %s5847_s4, 256  ;;  %p6742_p12 = scmp.lt.s32.totalorder %s5847_s4, %s5847_s4 }
  0x40   :  { %v158_v6 = vld [vmem:[#allocation5 + $0x180] sm:$0xff]  ;;  %v6042_v8 = vcombine.high %v294_v2, %v298_v4  ;;  %v6041_v9 = vcombine.low %v294_v2, %v298_v4  ;;  %1688 = vmatprep.subr.bf16.mxu0 %v5914_v3  ;;  %p6738_p11 = scmp.ne.s32.totalorder %s5847_s4, %s6737_s17  ;;  %p6743_p13 = scmp.lt.s32.totalorder %s6737_s17, %s6737_s17 }
  0x41   :  { %v162_v7 = vld [vmem:[#allocation5 + $0x1a0] sm:$0xff]  ;;  %1689 = vmatpush1.bf16.msra.mxu0 %v5913_v5  ;;  %v6822_v53 = vsub.s32 %v88_v43, %v6819_v44 }
  0x42   :  { %v5906_v10 = vcombine.high %v158_v6, %v162_v7  ;;  %v286_v11 = vld [vmem:[#allocation5 + $0x580] sm:$0xff]  ;;  %1729 = vmatprep.subr.bf16.mxu1 %v6042_v8  ;;  %v5905_v18 = vcombine.low %v158_v6, %v162_v7  ;;  %p6744_p0 = por %p6743_p13, %p6742_p12 }
  0x43   :  { %v290_v12 = vld [vmem:[#allocation5 + $0x5a0] sm:$0xff]  ;;  %1730 = vmatpush1.bf16.msra.mxu1 %v6041_v9  ;;  %v6825_v63 = vrot.slane %v83_v59, %v6822_v53  ;;  %v6830_v5 = vrot.slane %v85_v0, %v6822_v53 }
  0x44   :  { %v150_v13 = vld [vmem:[#allocation5 + $0x140] sm:$0xff]  ;;  %v6034_v14 = vcombine.high %v286_v11, %v290_v12  ;;  %1690 = vmatprep.subr.bf16.mxu0 %v5906_v10  ;;  %v6033_v19 = vcombine.low %v286_v11, %v290_v12  ;;  %p6745_p1 = pnand %p6744_p0, %p6738_p11 }
  0x45   :  { %v154_v15 = vld [vmem:[#allocation5 + $0x160] sm:$0xff]  ;;  %1691 = vmatpush1.bf16.msra.mxu0 %v5905_v18  ;;  %v100_v4 = vcombine.high %v6825_v63, %v6825_v63  ;;  %v101_v12 = vcombine.high %v6830_v5, %v6830_v5 }
  0x46   :  { %v278_v16 = vld [vmem:[#allocation5 + $0x540] sm:$0xff]  ;;  %v5898_v20 = vcombine.high %v150_v13, %v154_v15  ;;  %1731 = vmatprep.subr.bf16.mxu1 %v6034_v14  ;;  %v5897_v26 = vcombine.low %v150_v13, %v154_v15 }
  0x47   :  { %v282_v17 = vld [vmem:[#allocation5 + $0x560] sm:$0xff]  ;;  %1732 = vmatpush1.bf16.msra.mxu1 %v6033_v19  ;;  %v6832_v11 = vpack.c.bf16 %v100_v4, %v100_v4 }
  0x48   :  { %v6026_v21 = vcombine.high %v278_v16, %v282_v17  ;;  %v142_v22 = vld [vmem:[#allocation5 + $0x100] sm:$0xff]  ;;  %1692 = vmatprep.subr.bf16.mxu0 %v5898_v20  ;;  %v6025_v27 = vcombine.low %v278_v16, %v282_v17  ;;  %v6837_v16 = vpack.c.bf16 %v101_v12, %v101_v12 }
  0x49   :  { %v146_v23 = vld [vmem:[#allocation5 + $0x120] sm:$0xff]  ;;  %1693 = vmatpush1.bf16.msra.mxu0 %v5897_v26  ;;  %1720 = vmatprep.mubr.bf16.mxu0 %v6832_v11 }
  0x4a   :  { %v270_v24 = vld [vmem:[#allocation5 + $0x500] sm:$0xff]  ;;  %v5890_v28 = vcombine.high %v142_v22, %v146_v23  ;;  %1733 = vmatprep.subr.bf16.mxu1 %v6026_v21  ;;  %v5889_v37 = vcombine.low %v142_v22, %v146_v23  ;;  %1761 = vmatprep.mubr.bf16.mxu1 %v6837_v16 }
  0x4b   :  { %v274_v25 = vld [vmem:[#allocation5 + $0x520] sm:$0xff]  ;;  %1734 = vmatpush1.bf16.msra.mxu1 %v6025_v27 }
  0x4c   :  { %v6018_v29 = vcombine.high %v270_v24, %v274_v25  ;;  %v134_v30 = vld [vmem:[#allocation5 + $0xc0] sm:$0xff]  ;;  %1694 = vmatprep.subr.bf16.mxu0 %v5890_v28  ;;  %v6017_v38 = vcombine.low %v270_v24, %v274_v25 }
  0x4d   :  { %v138_v31 = vld [vmem:[#allocation5 + $0xe0] sm:$0xff]  ;;  %1695 = vmatpush1.bf16.msra.mxu0 %v5889_v37 }
  0x4e   :  { %v262_v35 = vld [vmem:[#allocation5 + $0x4c0] sm:$0xff]  ;;  %v5882_v39 = vcombine.high %v134_v30, %v138_v31  ;;  %1735 = vmatprep.subr.bf16.mxu1 %v6018_v29  ;;  %v5881_v47 = vcombine.low %v134_v30, %v138_v31 }
  0x4f   :  { %v266_v36 = vld [vmem:[#allocation5 + $0x4e0] sm:$0xff]  ;;  %1736 = vmatpush1.bf16.msra.mxu1 %v6017_v38 }
  0x50   :  { %v6010_v40 = vcombine.high %v262_v35, %v266_v36  ;;  %v126_v41 = vld [vmem:[#allocation5 + $0x80] sm:$0xff]  ;;  %1696 = vmatprep.subr.bf16.mxu0 %v5882_v39  ;;  %v6009_v48 = vcombine.low %v262_v35, %v266_v36 }
  0x51   :  { %v130_v42 = vld [vmem:[#allocation5 + $0xa0] sm:$0xff]  ;;  %1697 = vmatpush1.bf16.msra.mxu0 %v5881_v47 }
  0x52   :  { %v254_v45 = vld [vmem:[#allocation5 + $0x480] sm:$0xff]  ;;  %v5874_v49 = vcombine.high %v126_v41, %v130_v42  ;;  %1737 = vmatprep.subr.bf16.mxu1 %v6010_v40  ;;  %v5873_v56 = vcombine.low %v126_v41, %v130_v42 }
  0x53   :  { %v258_v46 = vld [vmem:[#allocation5 + $0x4a0] sm:$0xff]  ;;  %1738 = vmatpush1.bf16.msra.mxu1 %v6009_v48 }
  0x54   :  { %v6002_v50 = vcombine.high %v254_v45, %v258_v46  ;;  %v118_v51 = vld [vmem:[#allocation5 + $0x40] sm:$0xff]  ;;  %1698 = vmatprep.subr.bf16.mxu0 %v5874_v49  ;;  %v6001_v57 = vcombine.low %v254_v45, %v258_v46 }
  0x55   :  { %v122_v52 = vld [vmem:[#allocation5 + $0x60] sm:$0xff]  ;;  %1699 = vmatpush1.bf16.msra.mxu0 %v5873_v56 }
  0x56   :  { %v246_v54 = vld [vmem:[#allocation5 + $0x440] sm:$0xff]  ;;  %v5866_v58 = vcombine.high %v118_v51, %v122_v52  ;;  %1739 = vmatprep.subr.bf16.mxu1 %v6002_v50  ;;  %v5865_v3 = vcombine.low %v118_v51, %v122_v52 }
  0x57   :  { %v250_v55 = vld [vmem:[#allocation5 + $0x460] sm:$0xff]  ;;  %1740 = vmatpush1.bf16.msra.mxu1 %v6001_v57 }
  0x58   :  { %v5994_v60 = vcombine.high %v246_v54, %v250_v55  ;;  %v110_v61 = vld [vmem:[#allocation5] sm:$0xff]  ;;  %1700 = vmatprep.subr.bf16.mxu0 %v5866_v58  ;;  %v5993_v6 = vcombine.low %v246_v54, %v250_v55 }
  0x59   :  { %v114_v62 = vld [vmem:[#allocation5 + $0x20] sm:$0xff]  ;;  %1701 = vmatpush1.bf16.msra.mxu0 %v5865_v3 }
  0x5a   :  { %v238_v1 = vld [vmem:[#allocation5 + $0x400] sm:$0xff]  ;;  %v5858_v7 = vcombine.high %v110_v61, %v114_v62  ;;  %1741 = vmatprep.subr.bf16.mxu1 %v5994_v60  ;;  %v5857_v15 = vcombine.low %v110_v61, %v114_v62 }
  0x5b   :  { %v242_v2 = vld [vmem:[#allocation5 + $0x420] sm:$0xff]  ;;  %1742 = vmatpush1.bf16.msra.mxu1 %v5993_v6 }
  0x5c   :  { %v5986_v8 = vcombine.high %v238_v1, %v242_v2  ;;  %v230_v9 = vld [vmem:[#allocation5 + $0x3c0] sm:$0xff]  ;;  %1702 = vmatprep.subr.bf16.mxu0 %v5858_v7  ;;  %v5985_v17 = vcombine.low %v238_v1, %v242_v2 }
  0x5d   :  { %v234_v10 = vld [vmem:[#allocation5 + $0x3e0] sm:$0xff]  ;;  %1703 = vmatpush1.bf16.msra.mxu0 %v5857_v15 }
  0x5e   :  { %v358_v13 = vld [vmem:[#allocation5 + $0x7c0] sm:$0xff]  ;;  %v5978_v18 = vcombine.high %v230_v9, %v234_v10  ;;  %1743 = vmatprep.subr.bf16.mxu1 %v5986_v8  ;;  %v5977_v24 = vcombine.low %v230_v9, %v234_v10 }
  0x5f   :  { %v362_v14 = vld [vmem:[#allocation5 + $0x7e0] sm:$0xff]  ;;  %1744 = vmatpush1.bf16.msra.mxu1 %v5985_v17 }
  0x60   :  { %v6106_v19 = vcombine.high %v358_v13, %v362_v14  ;;  %v222_v20 = vld [vmem:[#allocation5 + $0x380] sm:$0xff]  ;;  %1704 = vmatprep.subr.bf16.mxu0 %v5978_v18  ;;  %v6105_v25 = vcombine.low %v358_v13, %v362_v14  ;;  %v167_v18 = vld [vmem:[#allocation5 + $0x1c8] sm:$0xff] }
  0x61   :  { %v226_v21 = vld [vmem:[#allocation5 + $0x3a0] sm:$0xff]  ;;  %1705 = vmatpush2.bf16.msra.mxu0 %v5977_v24 }
  0x62   :  { %v350_v22 = vld [vmem:[#allocation5 + $0x780] sm:$0xff]  ;;  %v5970_v26 = vcombine.high %v222_v20, %v226_v21  ;;  %1745 = vmatprep.subr.bf16.mxu1 %v6106_v19  ;;  %v5969_v32 = vcombine.low %v222_v20, %v226_v21  ;;  %v171_v19 = vld [vmem:[#allocation5 + $0x1e8] sm:$0xff] }
  0x63   :  { %v354_v23 = vld [vmem:[#allocation5 + $0x7a0] sm:$0xff]  ;;  %1746 = vmatpush2.bf16.msra.mxu1 %v6105_v25  ;;  %v295_v20 = vld [vmem:[#allocation5 + $0x5c8] sm:$0xff]  ;;  %v5916_v24 = vcombine.high %v167_v18, %v171_v19 }
  0x64   :  { %v6098_v27 = vcombine.high %v350_v22, %v354_v23  ;;  %v214_v28 = vld [vmem:[#allocation5 + $0x340] sm:$0xff]  ;;  %1706 = vmatprep.subr.bf16.mxu0 %v5970_v26  ;;  %v6097_v33 = vcombine.low %v350_v22, %v354_v23  ;;  %v299_v21 = vld [vmem:[#allocation5 + $0x5e8] sm:$0xff] }
  0x65   :  { %v218_v29 = vld [vmem:[#allocation5 + $0x360] sm:$0xff]  ;;  %1707 = vmatpush2.bf16.msra.mxu0 %v5969_v32  ;;  %v6044_v25 = vcombine.high %v295_v20, %v299_v21  ;;  %v159_v26 = vld [vmem:[#allocation5 + $0x188] sm:$0xff]  ;;  %v5915_v32 = vcombine.low %v167_v18, %v171_v19 }
  0x66   :  { %v342_v30 = vld [vmem:[#allocation5 + $0x740] sm:$0xff]  ;;  %v5962_v34 = vcombine.high %v214_v28, %v218_v29  ;;  %1747 = vmatprep.subr.bf16.mxu1 %v6098_v27  ;;  %v5961_v40 = vcombine.low %v214_v28, %v218_v29  ;;  %v163_v27 = vld [vmem:[#allocation5 + $0x1a8] sm:$0xff]  ;;  %v6842_v28 = vpack.c.bf16 %v6825_v63, %v6825_v63 }
  0x67   :  { %v346_v31 = vld [vmem:[#allocation5 + $0x760] sm:$0xff]  ;;  %1748 = vmatpush2.bf16.msra.mxu1 %v6097_v33  ;;  %v287_v29 = vld [vmem:[#allocation5 + $0x588] sm:$0xff]  ;;  %v6043_v33 = vcombine.low %v295_v20, %v299_v21 }
  0x68   :  { %v6090_v35 = vcombine.high %v342_v30, %v346_v31  ;;  %v206_v36 = vld [vmem:[#allocation5 + $0x300] sm:$0xff]  ;;  %1708 = vmatprep.subr.bf16.mxu0 %v5962_v34  ;;  %v6089_v41 = vcombine.low %v342_v30, %v346_v31  ;;  %v291_v30 = vld [vmem:[#allocation5 + $0x5a8] sm:$0xff]  ;;  %v6846_v31 = vpack.c.bf16 %v6830_v5, %v6830_v5  ;;  %v5908_v34 = vcombine.high %v159_v26, %v163_v27 }
  0x69   :  { %v210_v37 = vld [vmem:[#allocation5 + $0x320] sm:$0xff]  ;;  %1709 = vmatpush2.bf16.msra.mxu0 %v5961_v40  ;;  %v279_v63 = vld [vmem:[#allocation5 + $0x548] sm:$0xff]  ;;  %v6035_v5 = vcombine.low %v287_v29, %v291_v30 }
  0x6a   :  { %v334_v38 = vld [vmem:[#allocation5 + $0x700] sm:$0xff]  ;;  %v5954_v42 = vcombine.high %v206_v36, %v210_v37  ;;  %1749 = vmatprep.subr.bf16.mxu1 %v6090_v35  ;;  %v5953_v49 = vcombine.low %v206_v36, %v210_v37  ;;  %v6036_v35 = vcombine.high %v287_v29, %v291_v30  ;;  %v151_v36 = vld [vmem:[#allocation5 + $0x148] sm:$0xff] }
  0x6b   :  { %v338_v39 = vld [vmem:[#allocation5 + $0x720] sm:$0xff]  ;;  %1750 = vmatpush2.bf16.msra.mxu1 %v6089_v41  ;;  %v155_v37 = vld [vmem:[#allocation5 + $0x168] sm:$0xff] }
  0x6c   :  { %v6082_v43 = vcombine.high %v334_v38, %v338_v39  ;;  %v198_v45 = vld [vmem:[#allocation5 + $0x2c0] sm:$0xff]  ;;  %1710 = vmatprep.subr.bf16.mxu0 %v5954_v42  ;;  %v6081_v50 = vcombine.low %v334_v38, %v338_v39  ;;  %v283_v38 = vld [vmem:[#allocation5 + $0x568] sm:$0xff]  ;;  %v5907_v39 = vcombine.low %v159_v26, %v163_v27  ;;  %v5900_v40 = vcombine.high %v151_v36, %v155_v37 }
  0x6d   :  { %v202_v46 = vld [vmem:[#allocation5 + $0x2e0] sm:$0xff]  ;;  %1711 = vmatpush2.bf16.msra.mxu0 %v5953_v49  ;;  %v6028_v41 = vcombine.high %v279_v63, %v283_v38  ;;  %v143_v42 = vld [vmem:[#allocation5 + $0x108] sm:$0xff] }
  0x6e   :  { %v326_v47 = vld [vmem:[#allocation5 + $0x6c0] sm:$0xff]  ;;  %v5946_v51 = vcombine.high %v198_v45, %v202_v46  ;;  %1751 = vmatprep.subr.bf16.mxu1 %v6082_v43  ;;  %v5945_v58 = vcombine.low %v198_v45, %v202_v46  ;;  %v147_v43 = vld [vmem:[#allocation5 + $0x128] sm:$0xff] }
  0x6f   :  { %v330_v48 = vld [vmem:[#allocation5 + $0x6e0] sm:$0xff]  ;;  %1752 = vmatpush2.bf16.msra.mxu1 %v6081_v50  ;;  %v271_v45 = vld [vmem:[#allocation5 + $0x508] sm:$0xff]  ;;  %v5892_v49 = vcombine.high %v143_v42, %v147_v43 }
  0x70   :  { %v6074_v52 = vcombine.high %v326_v47, %v330_v48  ;;  %v190_v54 = vld [vmem:[#allocation5 + $0x280] sm:$0xff]  ;;  %1712 = vmatprep.subr.bf16.mxu0 %v5946_v51  ;;  %v6073_v59 = vcombine.low %v326_v47, %v330_v48  ;;  %v275_v46 = vld [vmem:[#allocation5 + $0x528] sm:$0xff]  ;;  %v5899_v47 = vcombine.low %v151_v36, %v155_v37  ;;  %v6027_v48 = vcombine.low %v279_v63, %v283_v38 }
  0x71   :  { %v194_v55 = vld [vmem:[#allocation5 + $0x2a0] sm:$0xff]  ;;  %1713 = vmatpush2.bf16.msra.mxu0 %v5945_v58  ;;  %v6020_v50 = vcombine.high %v271_v45, %v275_v46  ;;  %v135_v51 = vld [vmem:[#allocation5 + $0xc8] sm:$0xff] }
  0x72   :  { %v318_v56 = vld [vmem:[#allocation5 + $0x680] sm:$0xff]  ;;  %v5938_v60 = vcombine.high %v190_v54, %v194_v55  ;;  %1753 = vmatprep.subr.bf16.mxu1 %v6074_v52  ;;  %v5937_v3 = vcombine.low %v190_v54, %v194_v55  ;;  %v139_v52 = vld [vmem:[#allocation5 + $0xe8] sm:$0xff] }
  0x73   :  { %v322_v57 = vld [vmem:[#allocation5 + $0x6a0] sm:$0xff]  ;;  %1754 = vmatpush2.bf16.msra.mxu1 %v6073_v59  ;;  %v263_v54 = vld [vmem:[#allocation5 + $0x4c8] sm:$0xff]  ;;  %v5884_v58 = vcombine.high %v135_v51, %v139_v52 }
  0x74   :  { %v6066_v61 = vcombine.high %v318_v56, %v322_v57  ;;  %v182_v62 = vld [vmem:[#allocation5 + $0x240] sm:$0xff]  ;;  %1714 = vmatprep.subr.bf16.mxu0 %v5938_v60  ;;  %v6065_v4 = vcombine.low %v318_v56, %v322_v57  ;;  %v267_v55 = vld [vmem:[#allocation5 + $0x4e8] sm:$0xff]  ;;  %v5891_v56 = vcombine.low %v143_v42, %v147_v43  ;;  %v6019_v57 = vcombine.low %v271_v45, %v275_v46 }
  0x75   :  { %v186_v0 = vld [vmem:[#allocation5 + $0x260] sm:$0xff]  ;;  %1715 = vmatpush2.bf16.msra.mxu0 %v5937_v3  ;;  %v6012_v59 = vcombine.high %v263_v54, %v267_v55  ;;  %v127_v60 = vld [vmem:[#allocation5 + $0x88] sm:$0xff] }
  0x76   :  { %v310_v1 = vld [vmem:[#allocation5 + $0x640] sm:$0xff]  ;;  %v5930_v6 = vcombine.high %v182_v62, %v186_v0  ;;  %1755 = vmatprep.subr.bf16.mxu1 %v6066_v61  ;;  %v5929_v13 = vcombine.low %v182_v62, %v186_v0  ;;  %v131_v61 = vld [vmem:[#allocation5 + $0xa8] sm:$0xff] }
  0x77   :  { %v314_v2 = vld [vmem:[#allocation5 + $0x660] sm:$0xff]  ;;  %1756 = vmatpush2.bf16.msra.mxu1 %v6065_v4  ;;  %v255_v62 = vld [vmem:[#allocation5 + $0x488] sm:$0xff]  ;;  %v5876_v3 = vcombine.high %v127_v60, %v131_v61 }
  0x78   :  { %v6058_v7 = vcombine.high %v310_v1, %v314_v2  ;;  %v174_v8 = vld [vmem:[#allocation5 + $0x200] sm:$0xff]  ;;  %1716 = vmatprep.subr.bf16.mxu0 %v5930_v6  ;;  %v6057_v14 = vcombine.low %v310_v1, %v314_v2  ;;  %v259_v0 = vld [vmem:[#allocation5 + $0x4a8] sm:$0xff]  ;;  %v5883_v1 = vcombine.low %v135_v51, %v139_v52  ;;  %v6011_v2 = vcombine.low %v263_v54, %v267_v55 }
  0x79   :  { %v178_v9 = vld [vmem:[#allocation5 + $0x220] sm:$0xff]  ;;  %1717 = vmatpush2.bf16.msra.mxu0 %v5929_v13  ;;  %v6004_v4 = vcombine.high %v255_v62, %v259_v0  ;;  %v119_v6 = vld [vmem:[#allocation5 + $0x48] sm:$0xff] }
  0x7a   :  { %v302_v10 = vld [vmem:[#allocation5 + $0x600] sm:$0xff]  ;;  %v5922_v15 = vcombine.high %v174_v8, %v178_v9  ;;  %1757 = vmatprep.subr.bf16.mxu1 %v6058_v7  ;;  %v5921_v22 = vcombine.low %v174_v8, %v178_v9  ;;  %v123_v7 = vld [vmem:[#allocation5 + $0x68] sm:$0xff] }
  0x7b   :  { %v306_v12 = vld [vmem:[#allocation5 + $0x620] sm:$0xff]  ;;  %1758 = vmatpush2.bf16.msra.mxu1 %v6057_v14  ;;  %v247_v8 = vld [vmem:[#allocation5 + $0x448] sm:$0xff]  ;;  %v5868_v13 = vcombine.high %v119_v6, %v123_v7  ;;  %v5867_v20 = vcombine.low %v119_v6, %v123_v7 }
  0x7c   :  { %v6050_v17 = vcombine.high %v302_v10, %v306_v12  ;;  %1718 = vmatprep.subr.bf16.mxu0 %v5922_v15  ;;  %v6049_v23 = vcombine.low %v302_v10, %v306_v12  ;;  %v251_v9 = vld [vmem:[#allocation5 + $0x468] sm:$0xff]  ;;  %v5875_v10 = vcombine.low %v127_v60, %v131_v61  ;;  %v6003_v12 = vcombine.low %v255_v62, %v259_v0 }
  0x7d   :  { %1719 = vmatpush2.bf16.msra.mxu0 %v5921_v22  ;;  %v5996_v14 = vcombine.high %v247_v8, %v251_v9  ;;  %v111_v15 = vld [vmem:[#allocation5 + $0x8] sm:$0xff]  ;;  %v5995_v21 = vcombine.low %v247_v8, %v251_v9 }
  0x7e   :  { %1759 = vmatprep.subr.bf16.mxu1 %v6050_v17  ;;  %1770 = vmatprep.subr.bf16.mxu0 %v5916_v24  ;;  %v115_v17 = vld [vmem:[#allocation5 + $0x28] sm:$0xff] }
  0x7f   :  { %1760 = vmatpush2.bf16.msra.mxu1 %v6049_v23  ;;  %v239_v18 = vld [vmem:[#allocation5 + $0x408] sm:$0xff]  ;;  %v5860_v22 = vcombine.high %v111_v15, %v115_v17  ;;  %v5859_v29 = vcombine.low %v111_v15, %v115_v17 }
  0x80   :  { %1811 = vmatprep.subr.bf16.mxu1 %v6044_v25  ;;  %1721 = vmatmul.mubr.bf16.vlgmr.msra.gmra.mxu0 %v6842_v28  ;;  %v243_v19 = vld [vmem:[#allocation5 + $0x428] sm:$0xff] }
  0x81   :  { %1771 = vmatpush1.bf16.msra.mxu0 %v5915_v32  ;;  %1802 = vmatprep.mubr.bf16.mxu0 %v6832_v11  ;;  %v5988_v23 = vcombine.high %v239_v18, %v243_v19  ;;  %v231_v24 = vld [vmem:[#allocation5 + $0x3c8] sm:$0xff]  ;;  %v5987_v30 = vcombine.low %v239_v18, %v243_v19 }
  0x82   :  { %1762 = vmatmul.mubr.bf16.vlgmr.msra.gmra.mxu1 %v6846_v31  ;;  %1772 = vmatprep.subr.bf16.mxu0 %v5908_v34  ;;  %v235_v25 = vld [vmem:[#allocation5 + $0x3e8] sm:$0xff] }
  0x83   :  { %1812 = vmatpush1.bf16.msra.mxu1 %v6043_v33  ;;  %1843 = vmatprep.mubr.bf16.mxu1 %v6837_v16  ;;  %v359_v26 = vld [vmem:[#allocation5 + $0x7c8] sm:$0xff]  ;;  %v5980_v32 = vcombine.high %v231_v24, %v235_v25  ;;  %v5979_v63 = vcombine.low %v231_v24, %v235_v25 }
  0x84   :  { %1813 = vmatprep.subr.bf16.mxu1 %v6036_v35  ;;  %v363_v27 = vld [vmem:[#allocation5 + $0x7e8] sm:$0xff] }
  0x85   :  { %1773 = vmatpush1.bf16.msra.mxu0 %v5907_v39  ;;  %v6108_v33 = vcombine.high %v359_v26, %v363_v27  ;;  %v223_v34 = vld [vmem:[#allocation5 + $0x388] sm:$0xff]  ;;  %v6107_v38 = vcombine.low %v359_v26, %v363_v27 }
  0x86   :  { %1774 = vmatprep.subr.bf16.mxu0 %v5900_v40  ;;  %v227_v35 = vld [vmem:[#allocation5 + $0x3a8] sm:$0xff] }
  0x87   :  { %1814 = vmatpush1.bf16.msra.mxu1 %v6035_v5  ;;  %v351_v36 = vld [vmem:[#allocation5 + $0x788] sm:$0xff]  ;;  %v5972_v39 = vcombine.high %v223_v34, %v227_v35  ;;  %v5971_v45 = vcombine.low %v223_v34, %v227_v35  ;;  %v296_v34 = vld [vmem:[#allocation5 + $0x5d0] sm:$0xff] }
  0x88   :  { %1815 = vmatprep.subr.bf16.mxu1 %v6028_v41  ;;  %v355_v37 = vld [vmem:[#allocation5 + $0x7a8] sm:$0xff]  ;;  %v300_v35 = vld [vmem:[#allocation5 + $0x5f0] sm:$0xff] }
  0x89   :  { %1775 = vmatpush1.bf16.msra.mxu0 %v5899_v47  ;;  %v6100_v5 = vcombine.high %v351_v36, %v355_v37  ;;  %v215_v40 = vld [vmem:[#allocation5 + $0x348] sm:$0xff]  ;;  %v6099_v46 = vcombine.low %v351_v36, %v355_v37 }
  0x8a   :  { %1776 = vmatprep.subr.bf16.mxu0 %v5892_v49  ;;  %v219_v41 = vld [vmem:[#allocation5 + $0x368] sm:$0xff] }
  0x8b   :  { %1816 = vmatpush1.bf16.msra.mxu1 %v6027_v48  ;;  %v343_v42 = vld [vmem:[#allocation5 + $0x748] sm:$0xff]  ;;  %v5964_v47 = vcombine.high %v215_v40, %v219_v41  ;;  %v5963_v54 = vcombine.low %v215_v40, %v219_v41  ;;  %v288_v40 = vld [vmem:[#allocation5 + $0x590] sm:$0xff] }
  0x8c   :  { %1817 = vmatprep.subr.bf16.mxu1 %v6020_v50  ;;  %v347_v43 = vld [vmem:[#allocation5 + $0x768] sm:$0xff]  ;;  %v292_v41 = vld [vmem:[#allocation5 + $0x5b0] sm:$0xff] }
  0x8d   :  { %1777 = vmatpush1.bf16.msra.mxu0 %v5891_v56  ;;  %v6092_v48 = vcombine.high %v343_v42, %v347_v43  ;;  %v207_v49 = vld [vmem:[#allocation5 + $0x308] sm:$0xff]  ;;  %v6091_v55 = vcombine.low %v343_v42, %v347_v43  ;;  %v6045_v43 = vcombine.low %v296_v34, %v300_v35 }
  0x8e   :  { %1778 = vmatprep.subr.bf16.mxu0 %v5884_v58  ;;  %v211_v50 = vld [vmem:[#allocation5 + $0x328] sm:$0xff] }
  0x8f   :  { %1818 = vmatpush1.bf16.msra.mxu1 %v6019_v57  ;;  %v335_v51 = vld [vmem:[#allocation5 + $0x708] sm:$0xff]  ;;  %v5956_v56 = vcombine.high %v207_v49, %v211_v50  ;;  %v5955_v62 = vcombine.low %v207_v49, %v211_v50  ;;  %v280_v49 = vld [vmem:[#allocation5 + $0x550] sm:$0xff] }
  0x90   :  { %1819 = vmatprep.subr.bf16.mxu1 %v6012_v59  ;;  %v339_v52 = vld [vmem:[#allocation5 + $0x728] sm:$0xff]  ;;  %v284_v50 = vld [vmem:[#allocation5 + $0x570] sm:$0xff] }
  0x91   :  { %1779 = vmatpush1.bf16.msra.mxu0 %v5883_v1  ;;  %v6084_v57 = vcombine.high %v335_v51, %v339_v52  ;;  %v199_v58 = vld [vmem:[#allocation5 + $0x2c8] sm:$0xff]  ;;  %v6083_v0 = vcombine.low %v335_v51, %v339_v52  ;;  %v6037_v52 = vcombine.low %v288_v40, %v292_v41 }
  0x92   :  { %1780 = vmatprep.subr.bf16.mxu0 %v5876_v3  ;;  %v203_v59 = vld [vmem:[#allocation5 + $0x2e8] sm:$0xff] }
  0x93   :  { %1820 = vmatpush1.bf16.msra.mxu1 %v6011_v2  ;;  %v327_v60 = vld [vmem:[#allocation5 + $0x6c8] sm:$0xff]  ;;  %v5948_v1 = vcombine.high %v199_v58, %v203_v59  ;;  %v5947_v8 = vcombine.low %v199_v58, %v203_v59  ;;  %v272_v58 = vld [vmem:[#allocation5 + $0x510] sm:$0xff] }
  0x94   :  { %1821 = vmatprep.subr.bf16.mxu1 %v6004_v4  ;;  %v331_v61 = vld [vmem:[#allocation5 + $0x6e8] sm:$0xff]  ;;  %v276_v59 = vld [vmem:[#allocation5 + $0x530] sm:$0xff] }
  0x95   :  { %1781 = vmatpush1.bf16.msra.mxu0 %v5875_v10  ;;  %v6076_v2 = vcombine.high %v327_v60, %v331_v61  ;;  %v191_v3 = vld [vmem:[#allocation5 + $0x288] sm:$0xff]  ;;  %v6075_v9 = vcombine.low %v327_v60, %v331_v61  ;;  %v6029_v61 = vcombine.low %v280_v49, %v284_v50 }
  0x96   :  { %1782 = vmatprep.subr.bf16.mxu0 %v5868_v13  ;;  %v195_v4 = vld [vmem:[#allocation5 + $0x2a8] sm:$0xff] }
  0x97   :  { %1822 = vmatpush1.bf16.msra.mxu1 %v6003_v12  ;;  %v319_v6 = vld [vmem:[#allocation5 + $0x688] sm:$0xff]  ;;  %v5940_v10 = vcombine.high %v191_v3, %v195_v4  ;;  %v5939_v18 = vcombine.low %v191_v3, %v195_v4  ;;  %v264_v3 = vld [vmem:[#allocation5 + $0x4d0] sm:$0xff] }
  0x98   :  { %1823 = vmatprep.subr.bf16.mxu1 %v5996_v14  ;;  %v323_v7 = vld [vmem:[#allocation5 + $0x6a8] sm:$0xff]  ;;  %v268_v4 = vld [vmem:[#allocation5 + $0x4f0] sm:$0xff] }
  0x99   :  { %1783 = vmatpush1.bf16.msra.mxu0 %v5867_v20  ;;  %v6068_v12 = vcombine.high %v319_v6, %v323_v7  ;;  %v183_v13 = vld [vmem:[#allocation5 + $0x248] sm:$0xff]  ;;  %v6067_v19 = vcombine.low %v319_v6, %v323_v7  ;;  %v6021_v7 = vcombine.low %v272_v58, %v276_v59 }
  0x9a   :  { %1784 = vmatprep.subr.bf16.mxu0 %v5860_v22  ;;  %v187_v14 = vld [vmem:[#allocation5 + $0x268] sm:$0xff] }
  0x9b   :  { %1824 = vmatpush1.bf16.msra.mxu1 %v5995_v21  ;;  %v311_v15 = vld [vmem:[#allocation5 + $0x648] sm:$0xff]  ;;  %v5932_v20 = vcombine.high %v183_v13, %v187_v14  ;;  %v5931_v26 = vcombine.low %v183_v13, %v187_v14  ;;  %v256_v13 = vld [vmem:[#allocation5 + $0x490] sm:$0xff] }
  0x9c   :  { %1825 = vmatprep.subr.bf16.mxu1 %v5988_v23  ;;  %v315_v17 = vld [vmem:[#allocation5 + $0x668] sm:$0xff]  ;;  %v260_v14 = vld [vmem:[#allocation5 + $0x4b0] sm:$0xff] }
  0x9d   :  { %1785 = vmatpush1.bf16.msra.mxu0 %v5859_v29  ;;  %v6060_v21 = vcombine.high %v311_v15, %v315_v17  ;;  %v175_v22 = vld [vmem:[#allocation5 + $0x208] sm:$0xff]  ;;  %v6059_v27 = vcombine.low %v311_v15, %v315_v17  ;;  %v6013_v17 = vcombine.low %v264_v3, %v268_v4 }
  0x9e   :  { %1786 = vmatprep.subr.bf16.mxu0 %v5980_v32  ;;  %v179_v23 = vld [vmem:[#allocation5 + $0x228] sm:$0xff]  ;;  %v168_v32 = vld [vmem:[#allocation5 + $0x1d0] sm:$0xff] }
  0x9f   :  { %1826 = vmatpush1.bf16.msra.mxu1 %v5987_v30  ;;  %v303_v24 = vld [vmem:[#allocation5 + $0x608] sm:$0xff]  ;;  %v5924_v29 = vcombine.high %v175_v22, %v179_v23  ;;  %v5923_v36 = vcombine.low %v175_v22, %v179_v23  ;;  %v248_v22 = vld [vmem:[#allocation5 + $0x450] sm:$0xff] }
  0xa0   :  { %1827 = vmatprep.subr.bf16.mxu1 %v6108_v33  ;;  %v307_v25 = vld [vmem:[#allocation5 + $0x628] sm:$0xff]  ;;  %v172_v33 = vld [vmem:[#allocation5 + $0x1f0] sm:$0xff] }
  0xa1   :  { %1787 = vmatpush2.bf16.msra.mxu0 %v5979_v63  ;;  %v6052_v30 = vcombine.high %v303_v24, %v307_v25  ;;  %v6051_v37 = vcombine.low %v303_v24, %v307_v25  ;;  %v5918_v63 = vcombine.high %v168_v32, %v172_v33  ;;  %v5917_v42 = vcombine.low %v168_v32, %v172_v33  ;;  %v252_v23 = vld [vmem:[#allocation5 + $0x470] sm:$0xff] }
  0xa2   :  { %1788 = vmatprep.subr.bf16.mxu0 %v5972_v39  ;;  %v160_v39 = vld [vmem:[#allocation5 + $0x190] sm:$0xff]  ;;  %v6005_v25 = vcombine.low %v256_v13, %v260_v14 }
  0xa3   :  { %1828 = vmatpush2.bf16.msra.mxu1 %v6107_v38  ;;  %v6046_v38 = vcombine.high %v296_v34, %v300_v35  ;;  %v240_v32 = vld [vmem:[#allocation5 + $0x410] sm:$0xff]  ;;  %v5997_v35 = vcombine.low %v248_v22, %v252_v23 }
  0xa4   :  { %1829 = vmatprep.subr.bf16.mxu1 %v6100_v5  ;;  %v164_v5 = vld [vmem:[#allocation5 + $0x1b0] sm:$0xff] }
  0xa5   :  { %1789 = vmatpush2.bf16.msra.mxu0 %v5971_v45  ;;  %v5910_v45 = vcombine.high %v160_v39, %v164_v5  ;;  %v5909_v51 = vcombine.low %v160_v39, %v164_v5  ;;  %v244_v33 = vld [vmem:[#allocation5 + $0x430] sm:$0xff] }
  0xa6   :  { %1790 = vmatprep.subr.bf16.mxu0 %v5964_v47  ;;  %v152_v47 = vld [vmem:[#allocation5 + $0x150] sm:$0xff] }
  0xa7   :  { %1830 = vmatpush2.bf16.msra.mxu1 %v6099_v46  ;;  %v6038_v46 = vcombine.high %v288_v40, %v292_v41  ;;  %v360_v39 = vld [vmem:[#allocation5 + $0x7d0] sm:$0xff]  ;;  %v5989_v41 = vcombine.low %v240_v32, %v244_v33 }
  0xa8   :  { %1831 = vmatprep.subr.bf16.mxu1 %v6092_v48  ;;  %v156_v48 = vld [vmem:[#allocation5 + $0x170] sm:$0xff] }
  0xa9   :  { %1791 = vmatpush2.bf16.msra.mxu0 %v5963_v54  ;;  %v5902_v54 = vcombine.high %v152_v47, %v156_v48  ;;  %v5901_v60 = vcombine.low %v152_v47, %v156_v48  ;;  %v364_v5 = vld [vmem:[#allocation5 + $0x7f0] sm:$0xff] }
  0xaa   :  { %1792 = vmatprep.subr.bf16.mxu0 %v5956_v56  ;;  %v144_v56 = vld [vmem:[#allocation5 + $0x110] sm:$0xff] }
  0xab   :  { %1832 = vmatpush2.bf16.msra.mxu1 %v6091_v55  ;;  %v6030_v55 = vcombine.high %v280_v49, %v284_v50  ;;  %v352_v47 = vld [vmem:[#allocation5 + $0x790] sm:$0xff]  ;;  %v6109_v50 = vcombine.low %v360_v39, %v364_v5 }
  0xac   :  { %1833 = vmatprep.subr.bf16.mxu1 %v6084_v57  ;;  %v148_v57 = vld [vmem:[#allocation5 + $0x130] sm:$0xff] }
  0xad   :  { %1793 = vmatpush2.bf16.msra.mxu0 %v5955_v62  ;;  %v5894_v62 = vcombine.high %v144_v56, %v148_v57  ;;  %v5893_v6 = vcombine.low %v144_v56, %v148_v57  ;;  %v356_v48 = vld [vmem:[#allocation5 + $0x7b0] sm:$0xff] }
  0xae   :  { %1794 = vmatprep.subr.bf16.mxu0 %v5948_v1  ;;  %v136_v1 = vld [vmem:[#allocation5 + $0xd0] sm:$0xff] }
  0xaf   :  { %1834 = vmatpush2.bf16.msra.mxu1 %v6083_v0  ;;  %v6022_v0 = vcombine.high %v272_v58, %v276_v59  ;;  %v344_v56 = vld [vmem:[#allocation5 + $0x750] sm:$0xff]  ;;  %v6101_v59 = vcombine.low %v352_v47, %v356_v48 }
  0xb0   :  { %1835 = vmatprep.subr.bf16.mxu1 %v6076_v2  ;;  %v140_v2 = vld [vmem:[#allocation5 + $0xf0] sm:$0xff] }
  0xb1   :  { %1795 = vmatpush2.bf16.msra.mxu0 %v5947_v8  ;;  %v5886_v8 = vcombine.high %v136_v1, %v140_v2  ;;  %v5885_v15 = vcombine.low %v136_v1, %v140_v2  ;;  %v348_v57 = vld [vmem:[#allocation5 + $0x770] sm:$0xff] }
  0xb2   :  { %1796 = vmatprep.subr.bf16.mxu0 %v5940_v10  ;;  %v128_v10 = vld [vmem:[#allocation5 + $0x90] sm:$0xff] }
  0xb3   :  { %1836 = vmatpush2.bf16.msra.mxu1 %v6075_v9  ;;  %v6014_v9 = vcombine.high %v264_v3, %v268_v4  ;;  %v336_v1 = vld [vmem:[#allocation5 + $0x710] sm:$0xff]  ;;  %v6093_v4 = vcombine.low %v344_v56, %v348_v57 }
  0xb4   :  { %1837 = vmatprep.subr.bf16.mxu1 %v6068_v12  ;;  %v132_v12 = vld [vmem:[#allocation5 + $0xb0] sm:$0xff] }
  0xb5   :  { %1797 = vmatpush2.bf16.msra.mxu0 %v5939_v18  ;;  %v5878_v18 = vcombine.high %v128_v10, %v132_v12  ;;  %v5877_v24 = vcombine.low %v128_v10, %v132_v12  ;;  %v340_v2 = vld [vmem:[#allocation5 + $0x730] sm:$0xff] }
  0xb6   :  { %1798 = vmatprep.subr.bf16.mxu0 %v5932_v20  ;;  %v120_v20 = vld [vmem:[#allocation5 + $0x50] sm:$0xff] }
  0xb7   :  { %1838 = vmatpush2.bf16.msra.mxu1 %v6067_v19  ;;  %v6006_v19 = vcombine.high %v256_v13, %v260_v14  ;;  %v328_v10 = vld [vmem:[#allocation5 + $0x6d0] sm:$0xff]  ;;  %v6085_v14 = vcombine.low %v336_v1, %v340_v2 }
  0xb8   :  { %1839 = vmatprep.subr.bf16.mxu1 %v6060_v21  ;;  %v124_v21 = vld [vmem:[#allocation5 + $0x70] sm:$0xff] }
  0xb9   :  { %1799 = vmatpush2.bf16.msra.mxu0 %v5931_v26  ;;  %v5870_v26 = vcombine.high %v120_v20, %v124_v21  ;;  %v5869_v34 = vcombine.low %v120_v20, %v124_v21  ;;  %v332_v12 = vld [vmem:[#allocation5 + $0x6f0] sm:$0xff] }
  0xba   :  { %1800 = vmatprep.subr.bf16.mxu0 %v5924_v29  ;;  %v112_v29 = vld [vmem:[#allocation5 + $0x10] sm:$0xff] }
  0xbb   :  { %1840 = vmatpush2.bf16.msra.mxu1 %v6059_v27  ;;  %v5998_v27 = vcombine.high %v248_v22, %v252_v23  ;;  %v320_v20 = vld [vmem:[#allocation5 + $0x690] sm:$0xff]  ;;  %v6077_v23 = vcombine.low %v328_v10, %v332_v12 }
  0xbc   :  { %1841 = vmatprep.subr.bf16.mxu1 %v6052_v30  ;;  %v116_v30 = vld [vmem:[#allocation5 + $0x30] sm:$0xff] }
  0xbd   :  { %1801 = vmatpush2.bf16.msra.mxu0 %v5923_v36  ;;  %v5862_v36 = vcombine.high %v112_v29, %v116_v30  ;;  %v5861_v40 = vcombine.low %v112_v29, %v116_v30  ;;  %v324_v21 = vld [vmem:[#allocation5 + $0x6b0] sm:$0xff] }
  0xbe   :  { %1852 = vmatprep.subr.bf16.mxu0 %v5918_v63  ;;  %v232_v63 = vld [vmem:[#allocation5 + $0x3d0] sm:$0xff] }
  0xbf   :  { %1842 = vmatpush2.bf16.msra.mxu1 %v6051_v37  ;;  %v5990_v37 = vcombine.high %v240_v32, %v244_v33  ;;  %v312_v29 = vld [vmem:[#allocation5 + $0x650] sm:$0xff]  ;;  %v6069_v33 = vcombine.low %v320_v20, %v324_v21 }
  0xc0   :  { %1893 = vmatprep.subr.bf16.mxu1 %v6046_v38  ;;  %1803 = vmatmul.mubr.bf16.vlgmr.msra.gmra.mxu0 %v6842_v28  ;;  %v236_v38 = vld [vmem:[#allocation5 + $0x3f0] sm:$0xff] }
  0xc1   :  { %1853 = vmatpush1.bf16.msra.mxu0 %v5917_v42  ;;  %1884 = vmatprep.mubr.bf16.mxu0 %v6832_v11  ;;  %v5982_v42 = vcombine.high %v232_v63, %v236_v38  ;;  %v5981_v49 = vcombine.low %v232_v63, %v236_v38  ;;  %v316_v30 = vld [vmem:[#allocation5 + $0x670] sm:$0xff] }
  0xc2   :  { %1844 = vmatmul.mubr.bf16.vlgmr.msra.gmra.mxu1 %v6846_v31  ;;  %1854 = vmatprep.subr.bf16.mxu0 %v5910_v45  ;;  %v224_v45 = vld [vmem:[#allocation5 + $0x390] sm:$0xff] }
  0xc3   :  { %1894 = vmatpush1.bf16.msra.mxu1 %v6045_v43  ;;  %1925 = vmatprep.mubr.bf16.mxu1 %v6837_v16  ;;  %v6110_v43 = vcombine.high %v360_v39, %v364_v5  ;;  %v304_v63 = vld [vmem:[#allocation5 + $0x610] sm:$0xff]  ;;  %v6061_v5 = vcombine.low %v312_v29, %v316_v30 }
  0xc4   :  { %1895 = vmatprep.subr.bf16.mxu1 %v6038_v46  ;;  %v228_v46 = vld [vmem:[#allocation5 + $0x3b0] sm:$0xff] }
  0xc5   :  { %1855 = vmatpush1.bf16.msra.mxu0 %v5909_v51  ;;  %v5974_v51 = vcombine.high %v224_v45, %v228_v46  ;;  %v5973_v58 = vcombine.low %v224_v45, %v228_v46  ;;  %v308_v38 = vld [vmem:[#allocation5 + $0x630] sm:$0xff]  ;;  %v297_v45 = vld [vmem:[#allocation5 + $0x5d8] sm:$0xff] }
  0xc6   :  { %1856 = vmatprep.subr.bf16.mxu0 %v5902_v54  ;;  %v216_v54 = vld [vmem:[#allocation5 + $0x350] sm:$0xff]  ;;  %v301_v46 = vld [vmem:[#allocation5 + $0x5f8] sm:$0xff] }
  0xc7   :  { %1896 = vmatpush1.bf16.msra.mxu1 %v6037_v52  ;;  %v6102_v52 = vcombine.high %v352_v47, %v356_v48  ;;  %v6053_v48 = vcombine.low %v304_v63, %v308_v38 }
  0xc8   :  { %1897 = vmatprep.subr.bf16.mxu1 %v6030_v55  ;;  %v220_v55 = vld [vmem:[#allocation5 + $0x370] sm:$0xff] }
  0xc9   :  { %1857 = vmatpush1.bf16.msra.mxu0 %v5901_v60  ;;  %v5966_v60 = vcombine.high %v216_v54, %v220_v55  ;;  %v5965_v3 = vcombine.low %v216_v54, %v220_v55  ;;  %v289_v54 = vld [vmem:[#allocation5 + $0x598] sm:$0xff] }
  0xca   :  { %1858 = vmatprep.subr.bf16.mxu0 %v5894_v62  ;;  %v208_v62 = vld [vmem:[#allocation5 + $0x310] sm:$0xff]  ;;  %v293_v55 = vld [vmem:[#allocation5 + $0x5b8] sm:$0xff] }
  0xcb   :  { %1898 = vmatpush1.bf16.msra.mxu1 %v6029_v61  ;;  %v6094_v61 = vcombine.high %v344_v56, %v348_v57  ;;  %v6047_v57 = vcombine.low %v297_v45, %v301_v46 }
  0xcc   :  { %1899 = vmatprep.subr.bf16.mxu1 %v6022_v0  ;;  %v212_v0 = vld [vmem:[#allocation5 + $0x330] sm:$0xff] }
  0xcd   :  { %1859 = vmatpush1.bf16.msra.mxu0 %v5893_v6  ;;  %v5958_v6 = vcombine.high %v208_v62, %v212_v0  ;;  %v5957_v13 = vcombine.low %v208_v62, %v212_v0  ;;  %v281_v62 = vld [vmem:[#allocation5 + $0x558] sm:$0xff] }
  0xce   :  { %1860 = vmatprep.subr.bf16.mxu0 %v5886_v8  ;;  %v200_v8 = vld [vmem:[#allocation5 + $0x2d0] sm:$0xff]  ;;  %v285_v0 = vld [vmem:[#allocation5 + $0x578] sm:$0xff] }
  0xcf   :  { %1900 = vmatpush1.bf16.msra.mxu1 %v6021_v7  ;;  %v6086_v7 = vcombine.high %v336_v1, %v340_v2  ;;  %v6039_v2 = vcombine.low %v289_v54, %v293_v55 }
  0xd0   :  { %1901 = vmatprep.subr.bf16.mxu1 %v6014_v9  ;;  %v204_v9 = vld [vmem:[#allocation5 + $0x2f0] sm:$0xff] }
  0xd1   :  { %1861 = vmatpush1.bf16.msra.mxu0 %v5885_v15  ;;  %v5950_v15 = vcombine.high %v200_v8, %v204_v9  ;;  %v5949_v22 = vcombine.low %v200_v8, %v204_v9  ;;  %v273_v8 = vld [vmem:[#allocation5 + $0x518] sm:$0xff] }
  0xd2   :  { %1862 = vmatprep.subr.bf16.mxu0 %v5878_v18  ;;  %v192_v18 = vld [vmem:[#allocation5 + $0x290] sm:$0xff]  ;;  %v277_v9 = vld [vmem:[#allocation5 + $0x538] sm:$0xff] }
  0xd3   :  { %1902 = vmatpush1.bf16.msra.mxu1 %v6013_v17  ;;  %v6078_v17 = vcombine.high %v328_v10, %v332_v12  ;;  %v6031_v12 = vcombine.low %v281_v62, %v285_v0 }
  0xd4   :  { %1903 = vmatprep.subr.bf16.mxu1 %v6006_v19  ;;  %v196_v19 = vld [vmem:[#allocation5 + $0x2b0] sm:$0xff] }
  0xd5   :  { %1863 = vmatpush1.bf16.msra.mxu0 %v5877_v24  ;;  %v5942_v24 = vcombine.high %v192_v18, %v196_v19  ;;  %v5941_v32 = vcombine.low %v192_v18, %v196_v19  ;;  %v265_v18 = vld [vmem:[#allocation5 + $0x4d8] sm:$0xff] }
  0xd6   :  { %1864 = vmatprep.subr.bf16.mxu0 %v5870_v26  ;;  %v184_v26 = vld [vmem:[#allocation5 + $0x250] sm:$0xff]  ;;  %v269_v19 = vld [vmem:[#allocation5 + $0x4f8] sm:$0xff] }
  0xd7   :  { %1904 = vmatpush1.bf16.msra.mxu1 %v6005_v25  ;;  %v6070_v25 = vcombine.high %v320_v20, %v324_v21 }
  0xd8   :  { %1905 = vmatprep.subr.bf16.mxu1 %v5998_v27  ;;  %v188_v27 = vld [vmem:[#allocation5 + $0x270] sm:$0xff] }
  0xd9   :  { %1865 = vmatpush1.bf16.msra.mxu0 %v5869_v34  ;;  %v5934_v34 = vcombine.high %v184_v26, %v188_v27  ;;  %v5933_v39 = vcombine.low %v184_v26, %v188_v27  ;;  %v6015_v27 = vcombine.low %v265_v18, %v269_v19 }
  0xda   :  { %1866 = vmatprep.subr.bf16.mxu0 %v5862_v36  ;;  %v176_v36 = vld [vmem:[#allocation5 + $0x210] sm:$0xff] }
  0xdb   :  { %1906 = vmatpush1.bf16.msra.mxu1 %v5997_v35  ;;  %v6062_v35 = vcombine.high %v312_v29, %v316_v30 }
  0xdc   :  { %1907 = vmatprep.subr.bf16.mxu1 %v5990_v37  ;;  %v180_v37 = vld [vmem:[#allocation5 + $0x230] sm:$0xff] }
  0xdd   :  { %1867 = vmatpush1.bf16.msra.mxu0 %v5861_v40  ;;  %v5926_v40 = vcombine.high %v176_v36, %v180_v37  ;;  %v5925_v47 = vcombine.low %v176_v36, %v180_v37 }
  0xde   :  { %1868 = vmatprep.subr.bf16.mxu0 %v5982_v42  ;;  %v169_v42 = vld [vmem:[#allocation5 + $0x1d8] sm:$0xff] }
  0xdf   :  { %1908 = vmatpush1.bf16.msra.mxu1 %v5989_v41  ;;  %v6054_v41 = vcombine.high %v304_v63, %v308_v38 }
  0xe0   :  { %1909 = vmatprep.subr.bf16.mxu1 %v6110_v43  ;;  %v173_v43 = vld [vmem:[#allocation5 + $0x1f8] sm:$0xff] }
  0xe1   :  { %1869 = vmatpush2.bf16.msra.mxu0 %v5981_v49  ;;  %v5920_v49 = vcombine.high %v169_v42, %v173_v43  ;;  %v5919_v56 = vcombine.low %v169_v42, %v173_v43 }
  0xe2   :  { %1870 = vmatprep.subr.bf16.mxu0 %v5974_v51  ;;  %v161_v51 = vld [vmem:[#allocation5 + $0x198] sm:$0xff] }
  0xe3   :  { %1910 = vmatpush2.bf16.msra.mxu1 %v6109_v50  ;;  %v6048_v50 = vcombine.high %v297_v45, %v301_v46 }
  0xe4   :  { %1911 = vmatprep.subr.bf16.mxu1 %v6102_v52  ;;  %v165_v52 = vld [vmem:[#allocation5 + $0x1b8] sm:$0xff] }
  0xe5   :  { %1871 = vmatpush2.bf16.msra.mxu0 %v5973_v58  ;;  %v5912_v58 = vcombine.high %v161_v51, %v165_v52  ;;  %v5911_v1 = vcombine.low %v161_v51, %v165_v52 }
  0xe6   :  { %1872 = vmatprep.subr.bf16.mxu0 %v5966_v60  ;;  %v153_v60 = vld [vmem:[#allocation5 + $0x158] sm:$0xff] }
  0xe7   :  { %1912 = vmatpush2.bf16.msra.mxu1 %v6101_v59  ;;  %v6040_v59 = vcombine.high %v289_v54, %v293_v55 }
  0xe8   :  { %1913 = vmatprep.subr.bf16.mxu1 %v6094_v61  ;;  %v157_v61 = vld [vmem:[#allocation5 + $0x178] sm:$0xff] }
  0xe9   :  { %1873 = vmatpush2.bf16.msra.mxu0 %v5965_v3  ;;  %v5904_v3 = vcombine.high %v153_v60, %v157_v61  ;;  %v5903_v10 = vcombine.low %v153_v60, %v157_v61 }
  0xea   :  { %1874 = vmatprep.subr.bf16.mxu0 %v5958_v6  ;;  %v145_v6 = vld [vmem:[#allocation5 + $0x118] sm:$0xff] }
  0xeb   :  { %1914 = vmatpush2.bf16.msra.mxu1 %v6093_v4  ;;  %v6032_v4 = vcombine.high %v281_v62, %v285_v0 }
  0xec   :  { %1915 = vmatprep.subr.bf16.mxu1 %v6086_v7  ;;  %v149_v7 = vld [vmem:[#allocation5 + $0x138] sm:$0xff] }
  0xed   :  { %1875 = vmatpush2.bf16.msra.mxu0 %v5957_v13  ;;  %v5896_v13 = vcombine.high %v145_v6, %v149_v7  ;;  %v5895_v20 = vcombine.low %v145_v6, %v149_v7 }
  0xee   :  { %1876 = vmatprep.subr.bf16.mxu0 %v5950_v15  ;;  %v137_v15 = vld [vmem:[#allocation5 + $0xd8] sm:$0xff] }
  0xef   :  { %1916 = vmatpush2.bf16.msra.mxu1 %v6085_v14  ;;  %v6024_v14 = vcombine.high %v273_v8, %v277_v9 }
  0xf0   :  { %1917 = vmatprep.subr.bf16.mxu1 %v6078_v17  ;;  %v141_v17 = vld [vmem:[#allocation5 + $0xf8] sm:$0xff] }
  0xf1   :  { %1877 = vmatpush2.bf16.msra.mxu0 %v5949_v22  ;;  %v5888_v21 = vcombine.high %v137_v15, %v141_v17  ;;  %v129_v22 = vld [vmem:[#allocation5 + $0x98] sm:$0xff]  ;;  %v5887_v26 = vcombine.low %v137_v15, %v141_v17 }
  0xf2   :  { %1878 = vmatprep.subr.bf16.mxu0 %v5942_v24  ;;  %v257_v24 = vld [vmem:[#allocation5 + $0x498] sm:$0xff] }
  0xf3   :  { %1918 = vmatpush2.bf16.msra.mxu1 %v6077_v23  ;;  %v133_v23 = vld [vmem:[#allocation5 + $0xb8] sm:$0xff] }
  0xf4   :  { %1919 = vmatprep.subr.bf16.mxu1 %v6070_v25  ;;  %v261_v25 = vld [vmem:[#allocation5 + $0x4b8] sm:$0xff]  ;;  %v5880_v29 = vcombine.high %v129_v22, %v133_v23  ;;  %v5879_v36 = vcombine.low %v129_v22, %v133_v23 }
  0xf5   :  { %1879 = vmatpush2.bf16.msra.mxu0 %v5941_v32  ;;  %v6008_v30 = vcombine.high %v257_v24, %v261_v25  ;;  %v121_v32 = vld [vmem:[#allocation5 + $0x58] sm:$0xff]  ;;  %v6007_v37 = vcombine.low %v257_v24, %v261_v25 }
  0xf6   :  { %1880 = vmatprep.subr.bf16.mxu0 %v5934_v34  ;;  %v249_v34 = vld [vmem:[#allocation5 + $0x458] sm:$0xff] }
  0xf7   :  { %1920 = vmatpush2.bf16.msra.mxu1 %v6069_v33  ;;  %v125_v33 = vld [vmem:[#allocation5 + $0x78] sm:$0xff] }
  0xf8   :  { %1921 = vmatprep.subr.bf16.mxu1 %v6062_v35  ;;  %v253_v35 = vld [vmem:[#allocation5 + $0x478] sm:$0xff]  ;;  %v5872_v63 = vcombine.high %v121_v32, %v125_v33  ;;  %v5871_v42 = vcombine.low %v121_v32, %v125_v33 }
  0xf9   :  { %1881 = vmatpush2.bf16.msra.mxu0 %v5933_v39  ;;  %v6000_v38 = vcombine.high %v249_v34, %v253_v35  ;;  %v113_v39 = vld [vmem:[#allocation5 + $0x18] sm:$0xff]  ;;  %v5999_v43 = vcombine.low %v249_v34, %v253_v35 }
  0xfa   :  { %1882 = vmatprep.subr.bf16.mxu0 %v5926_v40  ;;  %v241_v40 = vld [vmem:[#allocation5 + $0x418] sm:$0xff] }
  0xfb   :  { %1922 = vmatpush2.bf16.msra.mxu1 %v6061_v5  ;;  %v117_v5 = vld [vmem:[#allocation5 + $0x38] sm:$0xff] }
  0xfc   :  { %1923 = vmatprep.subr.bf16.mxu1 %v6054_v41  ;;  %v245_v41 = vld [vmem:[#allocation5 + $0x438] sm:$0xff]  ;;  %v5864_v45 = vcombine.high %v113_v39, %v117_v5  ;;  %v5863_v51 = vcombine.low %v113_v39, %v117_v5 }
  0xfd   :  { %1883 = vmatpush2.bf16.msra.mxu0 %v5925_v47  ;;  %v5992_v46 = vcombine.high %v241_v40, %v245_v41  ;;  %v233_v47 = vld [vmem:[#allocation5 + $0x3d8] sm:$0xff]  ;;  %v5991_v52 = vcombine.low %v241_v40, %v245_v41 }
  0xfe   :  { %1934 = vmatprep.subr.bf16.mxu0 %v5920_v49  ;;  %v361_v49 = vld [vmem:[#allocation5 + $0x7d8] sm:$0xff] }
  0xff   :  { %1924 = vmatpush2.bf16.msra.mxu1 %v6053_v48  ;;  %v237_v48 = vld [vmem:[#allocation5 + $0x3f8] sm:$0xff] }
 0x100   :  { %1975 = vmatprep.subr.bf16.mxu1 %v6048_v50  ;;  %1885 = vmatmul.mubr.bf16.vlgmr.msra.gmra.mxu0 %v6842_v28  ;;  %v365_v50 = vld [vmem:[#allocation5 + $0x7f8] sm:$0xff]  ;;  %v5984_v54 = vcombine.high %v233_v47, %v237_v48  ;;  %v5983_v60 = vcombine.low %v233_v47, %v237_v48 }
 0x101   :  { %1935 = vmatpush1.bf16.msra.mxu0 %v5919_v56  ;;  %1966 = vmatprep.mubr.bf16.mxu0 %v6832_v11  ;;  %v6023_v11 = vcombine.low %v273_v8, %v277_v9  ;;  %v6112_v55 = vcombine.high %v361_v49, %v365_v50  ;;  %v225_v56 = vld [vmem:[#allocation5 + $0x398] sm:$0xff]  ;;  %v6111_v61 = vcombine.low %v361_v49, %v365_v50 }
 0x102   :  { %1926 = vmatmul.mubr.bf16.vlgmr.msra.gmra.mxu1 %v6846_v31  ;;  %1936 = vmatprep.subr.bf16.mxu0 %v5912_v58  ;;  %v353_v58 = vld [vmem:[#allocation5 + $0x798] sm:$0xff] }
 0x103   :  { %1976 = vmatpush1.bf16.msra.mxu1 %v6047_v57  ;;  %2007 = vmatprep.mubr.bf16.mxu1 %v6837_v16  ;;  %v6016_v16 = vcombine.high %v265_v18, %v269_v19  ;;  %v229_v57 = vld [vmem:[#allocation5 + $0x3b8] sm:$0xff] }
 0x104   :  { %1977 = vmatprep.subr.bf16.mxu1 %v6040_v59  ;;  %v357_v59 = vld [vmem:[#allocation5 + $0x7b8] sm:$0xff]  ;;  %v5976_v62 = vcombine.high %v225_v56, %v229_v57  ;;  %v5975_v6 = vcombine.low %v225_v56, %v229_v57 }
 0x105   :  { %1937 = vmatpush1.bf16.msra.mxu0 %v5911_v1  ;;  %v6104_v0 = vcombine.high %v353_v58, %v357_v59  ;;  %v217_v1 = vld [vmem:[#allocation5 + $0x358] sm:$0xff]  ;;  %v6103_v7 = vcombine.low %v353_v58, %v357_v59  ;;  %v374_v59 = vsub.s32 1, %v6819_v44 }
 0x106   :  { %1938 = vmatprep.subr.bf16.mxu0 %v5904_v3  ;;  %v345_v3 = vld [vmem:[#allocation5 + $0x758] sm:$0xff] }
 0x107   :  { %1978 = vmatpush1.bf16.msra.mxu1 %v6039_v2  ;;  %v221_v2 = vld [vmem:[#allocation5 + $0x378] sm:$0xff] }
 0x108   :  { %1979 = vmatprep.subr.bf16.mxu1 %v6032_v4  ;;  %v349_v4 = vld [vmem:[#allocation5 + $0x778] sm:$0xff]  ;;  %v5968_v8 = vcombine.high %v217_v1, %v221_v2  ;;  %v5967_v15 = vcombine.low %v217_v1, %v221_v2  ;;  %v2200_v1 = vld [vmem:[#allocation8 + $0x580] sm:$0xff] }
 0x109   :  { %1939 = vmatpush1.bf16.msra.mxu0 %v5903_v10  ;;  %v6096_v9 = vcombine.high %v345_v3, %v349_v4  ;;  %v209_v10 = vld [vmem:[#allocation5 + $0x318] sm:$0xff]  ;;  %v6095_v17 = vcombine.low %v345_v3, %v349_v4  ;;  %v2204_v2 = vld [vmem:[#allocation8 + $0x5a0] sm:$0xff] }
 0x10a   :  { %1940 = vmatprep.subr.bf16.mxu0 %v5896_v13  ;;  %v337_v13 = vld [vmem:[#allocation5 + $0x718] sm:$0xff] }
 0x10b   :  { %1980 = vmatpush1.bf16.msra.mxu1 %v6031_v12  ;;  %v213_v12 = vld [vmem:[#allocation5 + $0x338] sm:$0xff] }
 0x10c   :  { %1981 = vmatprep.subr.bf16.mxu1 %v6024_v14  ;;  %v341_v14 = vld [vmem:[#allocation5 + $0x738] sm:$0xff]  ;;  %v5960_v18 = vcombine.high %v209_v10, %v213_v12  ;;  %v5959_v22 = vcombine.low %v209_v10, %v213_v12  ;;  %v6290_v10 = vcombine.high %v2200_v1, %v2204_v2 }
 0x10d   :  { %1941 = vmatpush1.bf16.msra.mxu0 %v5895_v20  ;;  %v6088_v19 = vcombine.high %v337_v13, %v341_v14  ;;  %v201_v20 = vld [vmem:[#allocation5 + $0x2d8] sm:$0xff]  ;;  %v6087_v23 = vcombine.low %v337_v13, %v341_v14  ;;  %v2192_v13 = vld [vmem:[#allocation8 + $0x540] sm:$0xff] }
 0x10e   :  { %1942 = vmatprep.subr.bf16.mxu0 %v5888_v21  ;;  %v329_v21 = vld [vmem:[#allocation5 + $0x6d8] sm:$0xff]  ;;  %v2196_v14 = vld [vmem:[#allocation8 + $0x560] sm:$0xff] }
 0x10f   :  { %1982 = vmatpush1.bf16.msra.mxu1 %v6023_v11  ;;  %v205_v11 = vld [vmem:[#allocation5 + $0x2f8] sm:$0xff] }
 0x110   :  { %1983 = vmatprep.subr.bf16.mxu1 %v6016_v16  ;;  %v333_v16 = vld [vmem:[#allocation5 + $0x6f8] sm:$0xff]  ;;  %v5952_v24 = vcombine.high %v201_v20, %v205_v11  ;;  %v5951_v32 = vcombine.low %v201_v20, %v205_v11  ;;  %v6289_v20 = vcombine.low %v2200_v1, %v2204_v2  ;;  %v2152_v1 = vld [vmem:[#allocation8 + $0x400] sm:$0xff] }
 0x111   :  { %1943 = vmatpush1.bf16.msra.mxu0 %v5887_v26  ;;  %v6080_v25 = vcombine.high %v329_v21, %v333_v16  ;;  %v193_v26 = vld [vmem:[#allocation5 + $0x298] sm:$0xff]  ;;  %v6079_v33 = vcombine.low %v329_v21, %v333_v16  ;;  %v2056_v16 = vld [vmem:[#allocation8 + $0x100] sm:$0xff] }
 0x112   :  { %1944 = vmatprep.subr.bf16.mxu0 %v5880_v29  ;;  %v321_v29 = vld [vmem:[#allocation5 + $0x698] sm:$0xff]  ;;  %v2156_v2 = vld [vmem:[#allocation8 + $0x420] sm:$0xff] }
 0x113   :  { %1984 = vmatpush1.bf16.msra.mxu1 %v6015_v27  ;;  %v197_v27 = vld [vmem:[#allocation5 + $0x2b8] sm:$0xff] }
 0x114   :  { %1985 = vmatprep.subr.bf16.mxu1 %v6008_v30  ;;  %v325_v30 = vld [vmem:[#allocation5 + $0x6b8] sm:$0xff]  ;;  %v5944_v34 = vcombine.high %v193_v26, %v197_v27  ;;  %v5943_v39 = vcombine.low %v193_v26, %v197_v27 }
 0x115   :  { %1945 = vmatpush1.bf16.msra.mxu0 %v5879_v36  ;;  %v6072_v35 = vcombine.high %v321_v29, %v325_v30  ;;  %v185_v36 = vld [vmem:[#allocation5 + $0x258] sm:$0xff]  ;;  %v6071_v5 = vcombine.low %v321_v29, %v325_v30 }
 0x116   :  { %1946 = vmatprep.subr.bf16.mxu0 %v5872_v63  ;;  %v313_v63 = vld [vmem:[#allocation5 + $0x658] sm:$0xff] }
 0x117   :  { %1986 = vmatpush1.bf16.msra.mxu1 %v6007_v37  ;;  %v189_v37 = vld [vmem:[#allocation5 + $0x278] sm:$0xff] }
 0x118   :  { %1987 = vmatprep.subr.bf16.mxu1 %v6000_v38  ;;  %v317_v38 = vld [vmem:[#allocation5 + $0x678] sm:$0xff]  ;;  %v5936_v40 = vcombine.high %v185_v36, %v189_v37  ;;  %v5935_v47 = vcombine.low %v185_v36, %v189_v37  ;;  %v2052_v36 = vld [vmem:[#allocation8 + $0xe0] sm:$0xff] }
 0x119   :  { %1947 = vmatpush1.bf16.msra.mxu0 %v5871_v42  ;;  %v6064_v41 = vcombine.high %v313_v63, %v317_v38  ;;  %v177_v42 = vld [vmem:[#allocation5 + $0x218] sm:$0xff]  ;;  %v6063_v48 = vcombine.low %v313_v63, %v317_v38  ;;  %v2176_v63 = vld [vmem:[#allocation8 + $0x4c0] sm:$0xff] }
 0x11a   :  { %1948 = vmatprep.subr.bf16.mxu0 %v5864_v45  ;;  %v305_v45 = vld [vmem:[#allocation5 + $0x618] sm:$0xff]  ;;  %v2180_v38 = vld [vmem:[#allocation8 + $0x4e0] sm:$0xff] }
 0x11b   :  { %1988 = vmatpush1.bf16.msra.mxu1 %v5999_v43  ;;  %v181_v43 = vld [vmem:[#allocation5 + $0x238] sm:$0xff] }
 0x11c   :  { %1989 = vmatprep.subr.bf16.mxu1 %v5992_v46  ;;  %v309_v46 = vld [vmem:[#allocation5 + $0x638] sm:$0xff]  ;;  %v5928_v49 = vcombine.high %v177_v42, %v181_v43  ;;  %v5927_v56 = vcombine.low %v177_v42, %v181_v43  ;;  %v2044_v42 = vld [vmem:[#allocation8 + $0xa0] sm:$0xff]  ;;  %v6266_v43 = vcombine.high %v2176_v63, %v2180_v38 }
 0x11d   :  { %1949 = vmatpush1.bf16.msra.mxu0 %v5863_v51  ;;  %v6056_v50 = vcombine.high %v305_v45, %v309_v46  ;;  %v2080_v51 = vld [vmem:[#allocation8 + $0x1c0] sm:$0xff]  ;;  %v6055_v57 = vcombine.low %v305_v45, %v309_v46 }
 0x11e   :  { %1950 = vmatprep.subr.bf16.mxu0 %v5984_v54  ;;  %v2208_v54 = vld [vmem:[#allocation8 + $0x5c0] sm:$0xff] }
 0x11f   :  { %1990 = vmatpush1.bf16.msra.mxu1 %v5991_v52  ;;  %v2084_v52 = vld [vmem:[#allocation8 + $0x1e0] sm:$0xff] }
 0x120   :  { %1991 = vmatprep.subr.bf16.mxu1 %v6112_v55  ;;  %v2212_v55 = vld [vmem:[#allocation8 + $0x5e0] sm:$0xff]  ;;  %v6170_v58 = vcombine.high %v2080_v51, %v2084_v52  ;;  %v6169_v3 = vcombine.low %v2080_v51, %v2084_v52 }
 0x121   :  { %1951 = vmatpush2.bf16.msra.mxu0 %v5983_v60  ;;  %v2072_v60 = vld [vmem:[#allocation8 + $0x180] sm:$0xff] }
 0x122   :  { %1952 = vmatprep.subr.bf16.mxu0 %v5976_v62  ;;  %v6298_v62 = vcombine.high %v2208_v54, %v2212_v55  ;;  %v2168_v45 = vld [vmem:[#allocation8 + $0x480] sm:$0xff] }
 0x123   :  { %1992 = vmatpush2.bf16.msra.mxu1 %v6111_v61  ;;  %v2076_v61 = vld [vmem:[#allocation8 + $0x1a0] sm:$0xff] }
 0x124   :  { %1993 = vmatprep.subr.bf16.mxu1 %v6104_v0  ;;  %v6861_v0 = vld [vmem:[#allocation7] sm:$0xff]  ;;  %v6162_v4 = vcombine.high %v2072_v60, %v2076_v61  ;;  %v2172_v46 = vld [vmem:[#allocation8 + $0x4a0] sm:$0xff] }
 0x125   :  { %1953 = vmatpush2.bf16.msra.mxu0 %v5975_v6  ;;  %v6297_v6 = vcombine.low %v2208_v54, %v2212_v55  ;;  %v2036_v51 = vld [vmem:[#allocation8 + $0x60] sm:$0xff]  ;;  %v6258_v52 = vcombine.high %v2168_v45, %v2172_v46 }
 0x126   :  { %1954 = vmatprep.subr.bf16.mxu0 %v5968_v8  ;;  %v2064_v8 = vld [vmem:[#allocation8 + $0x140] sm:$0xff] }
 0x127   :  { %1994 = vmatpush2.bf16.msra.mxu1 %v6103_v7  ;;  %v375_v7 = vrot.slane %v6861_v0, %v374_v59  ;;  %v2160_v54 = vld [vmem:[#allocation8 + $0x440] sm:$0xff] }
 0x128   :  { %1995 = vmatprep.subr.bf16.mxu1 %v6096_v9  ;;  %v2068_v9 = vld [vmem:[#allocation8 + $0x160] sm:$0xff] }
 0x129   :  { %1955 = vmatpush2.bf16.msra.mxu0 %v5967_v15  ;;  %v2164_v55 = vld [vmem:[#allocation8 + $0x460] sm:$0xff] }
 0x12a   :  { %1956 = vmatprep.subr.bf16.mxu0 %v5960_v18 }
 0x12b   :  { %1996 = vmatpush2.bf16.msra.mxu1 %v6095_v17  ;;  %v6161_v17 = vcombine.low %v2072_v60, %v2076_v61  ;;  %v2024_v60 = vld [vmem:[#allocation8] sm:$0xff] }
 0x12c   :  { %1997 = vmatprep.subr.bf16.mxu1 %v6088_v19  ;;  %v6154_v19 = vcombine.high %v2064_v8, %v2068_v9  ;;  %v2028_v61 = vld [vmem:[#allocation8 + $0x20] sm:$0xff] }
 0x12d   :  { %1957 = vmatpush2.bf16.msra.mxu0 %v5959_v22  ;;  %v2060_v22 = vld [vmem:[#allocation8 + $0x120] sm:$0xff] }
 0x12e   :  { %1958 = vmatprep.subr.bf16.mxu0 %v5952_v24  ;;  %v2184_v24 = vld [vmem:[#allocation8 + $0x500] sm:$0xff]  ;;  %v6146_v30 = vcombine.high %v2056_v16, %v2060_v22 }
 0x12f   :  { %1998 = vmatpush2.bf16.msra.mxu1 %v6087_v23  ;;  %v6282_v23 = vcombine.high %v2192_v13, %v2196_v14 }
 0x130   :  { %1999 = vmatprep.subr.bf16.mxu1 %v6080_v25  ;;  %v2188_v25 = vld [vmem:[#allocation8 + $0x520] sm:$0xff] }
 0x131   :  { %1959 = vmatpush2.bf16.msra.mxu0 %v5951_v32  ;;  %v6281_v32 = vcombine.low %v2192_v13, %v2196_v14  ;;  %v6274_v37 = vcombine.high %v2184_v24, %v2188_v25  ;;  %v2276_v13 = vld [vmem:[#allocation8 + $0x7e0] sm:$0xff]  ;;  %v6113_v14 = vcombine.low %v2024_v60, %v2028_v61 }
 0x132   :  { %1960 = vmatprep.subr.bf16.mxu0 %v5944_v34 }
 0x133   :  { %2000 = vmatpush2.bf16.msra.mxu1 %v6079_v33 }
 0x134   :  { %2001 = vmatprep.subr.bf16.mxu1 %v6072_v35  ;;  %v2048_v35 = vld [vmem:[#allocation8 + $0xc0] sm:$0xff] }
 0x135   :  { %1961 = vmatpush2.bf16.msra.mxu0 %v5943_v39  ;;  %v6145_v39 = vcombine.low %v2056_v16, %v2060_v22  ;;  %v2268_v16 = vld [vmem:[#allocation8 + $0x7a0] sm:$0xff] }
 0x136   :  { %1962 = vmatprep.subr.bf16.mxu0 %v5936_v40  ;;  %v6273_v40 = vcombine.low %v2184_v24, %v2188_v25  ;;  %v2128_v24 = vld [vmem:[#allocation8 + $0x340] sm:$0xff] }
 0x137   :  { %2002 = vmatpush2.bf16.msra.mxu1 %v6071_v5  ;;  %v6138_v5 = vcombine.high %v2048_v35, %v2052_v36  ;;  %v2132_v25 = vld [vmem:[#allocation8 + $0x360] sm:$0xff] }
 0x138   :  { %2003 = vmatprep.subr.bf16.mxu1 %v6064_v41  ;;  %v2040_v41 = vld [vmem:[#allocation8 + $0x80] sm:$0xff] }
 0x139   :  { %1963 = vmatpush2.bf16.msra.mxu0 %v5935_v47  ;;  %v6137_v47 = vcombine.low %v2048_v35, %v2052_v36  ;;  %v2124_v35 = vld [vmem:[#allocation8 + $0x320] sm:$0xff] }
 0x13a   :  { %1964 = vmatprep.subr.bf16.mxu0 %v5928_v49  ;;  %v6265_v49 = vcombine.low %v2176_v63, %v2180_v38  ;;  %v2252_v63 = vld [vmem:[#allocation8 + $0x720] sm:$0xff]  ;;  %v6217_v38 = vcombine.low %v2128_v24, %v2132_v25 }
 0x13b   :  { %2004 = vmatpush2.bf16.msra.mxu1 %v6063_v48  ;;  %v6130_v48 = vcombine.high %v2040_v41, %v2044_v42 }
 0x13c   :  { %2005 = vmatprep.subr.bf16.mxu1 %v6056_v50  ;;  %v2032_v50 = vld [vmem:[#allocation8 + $0x40] sm:$0xff] }
 0x13d   :  { %1965 = vmatpush2.bf16.msra.mxu0 %v5927_v56  ;;  %v6129_v56 = vcombine.low %v2040_v41, %v2044_v42  ;;  %v2116_v41 = vld [vmem:[#allocation8 + $0x2e0] sm:$0xff] }
 0x13e   :  { %5138 = vmatprep.subr.bf16.mxu0 %v6170_v58  ;;  %v6257_v58 = vcombine.low %v2168_v45, %v2172_v46  ;;  %v2244_v45 = vld [vmem:[#allocation8 + $0x6e0] sm:$0xff] }
 0x13f   :  { %2006 = vmatpush2.bf16.msra.mxu1 %v6055_v57  ;;  %v6122_v57 = vcombine.high %v2032_v50, %v2036_v51 }
 0x140   :  { %5179 = vmatprep.subr.bf16.mxu1 %v6298_v62  ;;  %v6866_v12 = vpop.f32.mrf.mxu0  ;;  %1967 = vmatmul.mubr.bf16.vlgmr.msra.gmra.mxu0 %v6842_v28  ;;  %v6250_v62 = vcombine.high %v2160_v54, %v2164_v55 }
 0x141   :  { %5139 = vmatpush1.bf16.msra.mxu0 %v6169_v3  ;;  %v6121_v3 = vcombine.low %v2032_v50, %v2036_v51  ;;  %v2108_v50 = vld [vmem:[#allocation8 + $0x2a0] sm:$0xff] }
 0x142   :  { %v6869_v15 = vpop.f32.mrf.mxu1  ;;  %2008 = vmatmul.mubr.bf16.vlgmr.msra.gmra.mxu1 %v6846_v31  ;;  %v1724_v18 = vpop.f32.mrf.mxu0  ;;  %5140 = vmatprep.subr.bf16.mxu0 %v6162_v4  ;;  %v6153_v31 = vcombine.low %v2064_v8, %v2068_v9  ;;  %v6114_v4 = vcombine.high %v2024_v60, %v2028_v61  ;;  %v2148_v8 = vld [vmem:[#allocation8 + $0x3e0] sm:$0xff]  ;;  %v6242_v9 = vcombine.high %v2152_v1, %v2156_v2 }
 0x143   :  { %5180 = vmatpush1.bf16.msra.mxu1 %v6297_v6  ;;  %v1725_v11 = vadd.f32 %v1724_v18, %v375_v7  ;;  %v6249_v6 = vcombine.low %v2160_v54, %v2164_v55  ;;  %v2144_v7 = vld [vmem:[#allocation8 + $0x3c0] sm:$0xff]  ;;  %v6241_v18 = vcombine.low %v2152_v1, %v2156_v2 }
 0x144   :  { %v1765_v21 = vpop.f32.mrf.mxu1  ;;  %5181 = vmatprep.subr.bf16.mxu1 %v6290_v10  ;;  %v1726_v28 = vpop.f32.mrf.mxu0  ;;  %v2272_v10 = vld [vmem:[#allocation8 + $0x7c0] sm:$0xff]  ;;  %v6233_v22 = vcombine.low %v2144_v7, %v2148_v8 }
 0x145   :  { %v1766_v26 = vadd.f32 %v1765_v21, %v1725_v11  ;;  %5141 = vmatpush1.bf16.msra.mxu0 %v6161_v17  ;;  %v6234_v17 = vcombine.high %v2144_v7, %v2148_v8  ;;  %v6362_v11 = vcombine.high %v2272_v10, %v2276_v13  ;;  %v2264_v21 = vld [vmem:[#allocation8 + $0x780] sm:$0xff]  ;;  %v6361_v28 = vcombine.low %v2272_v10, %v2276_v13 }
 0x146   :  { %v1767_v27 = vpop.f32.mrf.mxu1  ;;  %v1727_v29 = vpop.f32.mrf.mxu0  ;;  %5142 = vmatprep.subr.bf16.mxu0 %v6154_v19  ;;  %v2136_v19 = vld [vmem:[#allocation8 + $0x380] sm:$0xff] }
 0x147   :  { %5182 = vmatpush1.bf16.msra.mxu1 %v6289_v20  ;;  %v6872_v33 = vpack.c.bf16 %v1766_v26, %v1766_v26  ;;  %v2140_v20 = vld [vmem:[#allocation8 + $0x3a0] sm:$0xff]  ;;  %v6354_v26 = vcombine.high %v2264_v21, %v2268_v16 }
 0x148   :  { %v1768_v34 = vpop.f32.mrf.mxu1  ;;  %5183 = vmatprep.subr.bf16.mxu1 %v6282_v23  ;;  %v6226_v23 = vcombine.high %v2136_v19, %v2140_v20  ;;  %v2256_v27 = vld [vmem:[#allocation8 + $0x740] sm:$0xff]  ;;  %v6225_v29 = vcombine.low %v2136_v19, %v2140_v20 }
 0x149   :  { %5143 = vmatpush1.bf16.msra.mxu0 %v6153_v31  ;;  %5170 = vmatprep.mubr.bf16.mxu0 %v6872_v33  ;;  %v2260_v31 = vld [vmem:[#allocation8 + $0x760] sm:$0xff] }
 0x14a   :  { %5144 = vmatprep.subr.bf16.mxu0 %v6146_v30  ;;  %v6218_v30 = vcombine.high %v2128_v24, %v2132_v25  ;;  %v2120_v34 = vld [vmem:[#allocation8 + $0x300] sm:$0xff]  ;;  %v6346_v36 = vcombine.high %v2256_v27, %v2260_v31  ;;  %v378_v24 = vsub.s32 2, %v6819_v44 }
 0x14b   :  { %5184 = vmatpush1.bf16.msra.mxu1 %v6281_v32  ;;  %v6353_v32 = vcombine.low %v2264_v21, %v2268_v16  ;;  %v6209_v46 = vcombine.low %v2120_v34, %v2124_v35  ;;  %v2236_v54 = vld [vmem:[#allocation8 + $0x6a0] sm:$0xff] }
 0x14c   :  { %5185 = vmatprep.subr.bf16.mxu1 %v6274_v37  ;;  %v2248_v37 = vld [vmem:[#allocation8 + $0x700] sm:$0xff] }
 0x14d   :  { %5145 = vmatpush1.bf16.msra.mxu0 %v6145_v39  ;;  %v6210_v39 = vcombine.high %v2120_v34, %v2124_v35  ;;  %v6338_v42 = vcombine.high %v2248_v37, %v2252_v63  ;;  %v2096_v60 = vld [vmem:[#allocation8 + $0x240] sm:$0xff] }
 0x14e   :  { %5146 = vmatprep.subr.bf16.mxu0 %v6138_v5  ;;  %v6345_v5 = vcombine.low %v2256_v27, %v2260_v31  ;;  %v2100_v61 = vld [vmem:[#allocation8 + $0x260] sm:$0xff]  ;;  %v382_v27 = vsub.s32 3, %v6819_v44 }
 0x14f   :  { %5186 = vmatpush1.bf16.msra.mxu1 %v6273_v40  ;;  %v2112_v40 = vld [vmem:[#allocation8 + $0x2c0] sm:$0xff] }
 0x150   :  { %5187 = vmatprep.subr.bf16.mxu1 %v6266_v43  ;;  %v2240_v43 = vld [vmem:[#allocation8 + $0x6c0] sm:$0xff]  ;;  %v6201_v55 = vcombine.low %v2112_v40, %v2116_v41 }
 0x151   :  { %5147 = vmatpush1.bf16.msra.mxu0 %v6137_v47  ;;  %v6202_v47 = vcombine.high %v2112_v40, %v2116_v41  ;;  %v6330_v51 = vcombine.high %v2240_v43, %v2244_v45  ;;  %v2224_v1 = vld [vmem:[#allocation8 + $0x640] sm:$0xff] }
 0x152   :  { %5148 = vmatprep.subr.bf16.mxu0 %v6130_v48  ;;  %v6337_v48 = vcombine.low %v2248_v37, %v2252_v63  ;;  %v2228_v2 = vld [vmem:[#allocation8 + $0x660] sm:$0xff] }
 0x153   :  { %5188 = vmatpush1.bf16.msra.mxu1 %v6265_v49  ;;  %v2104_v49 = vld [vmem:[#allocation8 + $0x280] sm:$0xff]  ;;  %v6314_v10 = vcombine.high %v2224_v1, %v2228_v2  ;;  %v6313_v20 = vcombine.low %v2224_v1, %v2228_v2 }
 0x154   :  { %5189 = vmatprep.subr.bf16.mxu1 %v6258_v52  ;;  %v2232_v52 = vld [vmem:[#allocation8 + $0x680] sm:$0xff] }
 0x155   :  { %5149 = vmatpush1.bf16.msra.mxu0 %v6129_v56  ;;  %v370_v56 = vsub.s32 0, %v6819_v44  ;;  %v6321_v7 = vcombine.low %v2232_v52, %v2236_v54  ;;  %v2088_v8 = vld [vmem:[#allocation8 + $0x200] sm:$0xff] }
 0x156   :  { %5150 = vmatprep.subr.bf16.mxu0 %v6122_v57  ;;  %v6194_v57 = vcombine.high %v2104_v49, %v2108_v50  ;;  %v2216_v13 = vld [vmem:[#allocation8 + $0x600] sm:$0xff] }
 0x157   :  { %5190 = vmatpush1.bf16.msra.mxu1 %v6257_v58  ;;  %v6329_v58 = vcombine.low %v2240_v43, %v2244_v45  ;;  %v2336_v21 = vld [vmem:[#allocation8 + $0x9c0] sm:$0xff] }
 0x158   :  { %5191 = vmatprep.subr.bf16.mxu1 %v6250_v62  ;;  %v6322_v62 = vcombine.high %v2232_v52, %v2236_v54  ;;  %v2340_v16 = vld [vmem:[#allocation8 + $0x9e0] sm:$0xff] }
 0x159   :  { %5151 = vmatpush1.bf16.msra.mxu0 %v6121_v3  ;;  %v6193_v3 = vcombine.low %v2104_v49, %v2108_v50  ;;  %v2328_v31 = vld [vmem:[#allocation8 + $0x980] sm:$0xff]  ;;  %v6425_v34 = vcombine.low %v2336_v21, %v2340_v16 }
 0x15a   :  { %5152 = vmatprep.subr.bf16.mxu0 %v6114_v4  ;;  %v371_v4 = vrot.slane %v6861_v0, %v370_v56  ;;  %v2320_v37 = vld [vmem:[#allocation8 + $0x940] sm:$0xff] }
 0x15b   :  { %5192 = vmatpush1.bf16.msra.mxu1 %v6249_v6  ;;  %v6186_v6 = vcombine.high %v2096_v60, %v2100_v61  ;;  %v2324_v63 = vld [vmem:[#allocation8 + $0x960] sm:$0xff] }
 0x15c   :  { %5193 = vmatprep.subr.bf16.mxu1 %v6242_v9  ;;  %v2092_v9 = vld [vmem:[#allocation8 + $0x220] sm:$0xff]  ;;  %v6409_v52 = vcombine.low %v2320_v37, %v2324_v63 }
 0x15d   :  { %5153 = vmatpush1.bf16.msra.mxu0 %v6113_v14  ;;  %v2220_v14 = vld [vmem:[#allocation8 + $0x620] sm:$0xff]  ;;  %v6178_v19 = vcombine.high %v2088_v8, %v2092_v9 }
 0x15e   :  { %5154 = vmatprep.subr.bf16.mxu0 %v6234_v17  ;;  %v6185_v17 = vcombine.low %v2096_v60, %v2100_v61  ;;  %v2456_v54 = vld [vmem:[#allocation8 + $0xd80] sm:$0xff] }
 0x15f   :  { %5194 = vmatpush1.bf16.msra.mxu1 %v6241_v18  ;;  %v1723_v18 = vadd.f32 %v6866_v12, %v371_v4  ;;  %v6305_v12 = vcombine.low %v2216_v13, %v2220_v14  ;;  %v2304_v60 = vld [vmem:[#allocation8 + $0x8c0] sm:$0xff]  ;;  %v6904_v4 = vld [vmem:[#allocation8 + $0x5e8] sm:$0xff] }
 0x160   :  { %5195 = vmatprep.subr.bf16.mxu1 %v6362_v11  ;;  %v6306_v11 = vcombine.high %v2216_v13, %v2220_v14  ;;  %v2308_v1 = vld [vmem:[#allocation8 + $0x8e0] sm:$0xff] }
 0x161   :  { %5155 = vmatpush2.bf16.msra.mxu0 %v6233_v22  ;;  %v6880_v22 = vld [vmem:[#allocation8 + $0xdc0] sm:$0xff]  ;;  %v1764_v25 = vadd.f32 %v6869_v15, %v1723_v18  ;;  %v6394_v14 = vcombine.high %v2304_v60, %v2308_v1 }
 0x162   :  { %5156 = vmatprep.subr.bf16.mxu0 %v6226_v23  ;;  %v6882_v23 = vld [vmem:[#allocation8 + $0xde0] sm:$0xff] }
 0x163   :  { %5196 = vmatpush2.bf16.msra.mxu1 %v6361_v28  ;;  %v6177_v28 = vcombine.low %v2088_v8, %v2092_v9  ;;  %v6892_v35 = vpack.c.bf16 %v1764_v25, %v1764_v25  ;;  %v6553_v2 = vcombine.low %v6880_v22, %v6882_v23  ;;  %v2448_v9 = vld [vmem:[#allocation8 + $0xd40] sm:$0xff] }
 0x164   :  { %5197 = vmatprep.subr.bf16.mxu1 %v6354_v26  ;;  %v6426_v26 = vcombine.high %v2336_v21, %v2340_v16  ;;  %v2300_v18 = vld [vmem:[#allocation8 + $0x8a0] sm:$0xff] }
 0x165   :  { %5157 = vmatpush2.bf16.msra.mxu0 %v6225_v29  ;;  %v2332_v29 = vld [vmem:[#allocation8 + $0x9a0] sm:$0xff] }
 0x166   :  { %5158 = vmatprep.subr.bf16.mxu0 %v6218_v30  ;;  %v6554_v30 = vcombine.high %v6880_v22, %v6882_v23  ;;  %v6418_v15 = vcombine.high %v2328_v31, %v2332_v29  ;;  %v6417_v40 = vcombine.low %v2328_v31, %v2332_v29  ;;  %v2440_v21 = vld [vmem:[#allocation8 + $0xd00] sm:$0xff] }
 0x167   :  { %5198 = vmatpush2.bf16.msra.mxu1 %v6353_v32  ;;  %v379_v32 = vrot.slane %v6861_v0, %v378_v24  ;;  %v2444_v16 = vld [vmem:[#allocation8 + $0xd20] sm:$0xff] }
 0x168   :  { %5199 = vmatprep.subr.bf16.mxu1 %v6346_v36  ;;  %v383_v36 = vrot.slane %v6861_v0, %v382_v27  ;;  %v2288_v23 = vld [vmem:[#allocation8 + $0x840] sm:$0xff] }
 0x169   :  { %5159 = vmatpush2.bf16.msra.mxu0 %v6217_v38  ;;  %v2432_v31 = vld [vmem:[#allocation8 + $0xcc0] sm:$0xff] }
 0x16a   :  { %5160 = vmatprep.subr.bf16.mxu0 %v6210_v39  ;;  %v2436_v29 = vld [vmem:[#allocation8 + $0xce0] sm:$0xff] }
 0x16b   :  { %5200 = vmatpush2.bf16.msra.mxu1 %v6345_v5 }
 0x16c   :  { %5201 = vmatprep.subr.bf16.mxu1 %v6338_v42  ;;  %v6410_v42 = vcombine.high %v2320_v37, %v2324_v63  ;;  %v2424_v63 = vld [vmem:[#allocation8 + $0xc80] sm:$0xff] }
 0x16d   :  { %5161 = vmatpush2.bf16.msra.mxu0 %v6209_v46  ;;  %v2312_v46 = vld [vmem:[#allocation8 + $0x900] sm:$0xff] }
 0x16e   :  { %5162 = vmatprep.subr.bf16.mxu0 %v6202_v47  ;;  %v2316_v47 = vld [vmem:[#allocation8 + $0x920] sm:$0xff] }
 0x16f   :  { %5202 = vmatpush2.bf16.msra.mxu1 %v6337_v48  ;;  %v6401_v8 = vcombine.low %v2312_v46, %v2316_v47 }
 0x170   :  { %5203 = vmatprep.subr.bf16.mxu1 %v6330_v51 }
 0x171   :  { %5163 = vmatpush2.bf16.msra.mxu0 %v6201_v55  ;;  %v2460_v55 = vld [vmem:[#allocation8 + $0xda0] sm:$0xff] }
 0x172   :  { %5164 = vmatprep.subr.bf16.mxu0 %v6194_v57 }
 0x173   :  { %5204 = vmatpush2.bf16.msra.mxu1 %v6329_v58  ;;  %v6402_v58 = vcombine.high %v2312_v46, %v2316_v47  ;;  %v2420_v46 = vld [vmem:[#allocation8 + $0xc60] sm:$0xff] }
 0x174   :  { %5205 = vmatprep.subr.bf16.mxu1 %v6322_v62 }
 0x175   :  { %5165 = vmatpush2.bf16.msra.mxu0 %v6193_v3  ;;  %v6902_v3 = vld [vmem:[#allocation8 + $0x5c8] sm:$0xff] }
 0x176   :  { %5166 = vmatprep.subr.bf16.mxu0 %v6186_v6  ;;  %v6299_v13 = vcombine.low %v6902_v3, %v6904_v4 }
 0x177   :  { %5206 = vmatpush2.bf16.msra.mxu1 %v6321_v7  ;;  %v6546_v7 = vcombine.high %v2456_v54, %v2460_v55 }
 0x178   :  { %5207 = vmatprep.subr.bf16.mxu1 %v6314_v10  ;;  %v2452_v10 = vld [vmem:[#allocation8 + $0xd60] sm:$0xff] }
 0x179   :  { %5167 = vmatpush2.bf16.msra.mxu0 %v6185_v17  ;;  %v2296_v17 = vld [vmem:[#allocation8 + $0x880] sm:$0xff]  ;;  %v6537_v25 = vcombine.low %v2448_v9, %v2452_v10 }
 0x17a   :  { %5168 = vmatprep.subr.bf16.mxu0 %v6178_v19  ;;  %v6545_v19 = vcombine.low %v2456_v54, %v2460_v55  ;;  %v6386_v22 = vcombine.high %v2296_v17, %v2300_v18  ;;  %v2408_v54 = vld [vmem:[#allocation8 + $0xc00] sm:$0xff] }
 0x17b   :  { %5208 = vmatpush2.bf16.msra.mxu1 %v6313_v20  ;;  %v6538_v20 = vcombine.high %v2448_v9, %v2452_v10  ;;  %v2412_v55 = vld [vmem:[#allocation8 + $0xc20] sm:$0xff] }
 0x17c   :  { %5209 = vmatprep.subr.bf16.mxu1 %v6306_v11  ;;  %v6393_v11 = vcombine.low %v2304_v60, %v2308_v1  ;;  %v2388_v60 = vld [vmem:[#allocation8 + $0xb60] sm:$0xff]  ;;  %v6498_v1 = vcombine.high %v2408_v54, %v2412_v55 }
 0x17d   :  { %5169 = vmatpush2.bf16.msra.mxu0 %v6177_v28  ;;  %v2292_v28 = vld [vmem:[#allocation8 + $0x860] sm:$0xff] }
 0x17e   :  { %5220 = vmatprep.subr.bf16.mxu0 %v6426_v26  ;;  %v6385_v26 = vcombine.low %v2296_v17, %v2300_v18  ;;  %v6377_v37 = vcombine.low %v2288_v23, %v2292_v28  ;;  %v2376_v10 = vld [vmem:[#allocation8 + $0xb00] sm:$0xff]  ;;  %v6497_v17 = vcombine.low %v2408_v54, %v2412_v55  ;;  %v2081_v55 = vld [vmem:[#allocation8 + $0x1c8] sm:$0xff] }
 0x17f   :  { %5210 = vmatpush2.bf16.msra.mxu1 %v6305_v12  ;;  %v6530_v12 = vcombine.high %v2440_v21, %v2444_v16 }
 0x180   :  { %5261 = vmatprep.subr.bf16.mxu1 %v6554_v30  ;;  %v1804_v38 = vpop.f32.mrf.mxu0  ;;  %5171 = vmatmul.mubr.bf16.vlgmr.msra.gmra.mxu0 %v6892_v35  ;;  %v6378_v30 = vcombine.high %v2288_v23, %v2292_v28 }
 0x181   :  { %v1805_v39 = vadd.f32 %v1804_v38, %v379_v32  ;;  %5221 = vmatpush1.bf16.msra.mxu0 %v6425_v34  ;;  %v2280_v32 = vld [vmem:[#allocation8 + $0x800] sm:$0xff] }
 0x182   :  { %v1845_v5 = vpop.f32.mrf.mxu1  ;;  %v1806_v41 = vpop.f32.mrf.mxu0  ;;  %5222 = vmatprep.subr.bf16.mxu0 %v6418_v15  ;;  %v2284_v34 = vld [vmem:[#allocation8 + $0x820] sm:$0xff]  ;;  %v6529_v15 = vcombine.low %v2440_v21, %v2444_v16 }
 0x183   :  { %v1807_v43 = vadd.f32 %v1806_v41, %v383_v36  ;;  %v1846_v48 = vadd.f32 %v1845_v5, %v1805_v39  ;;  %v6522_v36 = vcombine.high %v2432_v31, %v2436_v29  ;;  %v2428_v38 = vld [vmem:[#allocation8 + $0xca0] sm:$0xff]  ;;  %v6370_v39 = vcombine.high %v2280_v32, %v2284_v34 }
 0x184   :  { %v1847_v45 = vpop.f32.mrf.mxu1  ;;  %v1808_v49 = vpop.f32.mrf.mxu0  ;;  %v2400_v5 = vld [vmem:[#allocation8 + $0xbc0] sm:$0xff]  ;;  %v6521_v41 = vcombine.low %v2432_v31, %v2436_v29 }
 0x185   :  { %v1848_v50 = vadd.f32 %v1847_v45, %v1807_v43  ;;  %5223 = vmatpush1.bf16.msra.mxu0 %v6417_v40  ;;  %v6906_v6 = vpack.c.bf16 %v1846_v48, %v1846_v48  ;;  %v2404_v40 = vld [vmem:[#allocation8 + $0xbe0] sm:$0xff]  ;;  %v6369_v43 = vcombine.low %v2280_v32, %v2284_v34 }
 0x186   :  { %v1849_v51 = vpop.f32.mrf.mxu1  ;;  %v1809_v57 = vpop.f32.mrf.mxu0  ;;  %5224 = vmatprep.subr.bf16.mxu0 %v6410_v42  ;;  %v6514_v42 = vcombine.high %v2424_v63, %v2428_v38  ;;  %v2416_v45 = vld [vmem:[#allocation8 + $0xc40] sm:$0xff]  ;;  %v6490_v47 = vcombine.high %v2400_v5, %v2404_v40 }
 0x187   :  { %v6898_v61 = vpack.c.bf16 %v1848_v50, %v1848_v50  ;;  %v2392_v48 = vld [vmem:[#allocation8 + $0xb80] sm:$0xff]  ;;  %v6513_v50 = vcombine.low %v2424_v63, %v2428_v38  ;;  %v6506_v51 = vcombine.high %v2416_v45, %v2420_v46 }
 0x188   :  { %v1850_v62 = vpop.f32.mrf.mxu1  ;;  %v2396_v49 = vld [vmem:[#allocation8 + $0xba0] sm:$0xff] }
 0x189   :  { %5211 = vmatprep.mubr.bf16.mxu1 %v6898_v61  ;;  %5225 = vmatpush1.bf16.msra.mxu0 %v6409_v52  ;;  %v6489_v52 = vcombine.low %v2400_v5, %v2404_v40  ;;  %v6482_v57 = vcombine.high %v2392_v48, %v2396_v49  ;;  %v6505_v62 = vcombine.low %v2416_v45, %v2420_v46  ;;  %v2368_v16 = vld [vmem:[#allocation8 + $0xac0] sm:$0xff] }
 0x18a   :  { %5212 = vmatmul.mubr.bf16.vlgmr.msra.gmra.mxu1 %v6906_v6  ;;  %5226 = vmatprep.subr.bf16.mxu0 %v6402_v58  ;;  %v2384_v58 = vld [vmem:[#allocation8 + $0xb40] sm:$0xff] }
 0x18b   :  { %5262 = vmatpush1.bf16.msra.mxu1 %v6553_v2  ;;  %v6481_v2 = vcombine.low %v2392_v48, %v2396_v49  ;;  %v6474_v9 = vcombine.high %v2384_v58, %v2388_v60  ;;  %v2360_v29 = vld [vmem:[#allocation8 + $0xa80] sm:$0xff] }
 0x18c   :  { %5263 = vmatprep.subr.bf16.mxu1 %v6546_v7  ;;  %v2528_v7 = vld [vmem:[#allocation8 + $0xfc0] sm:$0xff] }
 0x18d   :  { %5227 = vmatpush1.bf16.msra.mxu0 %v6401_v8  ;;  %v2532_v8 = vld [vmem:[#allocation8 + $0xfe0] sm:$0xff] }
 0x18e   :  { %5228 = vmatprep.subr.bf16.mxu0 %v6394_v14  ;;  %v2380_v14 = vld [vmem:[#allocation8 + $0xb20] sm:$0xff]  ;;  %v6618_v18 = vcombine.high %v2528_v7, %v2532_v8  ;;  %v6617_v23 = vcombine.low %v2528_v7, %v2532_v8 }
 0x18f   :  { %5264 = vmatpush1.bf16.msra.mxu1 %v6545_v19  ;;  %v6473_v19 = vcombine.low %v2384_v58, %v2388_v60  ;;  %v6466_v21 = vcombine.high %v2376_v10, %v2380_v14  ;;  %v2352_v38 = vld [vmem:[#allocation8 + $0xa40] sm:$0xff] }
 0x190   :  { %5265 = vmatprep.subr.bf16.mxu1 %v6538_v20  ;;  %v2520_v20 = vld [vmem:[#allocation8 + $0xf80] sm:$0xff] }
 0x191   :  { %5229 = vmatpush1.bf16.msra.mxu0 %v6393_v11  ;;  %v2524_v11 = vld [vmem:[#allocation8 + $0xfa0] sm:$0xff] }
 0x192   :  { %5230 = vmatprep.subr.bf16.mxu0 %v6386_v22  ;;  %v2372_v22 = vld [vmem:[#allocation8 + $0xae0] sm:$0xff]  ;;  %v6610_v28 = vcombine.high %v2520_v20, %v2524_v11  ;;  %v6609_v32 = vcombine.low %v2520_v20, %v2524_v11 }
 0x193   :  { %5266 = vmatpush1.bf16.msra.mxu1 %v6537_v25  ;;  %v6465_v25 = vcombine.low %v2376_v10, %v2380_v14  ;;  %v6458_v31 = vcombine.high %v2368_v16, %v2372_v22  ;;  %v2344_v46 = vld [vmem:[#allocation8 + $0xa00] sm:$0xff] }
 0x194   :  { %5267 = vmatprep.subr.bf16.mxu1 %v6530_v12  ;;  %v2512_v12 = vld [vmem:[#allocation8 + $0xf40] sm:$0xff] }
 0x195   :  { %5231 = vmatpush1.bf16.msra.mxu0 %v6385_v26  ;;  %v2516_v26 = vld [vmem:[#allocation8 + $0xf60] sm:$0xff] }
 0x196   :  { %5232 = vmatprep.subr.bf16.mxu0 %v6378_v30  ;;  %v2364_v30 = vld [vmem:[#allocation8 + $0xaa0] sm:$0xff]  ;;  %v6602_v34 = vcombine.high %v2512_v12, %v2516_v26  ;;  %v6601_v5 = vcombine.low %v2512_v12, %v2516_v26 }
 0x197   :  { %5268 = vmatpush1.bf16.msra.mxu1 %v6529_v15  ;;  %v6457_v15 = vcombine.low %v2368_v16, %v2372_v22  ;;  %v6450_v63 = vcombine.high %v2360_v29, %v2364_v30  ;;  %v2484_v7 = vld [vmem:[#allocation8 + $0xe60] sm:$0xff] }
 0x198   :  { %5269 = vmatprep.subr.bf16.mxu1 %v6522_v36  ;;  %v2504_v36 = vld [vmem:[#allocation8 + $0xf00] sm:$0xff] }
 0x199   :  { %5233 = vmatpush1.bf16.msra.mxu0 %v6377_v37  ;;  %v2508_v37 = vld [vmem:[#allocation8 + $0xf20] sm:$0xff] }
 0x19a   :  { %5234 = vmatprep.subr.bf16.mxu0 %v6370_v39  ;;  %v2356_v39 = vld [vmem:[#allocation8 + $0xa60] sm:$0xff]  ;;  %v6594_v40 = vcombine.high %v2504_v36, %v2508_v37  ;;  %v6593_v48 = vcombine.low %v2504_v36, %v2508_v37 }
 0x19b   :  { %5270 = vmatpush1.bf16.msra.mxu1 %v6521_v41  ;;  %v6449_v41 = vcombine.low %v2360_v29, %v2364_v30  ;;  %v6442_v45 = vcombine.high %v2352_v38, %v2356_v39  ;;  %v6300_v30 = vcombine.high %v6902_v3, %v6904_v4 }
 0x19c   :  { %5271 = vmatprep.subr.bf16.mxu1 %v6514_v42  ;;  %v2496_v42 = vld [vmem:[#allocation8 + $0xec0] sm:$0xff] }
 0x19d   :  { %5235 = vmatpush1.bf16.msra.mxu0 %v6369_v43  ;;  %v2500_v43 = vld [vmem:[#allocation8 + $0xee0] sm:$0xff] }
 0x19e   :  { %5236 = vmatprep.subr.bf16.mxu0 %v6490_v47  ;;  %v2348_v47 = vld [vmem:[#allocation8 + $0xa20] sm:$0xff]  ;;  %v6586_v49 = vcombine.high %v2496_v42, %v2500_v43  ;;  %v6585_v58 = vcombine.low %v2496_v42, %v2500_v43 }
 0x19f   :  { %5272 = vmatpush1.bf16.msra.mxu1 %v6513_v50  ;;  %v6441_v50 = vcombine.low %v2352_v38, %v2356_v39  ;;  %v6434_v54 = vcombine.high %v2344_v46, %v2348_v47 }
 0x1a0   :  { %5273 = vmatprep.subr.bf16.mxu1 %v6506_v51  ;;  %v2488_v51 = vld [vmem:[#allocation8 + $0xe80] sm:$0xff] }
 0x1a1   :  { %5237 = vmatpush2.bf16.msra.mxu0 %v6489_v52  ;;  %v2492_v52 = vld [vmem:[#allocation8 + $0xea0] sm:$0xff] }
 0x1a2   :  { %5238 = vmatprep.subr.bf16.mxu0 %v6482_v57  ;;  %v2085_v57 = vld [vmem:[#allocation8 + $0x1e8] sm:$0xff]  ;;  %v6578_v60 = vcombine.high %v2488_v51, %v2492_v52  ;;  %v6577_v10 = vcombine.low %v2488_v51, %v2492_v52 }
 0x1a3   :  { %5274 = vmatpush1.bf16.msra.mxu1 %v6505_v62  ;;  %v386_v62 = vsub.s32 4, %v6819_v44  ;;  %v6172_v8 = vcombine.high %v2081_v55, %v2085_v57  ;;  %v6171_v38 = vcombine.low %v2081_v55, %v2085_v57  ;;  %v2045_v55 = vld [vmem:[#allocation8 + $0xa8] sm:$0xff] }
 0x1a4   :  { %5275 = vmatprep.subr.bf16.mxu1 %v6498_v1  ;;  %v6433_v1 = vcombine.low %v2344_v46, %v2348_v47  ;;  %v2061_v46 = vld [vmem:[#allocation8 + $0x128] sm:$0xff] }
 0x1a5   :  { %5239 = vmatpush2.bf16.msra.mxu0 %v6481_v2  ;;  %v2480_v2 = vld [vmem:[#allocation8 + $0xe40] sm:$0xff] }
 0x1a6   :  { %5240 = vmatprep.subr.bf16.mxu0 %v6474_v9  ;;  %v390_v9 = vsub.s32 5, %v6819_v44  ;;  %v6570_v14 = vcombine.high %v2480_v2, %v2484_v7  ;;  %v6569_v11 = vcombine.low %v2480_v2, %v2484_v7 }
 0x1a7   :  { %5276 = vmatpush1.bf16.msra.mxu1 %v6497_v17  ;;  %v387_v17 = vrot.slane %v6861_v0, %v386_v62 }
 0x1a8   :  { %5277 = vmatprep.subr.bf16.mxu1 %v6618_v18  ;;  %v2472_v18 = vld [vmem:[#allocation8 + $0xe00] sm:$0xff]  ;;  %v391_v20 = vrot.slane %v6861_v0, %v390_v9 }
 0x1a9   :  { %5241 = vmatpush2.bf16.msra.mxu0 %v6473_v19  ;;  %v2476_v19 = vld [vmem:[#allocation8 + $0xe20] sm:$0xff] }
 0x1aa   :  { %5242 = vmatprep.subr.bf16.mxu0 %v6466_v21  ;;  %v6562_v16 = vcombine.high %v2472_v18, %v2476_v19  ;;  %v6561_v26 = vcombine.low %v2472_v18, %v2476_v19  ;;  %v2145_v18 = vld [vmem:[#allocation8 + $0x3c8] sm:$0xff] }
 0x1ab   :  { %5278 = vmatpush2.bf16.msra.mxu1 %v6617_v23  ;;  %v2149_v19 = vld [vmem:[#allocation8 + $0x3e8] sm:$0xff] }
 0x1ac   :  { %5279 = vmatprep.subr.bf16.mxu1 %v6610_v28 }
 0x1ad   :  { %5243 = vmatpush2.bf16.msra.mxu0 %v6465_v25 }
 0x1ae   :  { %5244 = vmatprep.subr.bf16.mxu0 %v6458_v31 }
 0x1af   :  { %5280 = vmatpush2.bf16.msra.mxu1 %v6609_v32 }
 0x1b0   :  { %5281 = vmatprep.subr.bf16.mxu1 %v6602_v34  ;;  %v2073_v34 = vld [vmem:[#allocation8 + $0x188] sm:$0xff] }
 0x1b1   :  { %5245 = vmatpush2.bf16.msra.mxu0 %v6457_v15  ;;  %v2077_v15 = vld [vmem:[#allocation8 + $0x1a8] sm:$0xff] }
 0x1b2   :  { %5246 = vmatprep.subr.bf16.mxu0 %v6450_v63  ;;  %v6163_v42 = vcombine.low %v2073_v34, %v2077_v15 }
 0x1b3   :  { %5282 = vmatpush2.bf16.msra.mxu1 %v6601_v5  ;;  %v6164_v5 = vcombine.high %v2073_v34, %v2077_v15  ;;  %v2117_v34 = vld [vmem:[#allocation8 + $0x2e8] sm:$0xff] }
 0x1b4   :  { %5283 = vmatprep.subr.bf16.mxu1 %v6594_v40  ;;  %v2065_v40 = vld [vmem:[#allocation8 + $0x148] sm:$0xff] }
 0x1b5   :  { %5247 = vmatpush2.bf16.msra.mxu0 %v6449_v41  ;;  %v2069_v41 = vld [vmem:[#allocation8 + $0x168] sm:$0xff] }
 0x1b6   :  { %5248 = vmatprep.subr.bf16.mxu0 %v6442_v45  ;;  %v6156_v43 = vcombine.high %v2065_v40, %v2069_v41  ;;  %v2057_v45 = vld [vmem:[#allocation8 + $0x108] sm:$0xff]  ;;  %v6155_v47 = vcombine.low %v2065_v40, %v2069_v41  ;;  %v394_v41 = vsub.s32 6, %v6819_v44 }
 0x1b7   :  { %5284 = vmatpush2.bf16.msra.mxu1 %v6593_v48  ;;  %v6148_v48 = vcombine.high %v2057_v45, %v2061_v46  ;;  %v6147_v51 = vcombine.low %v2057_v45, %v2061_v46  ;;  %v398_v46 = vsub.s32 7, %v6819_v44 }
 0x1b8   :  { %5285 = vmatprep.subr.bf16.mxu1 %v6586_v49  ;;  %v2049_v49 = vld [vmem:[#allocation8 + $0xc8] sm:$0xff] }
 0x1b9   :  { %5249 = vmatpush2.bf16.msra.mxu0 %v6441_v50  ;;  %v2053_v50 = vld [vmem:[#allocation8 + $0xe8] sm:$0xff] }
 0x1ba   :  { %5250 = vmatprep.subr.bf16.mxu0 %v6434_v54  ;;  %v6140_v52 = vcombine.high %v2049_v49, %v2053_v50  ;;  %v2041_v54 = vld [vmem:[#allocation8 + $0x88] sm:$0xff]  ;;  %v6139_v57 = vcombine.low %v2049_v49, %v2053_v50 }
 0x1bb   :  { %5286 = vmatpush2.bf16.msra.mxu1 %v6585_v58  ;;  %v6132_v58 = vcombine.high %v2041_v54, %v2045_v55  ;;  %v6131_v2 = vcombine.low %v2041_v54, %v2045_v55  ;;  %v2089_v50 = vld [vmem:[#allocation8 + $0x208] sm:$0xff] }
 0x1bc   :  { %5287 = vmatprep.subr.bf16.mxu1 %v6578_v60  ;;  %v2033_v60 = vld [vmem:[#allocation8 + $0x48] sm:$0xff] }
 0x1bd   :  { %5251 = vmatpush2.bf16.msra.mxu0 %v6433_v1  ;;  %v2037_v1 = vld [vmem:[#allocation8 + $0x68] sm:$0xff] }
 0x1be   :  { %5302 = vmatprep.subr.bf16.mxu0 %v6172_v8  ;;  %v6124_v7 = vcombine.high %v2033_v60, %v2037_v1  ;;  %v2025_v8 = vld [vmem:[#allocation8 + $0x8] sm:$0xff] }
 0x1bf   :  { %5288 = vmatpush2.bf16.msra.mxu1 %v6577_v10  ;;  %v2029_v10 = vld [vmem:[#allocation8 + $0x28] sm:$0xff] }
 0x1c0   :  { %v1886_v21 = vpop.f32.mrf.mxu0  ;;  %5289 = vmatprep.subr.bf16.mxu1 %v6570_v14  ;;  %v6123_v14 = vcombine.low %v2033_v60, %v2037_v1  ;;  %v2337_v1 = vld [vmem:[#allocation8 + $0x9c8] sm:$0xff] }
 0x1c1   :  { %v1887_v22 = vadd.f32 %v1886_v21, %v387_v17  ;;  %v6116_v17 = vcombine.high %v2025_v8, %v2029_v10  ;;  %v2137_v21 = vld [vmem:[#allocation8 + $0x388] sm:$0xff] }
 0x1c2   :  { %v1927_v23 = vpop.f32.mrf.mxu1  ;;  %v1888_v28 = vpop.f32.mrf.mxu0 }
 0x1c3   :  { %v1889_v25 = vadd.f32 %v1888_v28, %v391_v20  ;;  %5290 = vmatpush2.bf16.msra.mxu1 %v6569_v11  ;;  %v1928_v31 = vadd.f32 %v1927_v23, %v1887_v22  ;;  %v6115_v20 = vcombine.low %v2025_v8, %v2029_v10  ;;  %v6236_v11 = vcombine.high %v2145_v18, %v2149_v19  ;;  %v2129_v28 = vld [vmem:[#allocation8 + $0x348] sm:$0xff] }
 0x1c4   :  { %v1929_v12 = vpop.f32.mrf.mxu1  ;;  %v1890_v29 = vpop.f32.mrf.mxu0  ;;  %5291 = vmatprep.subr.bf16.mxu1 %v6562_v16  ;;  %v2141_v16 = vld [vmem:[#allocation8 + $0x3a8] sm:$0xff]  ;;  %v6235_v22 = vcombine.low %v2145_v18, %v2149_v19 }
 0x1c5   :  { %v1930_v32 = vadd.f32 %v1929_v12, %v1889_v25  ;;  %v6924_v39 = vpack.c.bf16 %v1928_v31, %v1928_v31  ;;  %v6228_v23 = vcombine.high %v2137_v21, %v2141_v16  ;;  %v2133_v25 = vld [vmem:[#allocation8 + $0x368] sm:$0xff]  ;;  %v6227_v12 = vcombine.low %v2137_v21, %v2141_v16 }
 0x1c6   :  { %v1931_v0 = vpop.f32.mrf.mxu1  ;;  %v1891_v36 = vpop.f32.mrf.mxu0  ;;  %v2121_v31 = vld [vmem:[#allocation8 + $0x308] sm:$0xff] }
 0x1c7   :  { %v6922_v37 = vpack.c.bf16 %v1930_v32, %v1930_v32  ;;  %5292 = vmatpush2.bf16.msra.mxu1 %v6561_v26  ;;  %v6220_v26 = vcombine.high %v2129_v28, %v2133_v25  ;;  %v2125_v29 = vld [vmem:[#allocation8 + $0x328] sm:$0xff] }
 0x1c8   :  { %v1932_v63 = vpop.f32.mrf.mxu1  ;;  %5343 = vmatprep.subr.bf16.mxu1 %v6300_v30  ;;  %v6219_v30 = vcombine.low %v2129_v28, %v2133_v25  ;;  %v6212_v32 = vcombine.high %v2121_v31, %v2125_v29  ;;  %v2113_v0 = vld [vmem:[#allocation8 + $0x2c8] sm:$0xff]  ;;  %v6211_v15 = vcombine.low %v2121_v31, %v2125_v29 }
 0x1c9   :  { %5252 = vmatprep.mubr.bf16.mxu0 %v6922_v37  ;;  %v6204_v36 = vcombine.high %v2113_v0, %v2117_v34  ;;  %v2105_v63 = vld [vmem:[#allocation8 + $0x288] sm:$0xff] }
 0x1ca   :  { %5253 = vmatmul.mubr.bf16.vlgmr.msra.gmra.mxu0 %v6924_v39  ;;  %v2201_v21 = vld [vmem:[#allocation8 + $0x588] sm:$0xff] }
 0x1cb   :  { %5303 = vmatpush1.bf16.msra.mxu0 %v6171_v38  ;;  %5334 = vmatprep.mubr.bf16.mxu0 %v6872_v33  ;;  %v2109_v38 = vld [vmem:[#allocation8 + $0x2a8] sm:$0xff] }
 0x1cc   :  { %5304 = vmatprep.subr.bf16.mxu0 %v6164_v5  ;;  %v6203_v5 = vcombine.low %v2113_v0, %v2117_v34  ;;  %v6196_v40 = vcombine.high %v2105_v63, %v2109_v38  ;;  %v6195_v45 = vcombine.low %v2105_v63, %v2109_v38  ;;  %v2333_v28 = vld [vmem:[#allocation8 + $0x9a8] sm:$0xff] }
 0x1cd   :  { %v2193_v29 = vld [vmem:[#allocation8 + $0x548] sm:$0xff] }
 0x1ce   :  { %v2197_v0 = vld [vmem:[#allocation8 + $0x568] sm:$0xff] }
 0x1cf   :  { %5305 = vmatpush1.bf16.msra.mxu0 %v6163_v42  ;;  %v2097_v42 = vld [vmem:[#allocation8 + $0x248] sm:$0xff]  ;;  %v6284_v38 = vcombine.high %v2193_v29, %v2197_v0 }
 0x1d0   :  { %5306 = vmatprep.subr.bf16.mxu0 %v6156_v43  ;;  %v2101_v43 = vld [vmem:[#allocation8 + $0x268] sm:$0xff] }
 0x1d1   :  { %v2321_v34 = vld [vmem:[#allocation8 + $0x948] sm:$0xff] }
 0x1d3   :  { %5307 = vmatpush1.bf16.msra.mxu0 %v6155_v47  ;;  %v6188_v47 = vcombine.high %v2097_v42, %v2101_v43 }
 0x1d4   :  { %5308 = vmatprep.subr.bf16.mxu0 %v6148_v48  ;;  %v6635_v48 = vld [vmem:[#allocation7] sm:$0xff] }
 0x1d5   :  { %v395_v49 = vrot.slane %v6635_v48, %v394_v41  ;;  %v399_v54 = vrot.slane %v6635_v48, %v398_v46  ;;  %v2177_v48 = vld [vmem:[#allocation8 + $0x4c8] sm:$0xff] }
 0x1d7   :  { %5309 = vmatpush1.bf16.msra.mxu0 %v6147_v51  ;;  %v2093_v51 = vld [vmem:[#allocation8 + $0x228] sm:$0xff] }
 0x1d8   :  { %5310 = vmatprep.subr.bf16.mxu0 %v6140_v52  ;;  %v6187_v52 = vcombine.low %v2097_v42, %v2101_v43  ;;  %v2189_v42 = vld [vmem:[#allocation8 + $0x528] sm:$0xff] }
 0x1d9   :  { %v2313_v43 = vld [vmem:[#allocation8 + $0x908] sm:$0xff] }
 0x1db   :  { %5311 = vmatpush1.bf16.msra.mxu0 %v6139_v57  ;;  %v6180_v57 = vcombine.high %v2089_v50, %v2093_v51 }
 0x1dc   :  { %5312 = vmatprep.subr.bf16.mxu0 %v6132_v58 }
 0x1df   :  { %5313 = vmatpush1.bf16.msra.mxu0 %v6131_v2  ;;  %v2341_v2 = vld [vmem:[#allocation8 + $0x9e8] sm:$0xff] }
 0x1e0   :  { %5314 = vmatprep.subr.bf16.mxu0 %v6124_v7  ;;  %v6428_v19 = vcombine.high %v2337_v1, %v2341_v2 }
 0x1e3   :  { %5315 = vmatpush1.bf16.msra.mxu0 %v6123_v14  ;;  %v6179_v14 = vcombine.low %v2089_v50, %v2093_v51  ;;  %v2305_v50 = vld [vmem:[#allocation8 + $0x8c8] sm:$0xff] }
 0x1e4   :  { %5316 = vmatprep.subr.bf16.mxu0 %v6116_v17  ;;  %v2309_v51 = vld [vmem:[#allocation8 + $0x8e8] sm:$0xff] }
 0x1e7   :  { %5317 = vmatpush1.bf16.msra.mxu0 %v6115_v20 }
 0x1e8   :  { %5318 = vmatprep.subr.bf16.mxu0 %v6236_v11 }
 0x1eb   :  { %5319 = vmatpush2.bf16.msra.mxu0 %v6235_v22  ;;  %v2205_v22 = vld [vmem:[#allocation8 + $0x5a8] sm:$0xff] }
 0x1ec   :  { %5320 = vmatprep.subr.bf16.mxu0 %v6228_v23  ;;  %v2329_v23 = vld [vmem:[#allocation8 + $0x988] sm:$0xff] }
 0x1ed   :  { %v6419_v63 = vcombine.low %v2329_v23, %v2333_v28 }
 0x1ef   :  { %5321 = vmatpush2.bf16.msra.mxu0 %v6227_v12 }
 0x1f0   :  { %5322 = vmatprep.subr.bf16.mxu0 %v6220_v26  ;;  %v6427_v26 = vcombine.low %v2337_v1, %v2341_v2  ;;  %v2297_v1 = vld [vmem:[#allocation8 + $0x888] sm:$0xff] }
 0x1f1   :  { %v2301_v2 = vld [vmem:[#allocation8 + $0x8a8] sm:$0xff] }
 0x1f3   :  { %5323 = vmatpush2.bf16.msra.mxu0 %v6219_v30  ;;  %v6292_v30 = vcombine.high %v2201_v21, %v2205_v22 }
 0x1f4   :  { %5324 = vmatprep.subr.bf16.mxu0 %v6212_v32  ;;  %v6420_v32 = vcombine.high %v2329_v23, %v2333_v28  ;;  %v2153_v23 = vld [vmem:[#allocation8 + $0x408] sm:$0xff] }
 0x1f5   :  { %v2157_v28 = vld [vmem:[#allocation8 + $0x428] sm:$0xff] }
 0x1f7   :  { %5325 = vmatpush2.bf16.msra.mxu0 %v6211_v15  ;;  %v2325_v15 = vld [vmem:[#allocation8 + $0x968] sm:$0xff] }
 0x1f8   :  { %5326 = vmatprep.subr.bf16.mxu0 %v6204_v36  ;;  %v6291_v36 = vcombine.low %v2201_v21, %v2205_v22  ;;  %v6411_v3 = vcombine.low %v2321_v34, %v2325_v15  ;;  %v6387_v21 = vcombine.low %v2297_v1, %v2301_v2 }
 0x1fb   :  { %5327 = vmatpush2.bf16.msra.mxu0 %v6203_v5  ;;  %v6412_v5 = vcombine.high %v2321_v34, %v2325_v15  ;;  %v2273_v34 = vld [vmem:[#allocation8 + $0x7c8] sm:$0xff] }
 0x1fc   :  { %5328 = vmatprep.subr.bf16.mxu0 %v6196_v40  ;;  %v2185_v40 = vld [vmem:[#allocation8 + $0x508] sm:$0xff] }
 0x1fd   :  { %v6276_v4 = vcombine.high %v2185_v40, %v2189_v42  ;;  %v2277_v15 = vld [vmem:[#allocation8 + $0x7e8] sm:$0xff] }
 0x1ff   :  { %5329 = vmatpush2.bf16.msra.mxu0 %v6195_v45  ;;  %v2317_v45 = vld [vmem:[#allocation8 + $0x928] sm:$0xff] }
 0x200   :  { %v1968_v55 = vpop.f32.mrf.mxu0  ;;  %5330 = vmatprep.subr.bf16.mxu0 %v6188_v47  ;;  %v6283_v47 = vcombine.low %v2193_v29, %v2197_v0 }
 0x201   :  { %v1969_v58 = vadd.f32 %v1968_v55, %v395_v49  ;;  %v2181_v49 = vld [vmem:[#allocation8 + $0x4e8] sm:$0xff] }
 0x202   :  { %v2009_v60 = vpop.f32.mrf.mxu1  ;;  %v1970_v7 = vpop.f32.mrf.mxu0  ;;  %v6268_v55 = vcombine.high %v2177_v48, %v2181_v49 }
 0x203   :  { %v1971_v8 = vadd.f32 %v1970_v7, %v399_v54  ;;  %5331 = vmatpush2.bf16.msra.mxu0 %v6187_v52  ;;  %v2010_v17 = vadd.f32 %v2009_v60, %v1969_v58  ;;  %v6275_v52 = vcombine.low %v2185_v40, %v2189_v42  ;;  %v6403_v54 = vcombine.low %v2313_v43, %v2317_v45  ;;  %v2169_v58 = vld [vmem:[#allocation8 + $0x488] sm:$0xff] }
 0x204   :  { %v2011_v10 = vpop.f32.mrf.mxu1  ;;  %v1972_v18 = vpop.f32.mrf.mxu0  ;;  %5332 = vmatprep.subr.bf16.mxu0 %v6180_v57  ;;  %v6396_v57 = vcombine.high %v2305_v50, %v2309_v51  ;;  %v2173_v60 = vld [vmem:[#allocation8 + $0x4a8] sm:$0xff]  ;;  %v6267_v7 = vcombine.low %v2177_v48, %v2181_v49  ;;  %v6364_v40 = vcombine.high %v2273_v34, %v2277_v15 }
 0x205   :  { %v2012_v20 = vadd.f32 %v2011_v10, %v1971_v8  ;;  %v6937_v31 = vpack.c.bf16 %v2010_v17, %v2010_v17  ;;  %v6395_v8 = vcombine.low %v2305_v50, %v2309_v51  ;;  %v6260_v10 = vcombine.high %v2169_v58, %v2173_v60  ;;  %v2161_v17 = vld [vmem:[#allocation8 + $0x448] sm:$0xff] }
 0x206   :  { %v2013_v11 = vpop.f32.mrf.mxu1  ;;  %v1973_v16 = vpop.f32.mrf.mxu0  ;;  %v2165_v18 = vld [vmem:[#allocation8 + $0x468] sm:$0xff] }
 0x207   :  { %v6935_v25 = vpack.c.bf16 %v2012_v20, %v2012_v20  ;;  %5333 = vmatpush2.bf16.msra.mxu0 %v6179_v14  ;;  %v6388_v14 = vcombine.high %v2297_v1, %v2301_v2  ;;  %v2293_v20 = vld [vmem:[#allocation8 + $0x868] sm:$0xff]  ;;  %v6259_v11 = vcombine.low %v2169_v58, %v2173_v60  ;;  %v6252_v16 = vcombine.high %v2161_v17, %v2165_v18 }
 0x208   :  { %v2014_v12 = vpop.f32.mrf.mxu1  ;;  %5384 = vmatprep.subr.bf16.mxu0 %v6428_v19  ;;  %v2289_v19 = vld [vmem:[#allocation8 + $0x848] sm:$0xff]  ;;  %v6251_v29 = vcombine.low %v2161_v17, %v2165_v18 }
 0x209   :  { %5293 = vmatprep.mubr.bf16.mxu1 %v6935_v25  ;;  %v6380_v22 = vcombine.high %v2289_v19, %v2293_v20  ;;  %v2281_v12 = vld [vmem:[#allocation8 + $0x808] sm:$0xff] }
 0x20a   :  { %5335 = vmatmul.mubr.bf16.vlgmr.msra.gmra.mxu0 %v6892_v35  ;;  %5294 = vmatmul.mubr.bf16.vlgmr.msra.gmra.mxu1 %v6937_v31  ;;  %v2257_v50 = vld [vmem:[#allocation8 + $0x748] sm:$0xff] }
 0x20b   :  { %5344 = vmatpush1.bf16.msra.mxu1 %v6299_v13  ;;  %5385 = vmatpush1.bf16.msra.mxu0 %v6427_v26  ;;  %v6404_v13 = vcombine.high %v2313_v43, %v2317_v45  ;;  %v2285_v26 = vld [vmem:[#allocation8 + $0x828] sm:$0xff] }
 0x20c   :  { %5416 = vmatprep.mubr.bf16.mxu0 %v6922_v37  ;;  %5375 = vmatprep.mubr.bf16.mxu1 %v6898_v61  ;;  %v6372_v0 = vcombine.high %v2281_v12, %v2285_v26  ;;  %v2265_v43 = vld [vmem:[#allocation8 + $0x788] sm:$0xff] }
 0x20d   :  { %5345 = vmatprep.subr.bf16.mxu1 %v6292_v30  ;;  %5386 = vmatprep.subr.bf16.mxu0 %v6420_v32  ;;  %v6379_v30 = vcombine.low %v2289_v19, %v2293_v20  ;;  %v6244_v32 = vcombine.high %v2153_v23, %v2157_v28  ;;  %v2269_v45 = vld [vmem:[#allocation8 + $0x7a8] sm:$0xff] }
 0x20e   :  { %v6356_v48 = vcombine.high %v2265_v43, %v2269_v45  ;;  %v2261_v51 = vld [vmem:[#allocation8 + $0x768] sm:$0xff] }
 0x20f   :  { %5346 = vmatpush1.bf16.msra.mxu1 %v6291_v36  ;;  %5387 = vmatpush1.bf16.msra.mxu0 %v6419_v63  ;;  %v2401_v36 = vld [vmem:[#allocation8 + $0xbc8] sm:$0xff]  ;;  %v6348_v58 = vcombine.high %v2257_v50, %v2261_v51 }
 0x210   :  { %5347 = vmatprep.subr.bf16.mxu1 %v6284_v38  ;;  %5388 = vmatprep.subr.bf16.mxu0 %v6412_v5  ;;  %v2405_v63 = vld [vmem:[#allocation8 + $0xbe8] sm:$0xff]  ;;  %v6243_v38 = vcombine.low %v2153_v23, %v2157_v28  ;;  %v6371_v5 = vcombine.low %v2281_v12, %v2285_v26 }
 0x211   :  { %v6492_v42 = vcombine.high %v2401_v36, %v2405_v63  ;;  %v2249_v1 = vld [vmem:[#allocation8 + $0x708] sm:$0xff] }
 0x212   :  { %v2253_v2 = vld [vmem:[#allocation8 + $0x728] sm:$0xff] }
 0x213   :  { %5348 = vmatpush1.bf16.msra.mxu1 %v6283_v47  ;;  %5389 = vmatpush1.bf16.msra.mxu0 %v6411_v3  ;;  %v2393_v47 = vld [vmem:[#allocation8 + $0xb88] sm:$0xff]  ;;  %v6340_v17 = vcombine.high %v2249_v1, %v2253_v2 }
 0x214   :  { %5349 = vmatprep.subr.bf16.mxu1 %v6276_v4  ;;  %5390 = vmatprep.subr.bf16.mxu0 %v6404_v13  ;;  %v2397_v3 = vld [vmem:[#allocation8 + $0xba8] sm:$0xff]  ;;  %v6363_v4 = vcombine.low %v2273_v34, %v2277_v15  ;;  %v6491_v13 = vcombine.low %v2401_v36, %v2405_v63 }
 0x215   :  { %v6484_v49 = vcombine.high %v2393_v47, %v2397_v3  ;;  %v2241_v19 = vld [vmem:[#allocation8 + $0x6c8] sm:$0xff] }
 0x216   :  { %v2245_v20 = vld [vmem:[#allocation8 + $0x6e8] sm:$0xff] }
 0x217   :  { %5350 = vmatpush1.bf16.msra.mxu1 %v6275_v52  ;;  %5391 = vmatpush1.bf16.msra.mxu0 %v6403_v54  ;;  %v2385_v52 = vld [vmem:[#allocation8 + $0xb48] sm:$0xff]  ;;  %v6332_v23 = vcombine.high %v2241_v19, %v2245_v20 }
 0x218   :  { %5351 = vmatprep.subr.bf16.mxu1 %v6268_v55  ;;  %5392 = vmatprep.subr.bf16.mxu0 %v6396_v57  ;;  %v2389_v54 = vld [vmem:[#allocation8 + $0xb68] sm:$0xff]  ;;  %v6355_v55 = vcombine.low %v2265_v43, %v2269_v45  ;;  %v6483_v57 = vcombine.low %v2393_v47, %v2397_v3 }
 0x219   :  { %v6476_v60 = vcombine.high %v2385_v52, %v2389_v54  ;;  %v2233_v12 = vld [vmem:[#allocation8 + $0x688] sm:$0xff] }
 0x21a   :  { %v2237_v26 = vld [vmem:[#allocation8 + $0x6a8] sm:$0xff] }
 0x21b   :  { %5352 = vmatpush1.bf16.msra.mxu1 %v6267_v7  ;;  %5393 = vmatpush1.bf16.msra.mxu0 %v6395_v8  ;;  %v2377_v7 = vld [vmem:[#allocation8 + $0xb08] sm:$0xff]  ;;  %v6324_v34 = vcombine.high %v2233_v12, %v2237_v26 }
 0x21c   :  { %5353 = vmatprep.subr.bf16.mxu1 %v6260_v10  ;;  %5394 = vmatprep.subr.bf16.mxu0 %v6388_v14  ;;  %v2381_v8 = vld [vmem:[#allocation8 + $0xb28] sm:$0xff]  ;;  %v6347_v10 = vcombine.low %v2257_v50, %v2261_v51  ;;  %v6475_v14 = vcombine.low %v2385_v52, %v2389_v54 }
 0x21d   :  { %v6468_v18 = vcombine.high %v2377_v7, %v2381_v8  ;;  %v2225_v36 = vld [vmem:[#allocation8 + $0x648] sm:$0xff] }
 0x21e   :  { %v2229_v63 = vld [vmem:[#allocation8 + $0x668] sm:$0xff] }
 0x21f   :  { %5354 = vmatpush1.bf16.msra.mxu1 %v6259_v11  ;;  %5395 = vmatpush1.bf16.msra.mxu0 %v6387_v21  ;;  %v2369_v11 = vld [vmem:[#allocation8 + $0xac8] sm:$0xff]  ;;  %v6316_v43 = vcombine.high %v2225_v36, %v2229_v63 }
 0x220   :  { %5355 = vmatprep.subr.bf16.mxu1 %v6252_v16  ;;  %5396 = vmatprep.subr.bf16.mxu0 %v6380_v22  ;;  %v2373_v21 = vld [vmem:[#allocation8 + $0xae8] sm:$0xff]  ;;  %v6339_v16 = vcombine.low %v2249_v1, %v2253_v2  ;;  %v6467_v22 = vcombine.low %v2377_v7, %v2381_v8 }
 0x221   :  { %v6460_v28 = vcombine.high %v2369_v11, %v2373_v21  ;;  %v2217_v47 = vld [vmem:[#allocation8 + $0x608] sm:$0xff] }
 0x222   :  { %v2221_v3 = vld [vmem:[#allocation8 + $0x628] sm:$0xff] }
 0x223   :  { %5356 = vmatpush1.bf16.msra.mxu1 %v6251_v29  ;;  %5397 = vmatpush1.bf16.msra.mxu0 %v6379_v30  ;;  %v2361_v29 = vld [vmem:[#allocation8 + $0xa88] sm:$0xff]  ;;  %v6308_v51 = vcombine.high %v2217_v47, %v2221_v3  ;;  %v6307_v2 = vcombine.low %v2217_v47, %v2221_v3  ;;  %v2058_v47 = vld [vmem:[#allocation8 + $0x110] sm:$0xff] }
 0x224   :  { %5357 = vmatprep.subr.bf16.mxu1 %v6244_v32  ;;  %5398 = vmatprep.subr.bf16.mxu0 %v6372_v0  ;;  %v2365_v30 = vld [vmem:[#allocation8 + $0xaa8] sm:$0xff]  ;;  %v6331_v32 = vcombine.low %v2241_v19, %v2245_v20  ;;  %v6459_v0 = vcombine.low %v2369_v11, %v2373_v21  ;;  %v2074_v11 = vld [vmem:[#allocation8 + $0x190] sm:$0xff] }
 0x225   :  { %v6452_v15 = vcombine.high %v2361_v29, %v2365_v30  ;;  %v2465_v54 = vld [vmem:[#allocation8 + $0xdc8] sm:$0xff]  ;;  %v2078_v21 = vld [vmem:[#allocation8 + $0x1b0] sm:$0xff] }
 0x226   :  { %v2461_v20 = vld [vmem:[#allocation8 + $0xda8] sm:$0xff]  ;;  %v2062_v3 = vld [vmem:[#allocation8 + $0x130] sm:$0xff] }
 0x227   :  { %5358 = vmatpush1.bf16.msra.mxu1 %v6243_v38  ;;  %5399 = vmatpush1.bf16.msra.mxu0 %v6371_v5  ;;  %v2353_v38 = vld [vmem:[#allocation8 + $0xa48] sm:$0xff] }
 0x228   :  { %5359 = vmatprep.subr.bf16.mxu1 %v6364_v40  ;;  %5400 = vmatprep.subr.bf16.mxu0 %v6492_v42  ;;  %v2357_v5 = vld [vmem:[#allocation8 + $0xa68] sm:$0xff]  ;;  %v6323_v40 = vcombine.low %v2233_v12, %v2237_v26  ;;  %v6451_v42 = vcombine.low %v2361_v29, %v2365_v30  ;;  %v6166_v26 = vcombine.high %v2074_v11, %v2078_v21 }
 0x229   :  { %v6444_v45 = vcombine.high %v2353_v38, %v2357_v5  ;;  %v2449_v29 = vld [vmem:[#allocation8 + $0xd48] sm:$0xff] }
 0x22a   :  { %v2453_v30 = vld [vmem:[#allocation8 + $0xd68] sm:$0xff] }
 0x22b   :  { %5360 = vmatpush2.bf16.msra.mxu1 %v6363_v4  ;;  %5401 = vmatpush2.bf16.msra.mxu0 %v6491_v13  ;;  %v2345_v4 = vld [vmem:[#allocation8 + $0xa08] sm:$0xff] }
 0x22c   :  { %5361 = vmatprep.subr.bf16.mxu1 %v6356_v48  ;;  %5402 = vmatprep.subr.bf16.mxu0 %v6484_v49  ;;  %v2349_v13 = vld [vmem:[#allocation8 + $0xa28] sm:$0xff]  ;;  %v6315_v48 = vcombine.low %v2225_v36, %v2229_v63  ;;  %v6443_v49 = vcombine.low %v2353_v38, %v2357_v5  ;;  %v6165_v63 = vcombine.low %v2074_v11, %v2078_v21  ;;  %v2034_v21 = vld [vmem:[#allocation8 + $0x50] sm:$0xff] }
 0x22d   :  { %v6436_v52 = vcombine.high %v2345_v4, %v2349_v13  ;;  %v6435_v7 = vcombine.low %v2345_v4, %v2349_v13  ;;  %v6540_v38 = vcombine.high %v2449_v29, %v2453_v30  ;;  %v6539_v4 = vcombine.low %v2449_v29, %v2453_v30  ;;  %v2421_v11 = vld [vmem:[#allocation8 + $0xc68] sm:$0xff]  ;;  %v2026_v30 = vld [vmem:[#allocation8 + $0x10] sm:$0xff] }
 0x22e   :  { %v2413_v29 = vld [vmem:[#allocation8 + $0xc28] sm:$0xff] }
 0x22f   :  { %5362 = vmatpush2.bf16.msra.mxu1 %v6355_v55  ;;  %5403 = vmatpush2.bf16.msra.mxu0 %v6483_v57  ;;  %v2469_v55 = vld [vmem:[#allocation8 + $0xde8] sm:$0xff]  ;;  %v2082_v57 = vld [vmem:[#allocation8 + $0x1d0] sm:$0xff] }
 0x230   :  { %5363 = vmatprep.subr.bf16.mxu1 %v6348_v58  ;;  %5404 = vmatprep.subr.bf16.mxu0 %v6476_v60  ;;  %v2086_v58 = vld [vmem:[#allocation8 + $0x1f0] sm:$0xff]  ;;  %v2536_v60 = vld [vmem:[#allocation10] sm:$0xff] }
 0x233   :  { %5364 = vmatpush2.bf16.msra.mxu1 %v6347_v10  ;;  %5405 = vmatpush2.bf16.msra.mxu0 %v6475_v14  ;;  %v6556_v10 = vcombine.high %v2465_v54, %v2469_v55  ;;  %v6174_v14 = vcombine.high %v2082_v57, %v2086_v58 }
 0x234   :  { %5365 = vmatprep.subr.bf16.mxu1 %v6340_v17  ;;  %5406 = vmatprep.subr.bf16.mxu0 %v6468_v18  ;;  %v2541_v17 = vrot.slane %v2536_v60, %v370_v56  ;;  %v2457_v18 = vld [vmem:[#allocation8 + $0xd88] sm:$0xff] }
 0x235   :  { %v6548_v12 = vcombine.high %v2457_v18, %v2461_v20 }
 0x237   :  { %5366 = vmatpush2.bf16.msra.mxu1 %v6339_v16  ;;  %5407 = vmatpush2.bf16.msra.mxu0 %v6467_v22  ;;  %v2545_v16 = vrot.slane %v2536_v60, %v374_v59  ;;  %v6555_v22 = vcombine.low %v2465_v54, %v2469_v55  ;;  %v2050_v54 = vld [vmem:[#allocation8 + $0xd0] sm:$0xff] }
 0x238   :  { %5367 = vmatprep.subr.bf16.mxu1 %v6332_v23  ;;  %5408 = vmatprep.subr.bf16.mxu0 %v6460_v28  ;;  %v6173_v23 = vcombine.low %v2082_v57, %v2086_v58  ;;  %v2054_v55 = vld [vmem:[#allocation8 + $0xf0] sm:$0xff]  ;;  %v6149_v58 = vcombine.low %v2058_v47, %v2062_v3 }
 0x23b   :  { %5368 = vmatpush2.bf16.msra.mxu1 %v6331_v32  ;;  %5409 = vmatpush2.bf16.msra.mxu0 %v6459_v0  ;;  %v2066_v32 = vld [vmem:[#allocation8 + $0x150] sm:$0xff] }
 0x23c   :  { %5369 = vmatprep.subr.bf16.mxu1 %v6324_v34  ;;  %5410 = vmatprep.subr.bf16.mxu0 %v6452_v15  ;;  %v2070_v0 = vld [vmem:[#allocation8 + $0x170] sm:$0xff]  ;;  %v6547_v15 = vcombine.low %v2457_v18, %v2461_v20  ;;  %v2417_v20 = vld [vmem:[#allocation8 + $0xc48] sm:$0xff] }
 0x23f   :  { %5370 = vmatpush2.bf16.msra.mxu1 %v6323_v40  ;;  %5411 = vmatpush2.bf16.msra.mxu0 %v6451_v42  ;;  %v6158_v40 = vcombine.high %v2066_v32, %v2070_v0  ;;  %v2441_v42 = vld [vmem:[#allocation8 + $0xd08] sm:$0xff] }
 0x240   :  { %v5172_v50 = vpop.f32.mrf.mxu0  ;;  %5371 = vmatprep.subr.bf16.mxu1 %v6316_v43  ;;  %5412 = vmatprep.subr.bf16.mxu0 %v6444_v45  ;;  %v2445_v43 = vld [vmem:[#allocation8 + $0xd28] sm:$0xff] }
 0x241   :  { %v5173_v28 = vadd.f32 %v5172_v50, %v2541_v17  ;;  %v6150_v50 = vcombine.high %v2058_v47, %v2062_v3  ;;  %v6531_v57 = vcombine.low %v2441_v42, %v2445_v43  ;;  %v6141_v17 = vcombine.low %v2050_v54, %v2054_v55  ;;  %v2521_v3 = vld [vmem:[#allocation8 + $0xf88] sm:$0xff] }
 0x242   :  { %v5174_v1 = vpop.f32.mrf.mxu0 }
 0x243   :  { %5372 = vmatpush2.bf16.msra.mxu1 %v6315_v48  ;;  %5413 = vmatpush2.bf16.msra.mxu0 %v6443_v49  ;;  %v5175_v34 = vadd.f32 %v5174_v1, %v2545_v16  ;;  %v6157_v48 = vcombine.low %v2066_v32, %v2070_v0  ;;  %v6532_v49 = vcombine.high %v2441_v42, %v2445_v43  ;;  %v2038_v16 = vld [vmem:[#allocation8 + $0x70] sm:$0xff] }
 0x244   :  { %v5176_v8 = vpop.f32.mrf.mxu0  ;;  %5373 = vmatprep.subr.bf16.mxu1 %v6308_v51  ;;  %5414 = vmatprep.subr.bf16.mxu0 %v6436_v52  ;;  %v2433_v51 = vld [vmem:[#allocation8 + $0xcc8] sm:$0xff]  ;;  %v6142_v1 = vcombine.high %v2050_v54, %v2054_v55  ;;  %v6507_v32 = vcombine.low %v2417_v20, %v2421_v11  ;;  %v6125_v0 = vcombine.low %v2034_v21, %v2038_v16 }
 0x245   :  { %v2437_v52 = vld [vmem:[#allocation8 + $0xce8] sm:$0xff]  ;;  %v2042_v8 = vld [vmem:[#allocation8 + $0x90] sm:$0xff] }
 0x246   :  { %v5177_v19 = vpop.f32.mrf.mxu0  ;;  %v6524_v60 = vcombine.high %v2433_v51, %v2437_v52  ;;  %v2513_v54 = vld [vmem:[#allocation8 + $0xf48] sm:$0xff] }
 0x247   :  { %5374 = vmatpush2.bf16.msra.mxu1 %v6307_v2  ;;  %5415 = vmatpush2.bf16.msra.mxu0 %v6435_v7  ;;  %v2425_v2 = vld [vmem:[#allocation8 + $0xc88] sm:$0xff] }
 0x248   :  { %5425 = vmatprep.subr.bf16.mxu1 %v6556_v10  ;;  %5466 = vmatprep.subr.bf16.mxu0 %v6174_v14  ;;  %v2429_v7 = vld [vmem:[#allocation8 + $0xca8] sm:$0xff]  ;;  %v2046_v10 = vld [vmem:[#allocation8 + $0xb0] sm:$0xff]  ;;  %v6523_v14 = vcombine.low %v2433_v51, %v2437_v52 }
 0x249   :  { %v6516_v18 = vcombine.high %v2425_v2, %v2429_v7  ;;  %v6134_v19 = vcombine.high %v2042_v8, %v2046_v10  ;;  %v2517_v55 = vld [vmem:[#allocation8 + $0xf68] sm:$0xff] }
 0x24a   :  { %5376 = vmatmul.mubr.bf16.vlgmr.msra.gmra.mxu1 %v6906_v6  ;;  %5417 = vmatmul.mubr.bf16.vlgmr.msra.gmra.mxu0 %v6924_v39  ;;  %v5213_v56 = vpop.f32.mrf.mxu1 }
 0x24b   :  { %v6953_v59 = vadd.f32 %v5213_v56, %v5173_v28  ;;  %5426 = vmatpush1.bf16.msra.mxu1 %v6555_v22  ;;  %5457 = vmatprep.mubr.bf16.mxu1 %v6935_v25  ;;  %v6515_v22 = vcombine.low %v2425_v2, %v2429_v7  ;;  %v6508_v28 = vcombine.high %v2417_v20, %v2421_v11  ;;  %v2030_v56 = vld [vmem:[#allocation8 + $0x30] sm:$0xff] }
 0x24c   :  { %5467 = vmatpush1.bf16.msra.mxu0 %v6173_v23  ;;  %5498 = vmatprep.mubr.bf16.mxu0 %v6872_v33  ;;  %v5215_v36 = vpop.f32.mrf.mxu1  ;;  %v6133_v23 = vcombine.low %v2042_v8, %v2046_v10  ;;  %v6117_v43 = vcombine.low %v2026_v30, %v2030_v56  ;;  %v6604_v2 = vcombine.high %v2513_v54, %v2517_v55  ;;  %v2505_v8 = vld [vmem:[#allocation8 + $0xf08] sm:$0xff] }
 0x24d   :  { %v6957_v5 = vadd.f32 %v5215_v36, %v5175_v34  ;;  %5427 = vmatprep.subr.bf16.mxu1 %v6548_v12  ;;  %5468 = vmatprep.subr.bf16.mxu0 %v6166_v26  ;;  %v6126_v12 = vcombine.high %v2034_v21, %v2038_v16  ;;  %v2409_v26 = vld [vmem:[#allocation8 + $0xc08] sm:$0xff] }
 0x24e   :  { %v5217_v45 = vpop.f32.mrf.mxu1  ;;  %v6500_v34 = vcombine.high %v2409_v26, %v2413_v29  ;;  %v2529_v36 = vld [vmem:[#allocation8 + $0xfc8] sm:$0xff]  ;;  %v6499_v42 = vcombine.low %v2409_v26, %v2413_v29 }
 0x24f   :  { %5428 = vmatpush1.bf16.msra.mxu1 %v6547_v15  ;;  %v6118_v15 = vcombine.high %v2026_v30, %v2030_v56  ;;  %v2509_v10 = vld [vmem:[#allocation8 + $0xf28] sm:$0xff] }
 0x250   :  { %5469 = vmatpush1.bf16.msra.mxu0 %v6165_v63  ;;  %v5218_v13 = vpop.f32.mrf.mxu1  ;;  %5429 = vmatprep.subr.bf16.mxu1 %v6540_v38  ;;  %v2533_v63 = vld [vmem:[#allocation8 + $0xfe8] sm:$0xff]  ;;  %v2146_v38 = vld [vmem:[#allocation8 + $0x3d0] sm:$0xff]  ;;  %v6596_v20 = vcombine.high %v2505_v8, %v2509_v10 }
 0x251   :  { %5470 = vmatprep.subr.bf16.mxu0 %v6158_v40  ;;  %v2150_v40 = vld [vmem:[#allocation8 + $0x3f0] sm:$0xff]  ;;  %v6620_v45 = vcombine.high %v2529_v36, %v2533_v63  ;;  %v2497_v21 = vld [vmem:[#allocation8 + $0xec8] sm:$0xff] }
 0x252   :  { %v6238_v47 = vcombine.high %v2146_v38, %v2150_v40  ;;  %v2138_v13 = vld [vmem:[#allocation8 + $0x390] sm:$0xff]  ;;  %v2501_v16 = vld [vmem:[#allocation8 + $0xee8] sm:$0xff] }
 0x253   :  { %5430 = vmatpush1.bf16.msra.mxu1 %v6539_v4  ;;  %v2525_v4 = vld [vmem:[#allocation8 + $0xfa8] sm:$0xff]  ;;  %v6588_v26 = vcombine.high %v2497_v21, %v2501_v16 }
 0x254   :  { %5471 = vmatpush1.bf16.msra.mxu0 %v6157_v48  ;;  %5431 = vmatprep.subr.bf16.mxu1 %v6532_v49  ;;  %v2142_v48 = vld [vmem:[#allocation8 + $0x3b0] sm:$0xff]  ;;  %v6619_v49 = vcombine.low %v2529_v36, %v2533_v63  ;;  %v6612_v51 = vcombine.high %v2521_v3, %v2525_v4  ;;  %v2489_v30 = vld [vmem:[#allocation8 + $0xe88] sm:$0xff] }
 0x255   :  { %5472 = vmatprep.subr.bf16.mxu0 %v6150_v50  ;;  %v6237_v50 = vcombine.low %v2146_v38, %v2150_v40  ;;  %v6230_v52 = vcombine.high %v2138_v13, %v2142_v48  ;;  %v2493_v56 = vld [vmem:[#allocation8 + $0xea8] sm:$0xff] }
 0x256   :  { %v6580_v36 = vcombine.high %v2489_v30, %v2493_v56  ;;  %v2481_v38 = vld [vmem:[#allocation8 + $0xe48] sm:$0xff] }
 0x257   :  { %5432 = vmatpush1.bf16.msra.mxu1 %v6531_v57  ;;  %v2130_v57 = vld [vmem:[#allocation8 + $0x350] sm:$0xff]  ;;  %v2485_v40 = vld [vmem:[#allocation8 + $0xe68] sm:$0xff] }
 0x258   :  { %5473 = vmatpush1.bf16.msra.mxu0 %v6149_v58  ;;  %5433 = vmatprep.subr.bf16.mxu1 %v6524_v60  ;;  %v2134_v58 = vld [vmem:[#allocation8 + $0x370] sm:$0xff]  ;;  %v6611_v60 = vcombine.low %v2521_v3, %v2525_v4  ;;  %v6572_v3 = vcombine.high %v2481_v38, %v2485_v40 }
 0x259   :  { %5474 = vmatprep.subr.bf16.mxu0 %v6142_v1  ;;  %v6229_v1 = vcombine.low %v2138_v13, %v2142_v48  ;;  %v6222_v7 = vcombine.high %v2130_v57, %v2134_v58  ;;  %v2473_v13 = vld [vmem:[#allocation8 + $0xe08] sm:$0xff] }
 0x25a   :  { %v2477_v48 = vld [vmem:[#allocation8 + $0xe28] sm:$0xff] }
 0x25b   :  { %5434 = vmatpush1.bf16.msra.mxu1 %v6523_v14  ;;  %v2122_v14 = vld [vmem:[#allocation8 + $0x310] sm:$0xff] }
 0x25c   :  { %5475 = vmatpush1.bf16.msra.mxu0 %v6141_v17  ;;  %5435 = vmatprep.subr.bf16.mxu1 %v6516_v18  ;;  %v2126_v17 = vld [vmem:[#allocation8 + $0x330] sm:$0xff]  ;;  %v6603_v18 = vcombine.low %v2513_v54, %v2517_v55  ;;  %v6564_v54 = vcombine.high %v2473_v13, %v2477_v48 }
 0x25d   :  { %5476 = vmatprep.subr.bf16.mxu0 %v6134_v19  ;;  %v6221_v19 = vcombine.low %v2130_v57, %v2134_v58  ;;  %v6214_v11 = vcombine.high %v2122_v14, %v2126_v17  ;;  %v2210_v57 = vld [vmem:[#allocation8 + $0x5d0] sm:$0xff] }
 0x25e   :  { %v2214_v58 = vld [vmem:[#allocation8 + $0x5f0] sm:$0xff] }
 0x25f   :  { %5436 = vmatpush1.bf16.msra.mxu1 %v6515_v22  ;;  %v2114_v22 = vld [vmem:[#allocation8 + $0x2d0] sm:$0xff] }
 0x260   :  { %5477 = vmatpush1.bf16.msra.mxu0 %v6133_v23  ;;  %5437 = vmatprep.subr.bf16.mxu1 %v6508_v28  ;;  %v2118_v23 = vld [vmem:[#allocation8 + $0x2f0] sm:$0xff]  ;;  %v6595_v28 = vcombine.low %v2505_v8, %v2509_v10  ;;  %v6302_v8 = vcombine.high %v2210_v57, %v2214_v58 }
 0x261   :  { %5478 = vmatprep.subr.bf16.mxu0 %v6126_v12  ;;  %v6213_v12 = vcombine.low %v2122_v14, %v2126_v17  ;;  %v6206_v29 = vcombine.high %v2114_v22, %v2118_v23  ;;  %v2202_v14 = vld [vmem:[#allocation8 + $0x590] sm:$0xff] }
 0x262   :  { %v2206_v17 = vld [vmem:[#allocation8 + $0x5b0] sm:$0xff] }
 0x263   :  { %5438 = vmatpush1.bf16.msra.mxu1 %v6507_v32  ;;  %v2106_v32 = vld [vmem:[#allocation8 + $0x290] sm:$0xff] }
 0x264   :  { %5479 = vmatpush1.bf16.msra.mxu0 %v6125_v0  ;;  %5439 = vmatprep.subr.bf16.mxu1 %v6500_v34  ;;  %v2110_v0 = vld [vmem:[#allocation8 + $0x2b0] sm:$0xff]  ;;  %v6587_v34 = vcombine.low %v2497_v21, %v2501_v16  ;;  %v6294_v21 = vcombine.high %v2202_v14, %v2206_v17 }
 0x265   :  { %5480 = vmatprep.subr.bf16.mxu0 %v6118_v15  ;;  %v6205_v15 = vcombine.low %v2114_v22, %v2118_v23  ;;  %v6198_v63 = vcombine.high %v2106_v32, %v2110_v0  ;;  %v2194_v16 = vld [vmem:[#allocation8 + $0x550] sm:$0xff] }
 0x266   :  { %v2198_v22 = vld [vmem:[#allocation8 + $0x570] sm:$0xff] }
 0x267   :  { %5440 = vmatpush1.bf16.msra.mxu1 %v6499_v42  ;;  %v2098_v42 = vld [vmem:[#allocation8 + $0x250] sm:$0xff] }
 0x268   :  { %5481 = vmatpush1.bf16.msra.mxu0 %v6117_v43  ;;  %5441 = vmatprep.subr.bf16.mxu1 %v6620_v45  ;;  %v2102_v43 = vld [vmem:[#allocation8 + $0x270] sm:$0xff]  ;;  %v6579_v45 = vcombine.low %v2489_v30, %v2493_v56  ;;  %v6293_v30 = vcombine.low %v2202_v14, %v2206_v17 }
 0x269   :  { %5482 = vmatprep.subr.bf16.mxu0 %v6238_v47  ;;  %v6197_v47 = vcombine.low %v2106_v32, %v2110_v0  ;;  %v6190_v4 = vcombine.high %v2098_v42, %v2102_v43  ;;  %v6286_v0 = vcombine.high %v2194_v16, %v2198_v22  ;;  %v2290_v14 = vld [vmem:[#allocation8 + $0x850] sm:$0xff] }
 0x26a   :  { %v2294_v17 = vld [vmem:[#allocation8 + $0x870] sm:$0xff] }
 0x26b   :  { %5442 = vmatpush2.bf16.msra.mxu1 %v6619_v49  ;;  %v2090_v49 = vld [vmem:[#allocation8 + $0x210] sm:$0xff] }
 0x26c   :  { %5483 = vmatpush2.bf16.msra.mxu0 %v6237_v50  ;;  %5443 = vmatprep.subr.bf16.mxu1 %v6612_v51  ;;  %v2094_v50 = vld [vmem:[#allocation8 + $0x230] sm:$0xff]  ;;  %v6571_v51 = vcombine.low %v2481_v38, %v2485_v40 }
 0x26d   :  { %5484 = vmatprep.subr.bf16.mxu0 %v6230_v52  ;;  %v6189_v52 = vcombine.low %v2098_v42, %v2102_v43  ;;  %v6182_v55 = vcombine.high %v2090_v49, %v2094_v50  ;;  %v2314_v38 = vld [vmem:[#allocation8 + $0x910] sm:$0xff]  ;;  %v6285_v42 = vcombine.low %v2194_v16, %v2198_v22 }
 0x26e   :  { %v2318_v40 = vld [vmem:[#allocation8 + $0x930] sm:$0xff] }
 0x26f   :  { %5444 = vmatpush2.bf16.msra.mxu1 %v6611_v60  ;;  %v2338_v60 = vld [vmem:[#allocation8 + $0x9d0] sm:$0xff] }
 0x270   :  { %5485 = vmatpush2.bf16.msra.mxu0 %v6229_v1  ;;  %5445 = vmatprep.subr.bf16.mxu1 %v6604_v2  ;;  %v2342_v1 = vld [vmem:[#allocation8 + $0x9f0] sm:$0xff]  ;;  %v6563_v2 = vcombine.low %v2473_v13, %v2477_v48 }
 0x271   :  { %5486 = vmatprep.subr.bf16.mxu0 %v6222_v7  ;;  %v6181_v7 = vcombine.low %v2090_v49, %v2094_v50  ;;  %v6430_v10 = vcombine.high %v2338_v60, %v2342_v1  ;;  %v2306_v13 = vld [vmem:[#allocation8 + $0x8d0] sm:$0xff]  ;;  %v6405_v50 = vcombine.low %v2314_v38, %v2318_v40 }
 0x272   :  { %v2310_v48 = vld [vmem:[#allocation8 + $0x8f0] sm:$0xff] }
 0x273   :  { %5446 = vmatpush2.bf16.msra.mxu1 %v6603_v18  ;;  %v6301_v18 = vcombine.low %v2210_v57, %v2214_v58  ;;  %v2298_v57 = vld [vmem:[#allocation8 + $0x890] sm:$0xff] }
 0x274   :  { %5487 = vmatpush2.bf16.msra.mxu0 %v6221_v19  ;;  %5447 = vmatprep.subr.bf16.mxu1 %v6596_v20  ;;  %v2330_v19 = vld [vmem:[#allocation8 + $0x990] sm:$0xff] }
 0x275   :  { %5488 = vmatprep.subr.bf16.mxu0 %v6214_v11  ;;  %v2334_v20 = vld [vmem:[#allocation8 + $0x9b0] sm:$0xff]  ;;  %v6429_v11 = vcombine.low %v2338_v60, %v2342_v1  ;;  %v6397_v1 = vcombine.low %v2306_v13, %v2310_v48 }
 0x276   :  { %v6421_v32 = vcombine.low %v2330_v19, %v2334_v20  ;;  %v2302_v58 = vld [vmem:[#allocation8 + $0x8b0] sm:$0xff] }
 0x277   :  { %5448 = vmatpush2.bf16.msra.mxu1 %v6595_v28  ;;  %v6422_v28 = vcombine.high %v2330_v19, %v2334_v20  ;;  %v6389_v19 = vcombine.low %v2298_v57, %v2302_v58  ;;  %v2158_v16 = vld [vmem:[#allocation8 + $0x430] sm:$0xff] }
 0x278   :  { %5489 = vmatpush2.bf16.msra.mxu0 %v6213_v12  ;;  %5449 = vmatprep.subr.bf16.mxu1 %v6588_v26  ;;  %v2322_v12 = vld [vmem:[#allocation8 + $0x950] sm:$0xff] }
 0x279   :  { %5490 = vmatprep.subr.bf16.mxu0 %v6206_v29  ;;  %v2326_v26 = vld [vmem:[#allocation8 + $0x970] sm:$0xff] }
 0x27a   :  { %v2282_v22 = vld [vmem:[#allocation8 + $0x810] sm:$0xff] }
 0x27b   :  { %5450 = vmatpush2.bf16.msra.mxu1 %v6587_v34 }
 0x27c   :  { %5491 = vmatpush2.bf16.msra.mxu0 %v6205_v15  ;;  %5451 = vmatprep.subr.bf16.mxu1 %v6580_v36  ;;  %v6414_v15 = vcombine.high %v2322_v12, %v2326_v26  ;;  %v2186_v36 = vld [vmem:[#allocation8 + $0x510] sm:$0xff] }
 0x27d   :  { %5492 = vmatprep.subr.bf16.mxu0 %v6198_v63  ;;  %v2190_v63 = vld [vmem:[#allocation8 + $0x530] sm:$0xff] }
 0x27e   :  { %v6277_v49 = vcombine.low %v2186_v36, %v2190_v63 }
 0x27f   :  { %5452 = vmatpush2.bf16.msra.mxu1 %v6579_v45  ;;  %v6413_v45 = vcombine.low %v2322_v12, %v2326_v26  ;;  %v6381_v12 = vcombine.low %v2290_v14, %v2294_v17 }
 0x280   :  { %5493 = vmatpush2.bf16.msra.mxu0 %v6197_v47  ;;  %5453 = vmatprep.subr.bf16.mxu1 %v6572_v3  ;;  %v6278_v47 = vcombine.high %v2186_v36, %v2190_v63  ;;  %v6406_v3 = vcombine.high %v2314_v38, %v2318_v40  ;;  %v2266_v40 = vld [vmem:[#allocation8 + $0x790] sm:$0xff] }
 0x281   :  { %5494 = vmatprep.subr.bf16.mxu0 %v6190_v4  ;;  %v2178_v4 = vld [vmem:[#allocation8 + $0x4d0] sm:$0xff] }
 0x283   :  { %5454 = vmatpush2.bf16.msra.mxu1 %v6571_v51 }
 0x284   :  { %5495 = vmatpush2.bf16.msra.mxu0 %v6189_v52  ;;  %5455 = vmatprep.subr.bf16.mxu1 %v6564_v54  ;;  %v6398_v52 = vcombine.high %v2306_v13, %v2310_v48  ;;  %v2170_v54 = vld [vmem:[#allocation8 + $0x490] sm:$0xff] }
 0x285   :  { %5496 = vmatprep.subr.bf16.mxu0 %v6182_v55  ;;  %v2174_v55 = vld [vmem:[#allocation8 + $0x4b0] sm:$0xff] }
 0x286   :  { %v2258_v13 = vld [vmem:[#allocation8 + $0x750] sm:$0xff] }
 0x287   :  { %5456 = vmatpush2.bf16.msra.mxu1 %v6563_v2  ;;  %v6262_v2 = vcombine.high %v2170_v54, %v2174_v55  ;;  %v2262_v48 = vld [vmem:[#allocation8 + $0x770] sm:$0xff] }
 0x288   :  { %5497 = vmatpush2.bf16.msra.mxu0 %v6181_v7  ;;  %5507 = vmatprep.subr.bf16.mxu1 %v6302_v8  ;;  %v6390_v7 = vcombine.high %v2298_v57, %v2302_v58  ;;  %v2162_v8 = vld [vmem:[#allocation8 + $0x450] sm:$0xff] }
 0x289   :  { %5548 = vmatprep.subr.bf16.mxu0 %v6430_v10  ;;  %v2166_v10 = vld [vmem:[#allocation8 + $0x470] sm:$0xff] }
 0x28a   :  { %5458 = vmatmul.mubr.bf16.vlgmr.msra.gmra.mxu1 %v6937_v31  ;;  %v5254_v23 = vpop.f32.mrf.mxu0  ;;  %v6254_v20 = vcombine.high %v2162_v8, %v2166_v10  ;;  %v2250_v57 = vld [vmem:[#allocation8 + $0x710] sm:$0xff] }
 0x28b   :  { %5499 = vmatmul.mubr.bf16.vlgmr.msra.gmra.mxu0 %v6892_v35  ;;  %v6962_v29 = vadd.f32 %v5254_v23, %v6953_v59  ;;  %5508 = vmatpush1.bf16.msra.mxu1 %v6301_v18  ;;  %v6261_v18 = vcombine.low %v2170_v54, %v2174_v55  ;;  %v2286_v23 = vld [vmem:[#allocation8 + $0x830] sm:$0xff]  ;;  %v6350_v54 = vcombine.high %v2258_v13, %v2262_v48 }
 0x28c   :  { %5539 = vmatprep.mubr.bf16.mxu1 %v6898_v61  ;;  %5549 = vmatpush1.bf16.msra.mxu0 %v6429_v11  ;;  %v5256_v56 = vpop.f32.mrf.mxu0  ;;  %v6382_v11 = vcombine.high %v2290_v14, %v2294_v17  ;;  %v6373_v63 = vcombine.low %v2282_v22, %v2286_v23  ;;  %v2254_v58 = vld [vmem:[#allocation8 + $0x730] sm:$0xff] }
 0x28d   :  { %5580 = vmatprep.mubr.bf16.mxu0 %v6922_v37  ;;  %v6967_v34 = vadd.f32 %v5256_v56, %v6957_v5  ;;  %5509 = vmatprep.subr.bf16.mxu1 %v6294_v21  ;;  %v2182_v5 = vld [vmem:[#allocation8 + $0x4f0] sm:$0xff] }
 0x28e   :  { %5550 = vmatprep.subr.bf16.mxu0 %v6422_v28  ;;  %v5258_v59 = vpop.f32.mrf.mxu0  ;;  %v6270_v51 = vcombine.high %v2178_v4, %v2182_v5  ;;  %v6269_v60 = vcombine.low %v2178_v4, %v2182_v5  ;;  %v2154_v21 = vld [vmem:[#allocation8 + $0x410] sm:$0xff]  ;;  %v6253_v28 = vcombine.low %v2162_v8, %v2166_v10  ;;  %v6342_v8 = vcombine.high %v2250_v57, %v2254_v58 }
 0x28f   :  { %5510 = vmatpush1.bf16.msra.mxu1 %v6293_v30  ;;  %v6246_v26 = vcombine.high %v2154_v21, %v2158_v16  ;;  %v6374_v30 = vcombine.high %v2282_v22, %v2286_v23  ;;  %v2274_v56 = vld [vmem:[#allocation8 + $0x7d0] sm:$0xff]  ;;  %v6245_v36 = vcombine.low %v2154_v21, %v2158_v16 }
 0x290   :  { %5551 = vmatpush1.bf16.msra.mxu0 %v6421_v32  ;;  %v5259_v43 = vpop.f32.mrf.mxu0  ;;  %5511 = vmatprep.subr.bf16.mxu1 %v6286_v0  ;;  %v2278_v32 = vld [vmem:[#allocation8 + $0x7f0] sm:$0xff] }
 0x291   :  { %5552 = vmatprep.subr.bf16.mxu0 %v6414_v15  ;;  %v2402_v0 = vld [vmem:[#allocation8 + $0xbd0] sm:$0xff]  ;;  %v6366_v59 = vcombine.high %v2274_v56, %v2278_v32 }
 0x292   :  { %v2406_v15 = vld [vmem:[#allocation8 + $0xbf0] sm:$0xff] }
 0x293   :  { %5512 = vmatpush1.bf16.msra.mxu1 %v6285_v42  ;;  %v6494_v38 = vcombine.high %v2402_v0, %v2406_v15  ;;  %v2270_v42 = vld [vmem:[#allocation8 + $0x7b0] sm:$0xff] }
 0x294   :  { %5553 = vmatpush1.bf16.msra.mxu0 %v6413_v45  ;;  %5513 = vmatprep.subr.bf16.mxu1 %v6278_v47  ;;  %v2394_v43 = vld [vmem:[#allocation8 + $0xb90] sm:$0xff]  ;;  %v6365_v47 = vcombine.low %v2274_v56, %v2278_v32  ;;  %v6358_v4 = vcombine.high %v2266_v40, %v2270_v42 }
 0x295   :  { %5554 = vmatprep.subr.bf16.mxu0 %v6406_v3  ;;  %v2398_v45 = vld [vmem:[#allocation8 + $0xbb0] sm:$0xff]  ;;  %v6493_v3 = vcombine.low %v2402_v0, %v2406_v15 }
 0x296   :  { %v6486_v5 = vcombine.high %v2394_v43, %v2398_v45  ;;  %v2242_v14 = vld [vmem:[#allocation8 + $0x6d0] sm:$0xff] }
 0x297   :  { %5514 = vmatpush1.bf16.msra.mxu1 %v6277_v49  ;;  %v2386_v49 = vld [vmem:[#allocation8 + $0xb50] sm:$0xff] }
 0x298   :  { %5555 = vmatpush1.bf16.msra.mxu0 %v6405_v50  ;;  %5515 = vmatprep.subr.bf16.mxu1 %v6270_v51  ;;  %v2390_v50 = vld [vmem:[#allocation8 + $0xb70] sm:$0xff]  ;;  %v6357_v51 = vcombine.low %v2266_v40, %v2270_v42 }
 0x299   :  { %5556 = vmatprep.subr.bf16.mxu0 %v6398_v52  ;;  %v6485_v52 = vcombine.low %v2394_v43, %v2398_v45  ;;  %v6478_v55 = vcombine.high %v2386_v49, %v2390_v50  ;;  %v2246_v17 = vld [vmem:[#allocation8 + $0x6f0] sm:$0xff] }
 0x29a   :  { %v6334_v21 = vcombine.high %v2242_v14, %v2246_v17  ;;  %v2234_v22 = vld [vmem:[#allocation8 + $0x690] sm:$0xff] }
 0x29b   :  { %5516 = vmatpush1.bf16.msra.mxu1 %v6269_v60  ;;  %v2378_v60 = vld [vmem:[#allocation8 + $0xb10] sm:$0xff] }
 0x29c   :  { %5557 = vmatpush1.bf16.msra.mxu0 %v6397_v1  ;;  %5517 = vmatprep.subr.bf16.mxu1 %v6262_v2  ;;  %v2382_v1 = vld [vmem:[#allocation8 + $0xb30] sm:$0xff]  ;;  %v6349_v2 = vcombine.low %v2258_v13, %v2262_v48 }
 0x29d   :  { %5558 = vmatprep.subr.bf16.mxu0 %v6390_v7  ;;  %v6477_v7 = vcombine.low %v2386_v49, %v2390_v50  ;;  %v6470_v10 = vcombine.high %v2378_v60, %v2382_v1  ;;  %v2238_v23 = vld [vmem:[#allocation8 + $0x6b0] sm:$0xff] }
 0x29e   :  { %v6326_v56 = vcombine.high %v2234_v22, %v2238_v23  ;;  %v2226_v0 = vld [vmem:[#allocation8 + $0x650] sm:$0xff] }
 0x29f   :  { %5518 = vmatpush1.bf16.msra.mxu1 %v6261_v18  ;;  %v2370_v18 = vld [vmem:[#allocation8 + $0xad0] sm:$0xff] }
 0x2a0   :  { %5559 = vmatpush1.bf16.msra.mxu0 %v6389_v19  ;;  %5519 = vmatprep.subr.bf16.mxu1 %v6254_v20  ;;  %v2374_v19 = vld [vmem:[#allocation8 + $0xaf0] sm:$0xff]  ;;  %v6341_v20 = vcombine.low %v2250_v57, %v2254_v58 }
 0x2a1   :  { %5560 = vmatprep.subr.bf16.mxu0 %v6382_v11  ;;  %v6469_v11 = vcombine.low %v2378_v60, %v2382_v1  ;;  %v6462_v16 = vcombine.high %v2370_v18, %v2374_v19  ;;  %v2230_v15 = vld [vmem:[#allocation8 + $0x670] sm:$0xff] }
 0x2a2   :  { %v6318_v40 = vcombine.high %v2226_v0, %v2230_v15  ;;  %v2218_v43 = vld [vmem:[#allocation8 + $0x610] sm:$0xff] }
 0x2a3   :  { %5520 = vmatpush1.bf16.msra.mxu1 %v6253_v28  ;;  %v2362_v28 = vld [vmem:[#allocation8 + $0xa90] sm:$0xff] }
 0x2a4   :  { %5561 = vmatpush1.bf16.msra.mxu0 %v6381_v12  ;;  %5521 = vmatprep.subr.bf16.mxu1 %v6246_v26  ;;  %v2366_v12 = vld [vmem:[#allocation8 + $0xab0] sm:$0xff]  ;;  %v6333_v26 = vcombine.low %v2242_v14, %v2246_v17 }
 0x2a5   :  { %5562 = vmatprep.subr.bf16.mxu0 %v6374_v30  ;;  %v6461_v30 = vcombine.low %v2370_v18, %v2374_v19  ;;  %v6454_v32 = vcombine.high %v2362_v28, %v2366_v12  ;;  %v2222_v45 = vld [vmem:[#allocation8 + $0x630] sm:$0xff] }
 0x2a6   :  { %v6310_v13 = vcombine.high %v2218_v43, %v2222_v45  ;;  %v2466_v49 = vld [vmem:[#allocation8 + $0xdd0] sm:$0xff] }
 0x2a7   :  { %5522 = vmatpush1.bf16.msra.mxu1 %v6245_v36  ;;  %v2354_v36 = vld [vmem:[#allocation8 + $0xa50] sm:$0xff] }
 0x2a8   :  { %5563 = vmatpush1.bf16.msra.mxu0 %v6373_v63  ;;  %5523 = vmatprep.subr.bf16.mxu1 %v6366_v59  ;;  %v2358_v63 = vld [vmem:[#allocation8 + $0xa70] sm:$0xff]  ;;  %v6325_v59 = vcombine.low %v2234_v22, %v2238_v23 }
 0x2a9   :  { %5564 = vmatprep.subr.bf16.mxu0 %v6494_v38  ;;  %v6453_v38 = vcombine.low %v2362_v28, %v2366_v12  ;;  %v6446_v42 = vcombine.high %v2354_v36, %v2358_v63  ;;  %v2470_v50 = vld [vmem:[#allocation8 + $0xdf0] sm:$0xff] }
 0x2aa   :  { %v6558_v57 = vcombine.high %v2466_v49, %v2470_v50  ;;  %v2458_v60 = vld [vmem:[#allocation8 + $0xd90] sm:$0xff] }
 0x2ab   :  { %5524 = vmatpush2.bf16.msra.mxu1 %v6365_v47  ;;  %v2346_v47 = vld [vmem:[#allocation8 + $0xa10] sm:$0xff] }
 0x2ac   :  { %5565 = vmatpush2.bf16.msra.mxu0 %v6493_v3  ;;  %5525 = vmatprep.subr.bf16.mxu1 %v6358_v4  ;;  %v2350_v3 = vld [vmem:[#allocation8 + $0xa30] sm:$0xff]  ;;  %v6317_v4 = vcombine.low %v2226_v0, %v2230_v15 }
 0x2ad   :  { %5566 = vmatprep.subr.bf16.mxu0 %v6486_v5  ;;  %v6445_v5 = vcombine.low %v2354_v36, %v2358_v63  ;;  %v6438_v48 = vcombine.high %v2346_v47, %v2350_v3  ;;  %v2462_v1 = vld [vmem:[#allocation8 + $0xdb0] sm:$0xff]  ;;  %v2059_v63 = vld [vmem:[#allocation8 + $0x118] sm:$0xff] }
 0x2ae   :  { %v6550_v14 = vcombine.high %v2458_v60, %v2462_v1  ;;  %v2450_v17 = vld [vmem:[#allocation8 + $0xd50] sm:$0xff]  ;;  %v6549_v23 = vcombine.low %v2458_v60, %v2462_v1 }
 0x2af   :  { %5526 = vmatpush2.bf16.msra.mxu1 %v6357_v51  ;;  %v2083_v51 = vld [vmem:[#allocation8 + $0x1d8] sm:$0xff]  ;;  %v2454_v18 = vld [vmem:[#allocation8 + $0xd70] sm:$0xff] }
 0x2b0   :  { %5567 = vmatpush2.bf16.msra.mxu0 %v6485_v52  ;;  %5527 = vmatprep.subr.bf16.mxu1 %v6350_v54  ;;  %v2087_v52 = vld [vmem:[#allocation8 + $0x1f8] sm:$0xff]  ;;  %v6309_v54 = vcombine.low %v2218_v43, %v2222_v45  ;;  %v2442_v0 = vld [vmem:[#allocation8 + $0xd10] sm:$0xff] }
 0x2b1   :  { %5568 = vmatprep.subr.bf16.mxu0 %v6478_v55  ;;  %v6437_v55 = vcombine.low %v2346_v47, %v2350_v3  ;;  %v6176_v58 = vcombine.high %v2083_v51, %v2087_v52  ;;  %v2434_v47 = vld [vmem:[#allocation8 + $0xcd0] sm:$0xff] }
 0x2b2   :  { %v2438_v3 = vld [vmem:[#allocation8 + $0xcf0] sm:$0xff] }
 0x2b3   :  { %5528 = vmatpush2.bf16.msra.mxu1 %v6349_v2  ;;  %v6557_v2 = vcombine.low %v2466_v49, %v2470_v50  ;;  %v6526_v49 = vcombine.high %v2434_v47, %v2438_v3 }
 0x2b4   :  { %5569 = vmatpush2.bf16.msra.mxu0 %v6477_v7  ;;  %5529 = vmatprep.subr.bf16.mxu1 %v6342_v8  ;;  %v2075_v7 = vld [vmem:[#allocation8 + $0x198] sm:$0xff] }
 0x2b5   :  { %5570 = vmatprep.subr.bf16.mxu0 %v6470_v10  ;;  %v2079_v8 = vld [vmem:[#allocation8 + $0x1b8] sm:$0xff]  ;;  %v6175_v10 = vcombine.low %v2083_v51, %v2087_v52  ;;  %v2426_v51 = vld [vmem:[#allocation8 + $0xc90] sm:$0xff] }
 0x2b6   :  { %v2430_v52 = vld [vmem:[#allocation8 + $0xcb0] sm:$0xff] }
 0x2b7   :  { %5530 = vmatpush2.bf16.msra.mxu1 %v6341_v20  ;;  %v6518_v60 = vcombine.high %v2426_v51, %v2430_v52 }
 0x2b8   :  { %5571 = vmatpush2.bf16.msra.mxu0 %v6469_v11  ;;  %5531 = vmatprep.subr.bf16.mxu1 %v6334_v21  ;;  %v6168_v11 = vcombine.high %v2075_v7, %v2079_v8  ;;  %v2067_v21 = vld [vmem:[#allocation8 + $0x158] sm:$0xff] }
 0x2b9   :  { %5572 = vmatprep.subr.bf16.mxu0 %v6462_v16  ;;  %v2071_v16 = vld [vmem:[#allocation8 + $0x178] sm:$0xff] }
 0x2bb   :  { %5532 = vmatpush2.bf16.msra.mxu1 %v6333_v26  ;;  %v6167_v26 = vcombine.low %v2075_v7, %v2079_v8  ;;  %v2422_v7 = vld [vmem:[#allocation8 + $0xc70] sm:$0xff]  ;;  %v2035_v8 = vld [vmem:[#allocation8 + $0x58] sm:$0xff] }
 0x2bc   :  { %5573 = vmatpush2.bf16.msra.mxu0 %v6461_v30  ;;  %5533 = vmatprep.subr.bf16.mxu1 %v6326_v56  ;;  %v6542_v30 = vcombine.high %v2450_v17, %v2454_v18 }
 0x2bd   :  { %5574 = vmatprep.subr.bf16.mxu0 %v6454_v32  ;;  %v6160_v32 = vcombine.high %v2067_v21, %v2071_v16 }
 0x2bf   :  { %5534 = vmatpush2.bf16.msra.mxu1 %v6325_v59  ;;  %v2063_v59 = vld [vmem:[#allocation8 + $0x138] sm:$0xff] }
 0x2c0   :  { %5575 = vmatpush2.bf16.msra.mxu0 %v6453_v38  ;;  %5535 = vmatprep.subr.bf16.mxu1 %v6318_v40  ;;  %v6541_v40 = vcombine.low %v2450_v17, %v2454_v18  ;;  %v6152_v45 = vcombine.high %v2059_v63, %v2063_v59 }
 0x2c1   :  { %5576 = vmatprep.subr.bf16.mxu0 %v6446_v42 }
 0x2c3   :  { %5536 = vmatpush2.bf16.msra.mxu1 %v6317_v4  ;;  %v2051_v4 = vld [vmem:[#allocation8 + $0xd8] sm:$0xff] }
 0x2c4   :  { %5577 = vmatpush2.bf16.msra.mxu0 %v6445_v5  ;;  %5537 = vmatprep.subr.bf16.mxu1 %v6310_v13  ;;  %v2055_v5 = vld [vmem:[#allocation8 + $0xf8] sm:$0xff] }
 0x2c5   :  { %5578 = vmatprep.subr.bf16.mxu0 %v6438_v48  ;;  %v6151_v48 = vcombine.low %v2059_v63, %v2063_v59  ;;  %v6144_v50 = vcombine.high %v2051_v4, %v2055_v5 }
 0x2c7   :  { %5538 = vmatpush2.bf16.msra.mxu1 %v6309_v54  ;;  %v2043_v54 = vld [vmem:[#allocation8 + $0x98] sm:$0xff] }
 0x2c8   :  { %5579 = vmatpush2.bf16.msra.mxu0 %v6437_v55  ;;  %5589 = vmatprep.subr.bf16.mxu1 %v6558_v57  ;;  %v2047_v55 = vld [vmem:[#allocation8 + $0xb8] sm:$0xff]  ;;  %v6525_v57 = vcombine.low %v2434_v47, %v2438_v3 }
 0x2c9   :  { %5630 = vmatprep.subr.bf16.mxu0 %v6176_v58  ;;  %v6143_v58 = vcombine.low %v2051_v4, %v2055_v5  ;;  %v6136_v1 = vcombine.high %v2043_v54, %v2047_v55  ;;  %v6135_v17 = vcombine.low %v2043_v54, %v2047_v55 }
 0x2ca   :  { %v6969_v19 = vpop.f32.mrf.mxu0  ;;  %5540 = vmatmul.mubr.bf16.vlgmr.msra.gmra.mxu1 %v6906_v6  ;;  %v5295_v20 = vpop.f32.mrf.mxu1 }
 0x2cb   :  { %5581 = vmatmul.mubr.bf16.vlgmr.msra.gmra.mxu0 %v6924_v39  ;;  %v6974_v22 = vadd.f32 %v5295_v20, %v6962_v29  ;;  %5590 = vmatpush1.bf16.msra.mxu1 %v6557_v2  ;;  %v2446_v29 = vld [vmem:[#allocation8 + $0xd30] sm:$0xff] }
 0x2cc   :  { %5621 = vmatprep.mubr.bf16.mxu1 %v6935_v25  ;;  %5631 = vmatpush1.bf16.msra.mxu0 %v6175_v10  ;;  %v6977_v28 = vpop.f32.mrf.mxu0  ;;  %v5297_v12 = vpop.f32.mrf.mxu1  ;;  %v6534_v43 = vcombine.high %v2442_v0, %v2446_v29  ;;  %v6533_v13 = vcombine.low %v2442_v0, %v2446_v29  ;;  %v2418_v2 = vld [vmem:[#allocation8 + $0xc50] sm:$0xff]  ;;  %v2039_v10 = vld [vmem:[#allocation8 + $0x78] sm:$0xff] }
 0x2cd   :  { %5662 = vmatprep.mubr.bf16.mxu0 %v6872_v33  ;;  %v6981_v56 = vadd.f32 %v5297_v12, %v6967_v34  ;;  %5591 = vmatprep.subr.bf16.mxu1 %v6550_v14  ;;  %v6159_v34 = vcombine.low %v2067_v21, %v2071_v16  ;;  %v6517_v14 = vcombine.low %v2426_v51, %v2430_v52  ;;  %v2414_v21 = vld [vmem:[#allocation8 + $0xc30] sm:$0xff]  ;;  %v2027_v16 = vld [vmem:[#allocation8 + $0x18] sm:$0xff] }
 0x2ce   :  { %v5340_v15 = vpop.f32.mrf.mxu0  ;;  %5632 = vmatprep.subr.bf16.mxu0 %v6168_v11  ;;  %v5299_v36 = vpop.f32.mrf.mxu1  ;;  %v6510_v18 = vcombine.high %v2418_v2, %v2422_v7  ;;  %v6128_v20 = vcombine.high %v2035_v8, %v2039_v10  ;;  %v2410_v11 = vld [vmem:[#allocation8 + $0xc10] sm:$0xff]  ;;  %v6509_v12 = vcombine.low %v2418_v2, %v2422_v7 }
 0x2cf   :  { %v5802_v38 = vcombine.low %v6974_v22, %v6981_v56  ;;  %5592 = vmatpush1.bf16.msra.mxu1 %v6549_v23  ;;  %v2031_v23 = vld [vmem:[#allocation8 + $0x38] sm:$0xff]  ;;  %v2530_v0 = vld [vmem:[#allocation8 + $0xfd0] sm:$0xff]  ;;  %v6501_v63 = vcombine.low %v2410_v11, %v2414_v21 }
 0x2d0   :  { %5633 = vmatpush1.bf16.msra.mxu0 %v6167_v26  ;;  %v5341_v42 = vpop.f32.mrf.mxu0  ;;  %v5300_v33 = vpop.f32.mrf.mxu1  ;;  %5593 = vmatprep.subr.bf16.mxu1 %v6542_v30  ;;  %v6127_v26 = vcombine.low %v2035_v8, %v2039_v10  ;;  %v6502_v30 = vcombine.high %v2410_v11, %v2414_v21  ;;  %v2534_v29 = vld [vmem:[#allocation8 + $0xff0] sm:$0xff]  ;;  %v2147_v15 = vld [vmem:[#allocation8 + $0x3d8] sm:$0xff]  ;;  %v6119_v59 = vcombine.low %v2027_v16, %v2031_v23 }
 0x2d1   :  { %5634 = vmatprep.subr.bf16.mxu0 %v6160_v32  ;;  %v6120_v32 = vcombine.high %v2027_v16, %v2031_v23  ;;  %v2151_v36 = vld [vmem:[#allocation8 + $0x3f8] sm:$0xff]  ;;  %v2522_v33 = vld [vmem:[#allocation8 + $0xf90] sm:$0xff]  ;;  %v6621_v47 = vcombine.low %v2530_v0, %v2534_v29 }
 0x2d2   :  { %v6240_v42 = vcombine.high %v2147_v15, %v2151_v36  ;;  %v6239_v3 = vcombine.low %v2147_v15, %v2151_v36  ;;  %v2423_v22 = vld [vmem:[#allocation8 + $0xc78] sm:$0xff] }
 0x2d3   :  { %5594 = vmatpush1.bf16.msra.mxu1 %v6541_v40  ;;  %v6622_v40 = vcombine.high %v2530_v0, %v2534_v29 }
 0x2d4   :  { %5635 = vmatpush1.bf16.msra.mxu0 %v6159_v34  ;;  %5595 = vmatprep.subr.bf16.mxu1 %v6534_v43  ;;  %v2526_v34 = vld [vmem:[#allocation8 + $0xfb0] sm:$0xff]  ;;  %v2139_v43 = vld [vmem:[#allocation8 + $0x398] sm:$0xff] }
 0x2d5   :  { %5636 = vmatprep.subr.bf16.mxu0 %v6152_v45  ;;  %v2143_v45 = vld [vmem:[#allocation8 + $0x3b8] sm:$0xff]  ;;  %v6614_v4 = vcombine.high %v2522_v33, %v2526_v34  ;;  %v6613_v51 = vcombine.low %v2522_v33, %v2526_v34 }
 0x2d6   :  { %v6232_v5 = vcombine.high %v2139_v43, %v2143_v45  ;;  %v6231_v52 = vcombine.low %v2139_v43, %v2143_v45 }
 0x2d7   :  { %5596 = vmatpush1.bf16.msra.mxu1 %v6533_v13  ;;  %v2514_v13 = vld [vmem:[#allocation8 + $0xf50] sm:$0xff] }
 0x2d8   :  { %5637 = vmatpush1.bf16.msra.mxu0 %v6151_v48  ;;  %5597 = vmatprep.subr.bf16.mxu1 %v6526_v49  ;;  %v2518_v48 = vld [vmem:[#allocation8 + $0xf70] sm:$0xff]  ;;  %v2131_v49 = vld [vmem:[#allocation8 + $0x358] sm:$0xff] }
 0x2d9   :  { %5638 = vmatprep.subr.bf16.mxu0 %v6144_v50  ;;  %v2135_v50 = vld [vmem:[#allocation8 + $0x378] sm:$0xff]  ;;  %v6606_v54 = vcombine.high %v2514_v13, %v2518_v48  ;;  %v6605_v2 = vcombine.low %v2514_v13, %v2518_v48 }
 0x2da   :  { %v6224_v55 = vcombine.high %v2131_v49, %v2135_v50  ;;  %v6223_v7 = vcombine.low %v2131_v49, %v2135_v50 }
 0x2db   :  { %5598 = vmatpush1.bf16.msra.mxu1 %v6525_v57  ;;  %v2506_v57 = vld [vmem:[#allocation8 + $0xf10] sm:$0xff] }
 0x2dc   :  { %5639 = vmatpush1.bf16.msra.mxu0 %v6143_v58  ;;  %5599 = vmatprep.subr.bf16.mxu1 %v6518_v60  ;;  %v2510_v58 = vld [vmem:[#allocation8 + $0xf30] sm:$0xff]  ;;  %v2123_v60 = vld [vmem:[#allocation8 + $0x318] sm:$0xff] }
 0x2dd   :  { %5640 = vmatprep.subr.bf16.mxu0 %v6136_v1  ;;  %v2127_v1 = vld [vmem:[#allocation8 + $0x338] sm:$0xff]  ;;  %v6598_v8 = vcombine.high %v2506_v57, %v2510_v58  ;;  %v6597_v11 = vcombine.low %v2506_v57, %v2510_v58 }
 0x2de   :  { %v6216_v10 = vcombine.high %v2123_v60, %v2127_v1  ;;  %v6215_v21 = vcombine.low %v2123_v60, %v2127_v1  ;;  %v6985_v1 = vld [vmem:[#allocation10] sm:$0xff] }
 0x2df   :  { %5600 = vmatpush1.bf16.msra.mxu1 %v6517_v14  ;;  %v2498_v14 = vld [vmem:[#allocation8 + $0xed0] sm:$0xff] }
 0x2e0   :  { %5641 = vmatpush1.bf16.msra.mxu0 %v6135_v17  ;;  %5601 = vmatprep.subr.bf16.mxu1 %v6510_v18  ;;  %v2502_v17 = vld [vmem:[#allocation8 + $0xef0] sm:$0xff]  ;;  %v2115_v18 = vld [vmem:[#allocation8 + $0x2d8] sm:$0xff] }
 0x2e1   :  { %5642 = vmatprep.subr.bf16.mxu0 %v6128_v20  ;;  %v2119_v20 = vld [vmem:[#allocation8 + $0x2f8] sm:$0xff]  ;;  %v6590_v16 = vcombine.high %v2498_v14, %v2502_v17  ;;  %v6589_v0 = vcombine.low %v2498_v14, %v2502_v17 }
 0x2e2   :  { %v6208_v23 = vcombine.high %v2115_v18, %v2119_v20  ;;  %v6207_v29 = vcombine.low %v2115_v18, %v2119_v20  ;;  %v2331_v17 = vld [vmem:[#allocation8 + $0x998] sm:$0xff] }
 0x2e3   :  { %5602 = vmatpush1.bf16.msra.mxu1 %v6509_v12  ;;  %v2490_v12 = vld [vmem:[#allocation8 + $0xe90] sm:$0xff]  ;;  %v2335_v18 = vld [vmem:[#allocation8 + $0x9b8] sm:$0xff] }
 0x2e4   :  { %5643 = vmatpush1.bf16.msra.mxu0 %v6127_v26  ;;  %5603 = vmatprep.subr.bf16.mxu1 %v6502_v30  ;;  %v2494_v26 = vld [vmem:[#allocation8 + $0xeb0] sm:$0xff]  ;;  %v2107_v30 = vld [vmem:[#allocation8 + $0x298] sm:$0xff] }
 0x2e5   :  { %5644 = vmatprep.subr.bf16.mxu0 %v6120_v32  ;;  %v2111_v32 = vld [vmem:[#allocation8 + $0x2b8] sm:$0xff]  ;;  %v6582_v15 = vcombine.high %v2490_v12, %v2494_v26  ;;  %v6581_v33 = vcombine.low %v2490_v12, %v2494_v26 }
 0x2e6   :  { %v6200_v36 = vcombine.high %v2107_v30, %v2111_v32  ;;  %v6199_v34 = vcombine.low %v2107_v30, %v2111_v32  ;;  %v2323_v30 = vld [vmem:[#allocation8 + $0x958] sm:$0xff] }
 0x2e7   :  { %5604 = vmatpush1.bf16.msra.mxu1 %v6501_v63  ;;  %v2482_v63 = vld [vmem:[#allocation8 + $0xe50] sm:$0xff]  ;;  %v2327_v32 = vld [vmem:[#allocation8 + $0x978] sm:$0xff] }
 0x2e8   :  { %5645 = vmatpush1.bf16.msra.mxu0 %v6119_v59  ;;  %5605 = vmatprep.subr.bf16.mxu1 %v6622_v40  ;;  %v2486_v59 = vld [vmem:[#allocation8 + $0xe70] sm:$0xff]  ;;  %v2099_v40 = vld [vmem:[#allocation8 + $0x258] sm:$0xff] }
 0x2e9   :  { %5646 = vmatprep.subr.bf16.mxu0 %v6240_v42  ;;  %v2103_v42 = vld [vmem:[#allocation8 + $0x278] sm:$0xff]  ;;  %v6574_v43 = vcombine.high %v2482_v63, %v2486_v59  ;;  %v6573_v13 = vcombine.low %v2482_v63, %v2486_v59 }
 0x2ea   :  { %v6192_v45 = vcombine.high %v2099_v40, %v2103_v42  ;;  %v6191_v48 = vcombine.low %v2099_v40, %v2103_v42  ;;  %v6416_v40 = vcombine.high %v2323_v30, %v2327_v32  ;;  %v2187_v42 = vld [vmem:[#allocation8 + $0x518] sm:$0xff] }
 0x2eb   :  { %5606 = vmatpush2.bf16.msra.mxu1 %v6621_v47  ;;  %v2474_v47 = vld [vmem:[#allocation8 + $0xe10] sm:$0xff] }
 0x2ec   :  { %5647 = vmatpush2.bf16.msra.mxu0 %v6239_v3  ;;  %5607 = vmatprep.subr.bf16.mxu1 %v6614_v4  ;;  %v2478_v3 = vld [vmem:[#allocation8 + $0xe30] sm:$0xff]  ;;  %v2091_v4 = vld [vmem:[#allocation8 + $0x218] sm:$0xff] }
 0x2ed   :  { %5648 = vmatprep.subr.bf16.mxu0 %v6232_v5  ;;  %v2095_v5 = vld [vmem:[#allocation8 + $0x238] sm:$0xff]  ;;  %v6566_v49 = vcombine.high %v2474_v47, %v2478_v3  ;;  %v6565_v57 = vcombine.low %v2474_v47, %v2478_v3 }
 0x2ee   :  { %v6184_v50 = vcombine.high %v2091_v4, %v2095_v5  ;;  %v6183_v58 = vcombine.low %v2091_v4, %v2095_v5  ;;  %v6415_v4 = vcombine.low %v2323_v30, %v2327_v32  ;;  %v2283_v30 = vld [vmem:[#allocation8 + $0x818] sm:$0xff] }
 0x2ef   :  { %5608 = vmatpush2.bf16.msra.mxu1 %v6613_v51  ;;  %v2211_v51 = vld [vmem:[#allocation8 + $0x5d8] sm:$0xff] }
 0x2f0   :  { %5649 = vmatpush2.bf16.msra.mxu0 %v6231_v52  ;;  %5609 = vmatprep.subr.bf16.mxu1 %v6606_v54  ;;  %v2215_v52 = vld [vmem:[#allocation8 + $0x5f8] sm:$0xff] }
 0x2f1   :  { %5650 = vmatprep.subr.bf16.mxu0 %v6224_v55  ;;  %v2339_v54 = vld [vmem:[#allocation8 + $0x9d8] sm:$0xff]  ;;  %v6304_v60 = vcombine.high %v2211_v51, %v2215_v52  ;;  %v6303_v14 = vcombine.low %v2211_v51, %v2215_v52 }
 0x2f2   :  { %v2343_v55 = vld [vmem:[#allocation8 + $0x9f8] sm:$0xff] }
 0x2f3   :  { %5610 = vmatpush2.bf16.msra.mxu1 %v6605_v2  ;;  %v2549_v2 = vrot.slane %v6985_v1, %v378_v24  ;;  %v6431_v20 = vcombine.low %v2339_v54, %v2343_v55  ;;  %v6424_v24 = vcombine.high %v2331_v17, %v2335_v18  ;;  %v2287_v32 = vld [vmem:[#allocation8 + $0x838] sm:$0xff] }
 0x2f4   :  { %5651 = vmatpush2.bf16.msra.mxu0 %v6223_v7  ;;  %5611 = vmatprep.subr.bf16.mxu1 %v6598_v8  ;;  %v6432_v7 = vcombine.high %v2339_v54, %v2343_v55  ;;  %v2203_v8 = vld [vmem:[#allocation8 + $0x598] sm:$0xff] }
 0x2f5   :  { %5652 = vmatprep.subr.bf16.mxu0 %v6216_v10  ;;  %v2207_v10 = vld [vmem:[#allocation8 + $0x5b8] sm:$0xff] }
 0x2f7   :  { %5612 = vmatpush2.bf16.msra.mxu1 %v6597_v11  ;;  %v5337_v11 = vadd.f32 %v6969_v19, %v2549_v2  ;;  %v2303_v2 = vld [vmem:[#allocation8 + $0x8b8] sm:$0xff] }
 0x2f8   :  { %5653 = vmatpush2.bf16.msra.mxu0 %v6215_v21  ;;  %5613 = vmatprep.subr.bf16.mxu1 %v6590_v16  ;;  %v6296_v21 = vcombine.high %v2203_v8, %v2207_v10  ;;  %v2195_v16 = vld [vmem:[#allocation8 + $0x558] sm:$0xff] }
 0x2f9   :  { %5654 = vmatprep.subr.bf16.mxu0 %v6208_v23  ;;  %v2199_v23 = vld [vmem:[#allocation8 + $0x578] sm:$0xff] }
 0x2fa   :  { %v6288_v63 = vcombine.high %v2195_v16, %v2199_v23 }
 0x2fb   :  { %5614 = vmatpush2.bf16.msra.mxu1 %v6589_v0 }
 0x2fc   :  { %5655 = vmatpush2.bf16.msra.mxu0 %v6207_v29  ;;  %5615 = vmatprep.subr.bf16.mxu1 %v6582_v15  ;;  %v6295_v29 = vcombine.low %v2203_v8, %v2207_v10 }
 0x2fd   :  { %5656 = vmatprep.subr.bf16.mxu0 %v6200_v36  ;;  %v6423_v36 = vcombine.low %v2331_v17, %v2335_v18  ;;  %v2163_v17 = vld [vmem:[#allocation8 + $0x458] sm:$0xff] }
 0x2fe   :  { %v2167_v18 = vld [vmem:[#allocation8 + $0x478] sm:$0xff] }
 0x2ff   :  { %5616 = vmatpush2.bf16.msra.mxu1 %v6581_v33  ;;  %v2191_v33 = vld [vmem:[#allocation8 + $0x538] sm:$0xff] }
 0x300   :  { %5657 = vmatpush2.bf16.msra.mxu0 %v6199_v34  ;;  %5617 = vmatprep.subr.bf16.mxu1 %v6574_v43  ;;  %v2315_v43 = vld [vmem:[#allocation8 + $0x918] sm:$0xff]  ;;  %v6280_v5 = vcombine.high %v2187_v42, %v2191_v33  ;;  %v6279_v51 = vcombine.low %v2187_v42, %v2191_v33 }
 0x301   :  { %5658 = vmatprep.subr.bf16.mxu0 %v6192_v45  ;;  %v6287_v45 = vcombine.low %v2195_v16, %v2199_v23  ;;  %v6256_v23 = vcombine.high %v2163_v17, %v2167_v18  ;;  %v2279_v42 = vld [vmem:[#allocation8 + $0x7f8] sm:$0xff] }
 0x302   :  { %v2403_v33 = vld [vmem:[#allocation8 + $0xbd8] sm:$0xff] }
 0x303   :  { %5618 = vmatpush2.bf16.msra.mxu1 %v6573_v13 }
 0x304   :  { %5659 = vmatpush2.bf16.msra.mxu0 %v6191_v48  ;;  %5619 = vmatprep.subr.bf16.mxu1 %v6566_v49  ;;  %v2183_v48 = vld [vmem:[#allocation8 + $0x4f8] sm:$0xff] }
 0x305   :  { %5660 = vmatprep.subr.bf16.mxu0 %v6184_v50  ;;  %v2307_v49 = vld [vmem:[#allocation8 + $0x8d8] sm:$0xff] }
 0x306   :  { %v2311_v50 = vld [vmem:[#allocation8 + $0x8f8] sm:$0xff] }
 0x307   :  { %5620 = vmatpush2.bf16.msra.mxu1 %v6565_v57  ;;  %v6400_v55 = vcombine.high %v2307_v49, %v2311_v50  ;;  %v2171_v57 = vld [vmem:[#allocation8 + $0x498] sm:$0xff]  ;;  %v6399_v8 = vcombine.low %v2307_v49, %v2311_v50 }
 0x308   :  { %5661 = vmatpush2.bf16.msra.mxu0 %v6183_v58  ;;  %5671 = vmatprep.subr.bf16.mxu1 %v6304_v60  ;;  %v2175_v58 = vld [vmem:[#allocation8 + $0x4b8] sm:$0xff] }
 0x309   :  { %5712 = vmatprep.subr.bf16.mxu0 %v6432_v7  ;;  %v2299_v60 = vld [vmem:[#allocation8 + $0x898] sm:$0xff]  ;;  %v6264_v10 = vcombine.high %v2171_v57, %v2175_v58 }
 0x30a   :  { %v5377_v12 = vpop.f32.mrf.mxu1  ;;  %v5418_v26 = vpop.f32.mrf.mxu0  ;;  %5622 = vmatmul.mubr.bf16.vlgmr.msra.gmra.mxu1 %v6937_v31  ;;  %v6391_v16 = vcombine.low %v2299_v60, %v2303_v2  ;;  %v2259_v50 = vld [vmem:[#allocation8 + $0x758] sm:$0xff] }
 0x30b   :  { %v5378_v0 = vadd.f32 %v5377_v12, %v5337_v11  ;;  %5663 = vmatmul.mubr.bf16.vlgmr.msra.gmra.mxu0 %v6892_v35  ;;  %5672 = vmatpush1.bf16.msra.mxu1 %v6303_v14  ;;  %v6392_v14 = vcombine.high %v2299_v60, %v2303_v2  ;;  %v2295_v11 = vld [vmem:[#allocation8 + $0x878] sm:$0xff] }
 0x30c   :  { %5703 = vmatprep.mubr.bf16.mxu1 %v6898_v61  ;;  %5713 = vmatpush1.bf16.msra.mxu0 %v6431_v20  ;;  %v6994_v19 = vpop.f32.mrf.mxu1  ;;  %v6996_v15 = vpop.f32.mrf.mxu0  ;;  %v2319_v61 = vld [vmem:[#allocation8 + $0x938] sm:$0xff] }
 0x30d   :  { %v6998_v59 = vadd.f32 %v5418_v26, %v5378_v0  ;;  %5744 = vmatprep.mubr.bf16.mxu0 %v6922_v37  ;;  %5673 = vmatprep.subr.bf16.mxu1 %v6296_v21  ;;  %v6408_v13 = vcombine.high %v2315_v43, %v2319_v61  ;;  %v2179_v37 = vld [vmem:[#allocation8 + $0x4d8] sm:$0xff]  ;;  %v6407_v52 = vcombine.low %v2315_v43, %v2319_v61 }
 0x30e   :  { %v5381_v35 = vpop.f32.mrf.mxu1  ;;  %v5422_v34 = vpop.f32.mrf.mxu0  ;;  %5714 = vmatprep.subr.bf16.mxu0 %v6424_v24  ;;  %v6272_v54 = vcombine.high %v2179_v37, %v2183_v48  ;;  %v6271_v7 = vcombine.low %v2179_v37, %v2183_v48  ;;  %v2291_v20 = vld [vmem:[#allocation8 + $0x858] sm:$0xff]  ;;  %v6263_v21 = vcombine.low %v2171_v57, %v2175_v58  ;;  %v6255_v0 = vcombine.low %v2163_v17, %v2167_v18 }
 0x30f   :  { %5674 = vmatpush1.bf16.msra.mxu1 %v6295_v29  ;;  %v6384_v12 = vcombine.high %v2291_v20, %v2295_v11  ;;  %v2155_v26 = vld [vmem:[#allocation8 + $0x418] sm:$0xff]  ;;  %v6383_v29 = vcombine.low %v2291_v20, %v2295_v11  ;;  %v6375_v43 = vcombine.low %v2283_v30, %v2287_v32 }
 0x310   :  { %5715 = vmatpush1.bf16.msra.mxu0 %v6423_v36  ;;  %v5382_v47 = vpop.f32.mrf.mxu1  ;;  %v5423_v3 = vpop.f32.mrf.mxu0  ;;  %5675 = vmatprep.subr.bf16.mxu1 %v6288_v63  ;;  %v2159_v24 = vld [vmem:[#allocation8 + $0x438] sm:$0xff]  ;;  %v6376_v63 = vcombine.high %v2283_v30, %v2287_v32 }
 0x311   :  { %5716 = vmatprep.subr.bf16.mxu0 %v6416_v40  ;;  %v6248_v36 = vcombine.high %v2155_v26, %v2159_v24  ;;  %v2275_v40 = vld [vmem:[#allocation8 + $0x7d8] sm:$0xff]  ;;  %v6247_v34 = vcombine.low %v2155_v26, %v2159_v24 }
 0x312   :  { %v2407_v35 = vld [vmem:[#allocation8 + $0xbf8] sm:$0xff]  ;;  %v6368_v61 = vcombine.high %v2275_v40, %v2279_v42 }
 0x313   :  { %5676 = vmatpush1.bf16.msra.mxu1 %v6287_v45  ;;  %v6496_v45 = vcombine.high %v2403_v33, %v2407_v35  ;;  %v2267_v47 = vld [vmem:[#allocation8 + $0x798] sm:$0xff]  ;;  %v6495_v37 = vcombine.low %v2403_v33, %v2407_v35 }
 0x314   :  { %5717 = vmatpush1.bf16.msra.mxu0 %v6415_v4  ;;  %5677 = vmatprep.subr.bf16.mxu1 %v6280_v5  ;;  %v2271_v3 = vld [vmem:[#allocation8 + $0x7b8] sm:$0xff] }
 0x315   :  { %5718 = vmatprep.subr.bf16.mxu0 %v6408_v13  ;;  %v2395_v4 = vld [vmem:[#allocation8 + $0xb98] sm:$0xff]  ;;  %v6367_v13 = vcombine.low %v2275_v40, %v2279_v42  ;;  %v6360_v48 = vcombine.high %v2267_v47, %v2271_v3 }
 0x316   :  { %v2399_v5 = vld [vmem:[#allocation8 + $0xbb8] sm:$0xff] }
 0x317   :  { %5678 = vmatpush1.bf16.msra.mxu1 %v6279_v51  ;;  %v6488_v49 = vcombine.high %v2395_v4, %v2399_v5  ;;  %v2263_v51 = vld [vmem:[#allocation8 + $0x778] sm:$0xff]  ;;  %v6487_v57 = vcombine.low %v2395_v4, %v2399_v5 }
 0x318   :  { %5719 = vmatpush1.bf16.msra.mxu0 %v6407_v52  ;;  %5679 = vmatprep.subr.bf16.mxu1 %v6272_v54  ;;  %v2387_v52 = vld [vmem:[#allocation8 + $0xb58] sm:$0xff]  ;;  %v6352_v58 = vcombine.high %v2259_v50, %v2263_v51 }
 0x319   :  { %5720 = vmatprep.subr.bf16.mxu0 %v6400_v55  ;;  %v2391_v54 = vld [vmem:[#allocation8 + $0xb78] sm:$0xff]  ;;  %v6359_v55 = vcombine.low %v2267_v47, %v2271_v3 }
 0x31a   :  { %v6480_v60 = vcombine.high %v2387_v52, %v2391_v54  ;;  %v2251_v2 = vld [vmem:[#allocation8 + $0x718] sm:$0xff]  ;;  %v6479_v17 = vcombine.low %v2387_v52, %v2391_v54  ;;  %v2553_v52 = vrot.slane %v6985_v1, %v382_v27 }
 0x31b   :  { %5680 = vmatpush1.bf16.msra.mxu1 %v6271_v7  ;;  %v2255_v7 = vld [vmem:[#allocation8 + $0x738] sm:$0xff] }
 0x31c   :  { %5721 = vmatpush1.bf16.msra.mxu0 %v6399_v8  ;;  %5681 = vmatprep.subr.bf16.mxu1 %v6264_v10  ;;  %v2379_v8 = vld [vmem:[#allocation8 + $0xb18] sm:$0xff]  ;;  %v6344_v18 = vcombine.high %v2251_v2, %v2255_v7 }
 0x31d   :  { %5722 = vmatprep.subr.bf16.mxu0 %v6392_v14  ;;  %v2383_v10 = vld [vmem:[#allocation8 + $0xb38] sm:$0xff]  ;;  %v6351_v14 = vcombine.low %v2259_v50, %v2263_v51 }
 0x31e   :  { %v6472_v20 = vcombine.high %v2379_v8, %v2383_v10  ;;  %v2243_v11 = vld [vmem:[#allocation8 + $0x6d8] sm:$0xff]  ;;  %v6471_v26 = vcombine.low %v2379_v8, %v2383_v10 }
 0x31f   :  { %5682 = vmatpush1.bf16.msra.mxu1 %v6263_v21  ;;  %v2247_v21 = vld [vmem:[#allocation8 + $0x6f8] sm:$0xff] }
 0x320   :  { %5723 = vmatpush1.bf16.msra.mxu0 %v6391_v16  ;;  %5683 = vmatprep.subr.bf16.mxu1 %v6256_v23  ;;  %v2371_v16 = vld [vmem:[#allocation8 + $0xad8] sm:$0xff]  ;;  %v6336_v24 = vcombine.high %v2243_v11, %v2247_v21 }
 0x321   :  { %5724 = vmatprep.subr.bf16.mxu0 %v6384_v12  ;;  %v2375_v23 = vld [vmem:[#allocation8 + $0xaf8] sm:$0xff]  ;;  %v6343_v12 = vcombine.low %v2251_v2, %v2255_v7  ;;  %v5339_v7 = vadd.f32 %v6977_v28, %v2553_v52 }
 0x322   :  { %v6464_v30 = vcombine.high %v2371_v16, %v2375_v23  ;;  %v2235_v32 = vld [vmem:[#allocation8 + $0x698] sm:$0xff]  ;;  %v6463_v40 = vcombine.low %v2371_v16, %v2375_v23 }
 0x323   :  { %5684 = vmatpush1.bf16.msra.mxu1 %v6255_v0  ;;  %v2239_v0 = vld [vmem:[#allocation8 + $0x6b8] sm:$0xff] }
 0x324   :  { %5725 = vmatpush1.bf16.msra.mxu0 %v6383_v29  ;;  %5685 = vmatprep.subr.bf16.mxu1 %v6248_v36  ;;  %v2363_v29 = vld [vmem:[#allocation8 + $0xa98] sm:$0xff]  ;;  %v6328_v42 = vcombine.high %v2235_v32, %v2239_v0 }
 0x325   :  { %5726 = vmatprep.subr.bf16.mxu0 %v6376_v63  ;;  %v2367_v36 = vld [vmem:[#allocation8 + $0xab8] sm:$0xff]  ;;  %v6335_v63 = vcombine.low %v2243_v11, %v2247_v21 }
 0x326   :  { %v6456_v33 = vcombine.high %v2363_v29, %v2367_v36  ;;  %v2227_v35 = vld [vmem:[#allocation8 + $0x658] sm:$0xff]  ;;  %v6455_v47 = vcombine.low %v2363_v29, %v2367_v36 }
 0x327   :  { %5686 = vmatpush1.bf16.msra.mxu1 %v6247_v34  ;;  %v2231_v34 = vld [vmem:[#allocation8 + $0x678] sm:$0xff] }
 0x328   :  { %5727 = vmatpush1.bf16.msra.mxu0 %v6375_v43  ;;  %5687 = vmatprep.subr.bf16.mxu1 %v6368_v61  ;;  %v2355_v43 = vld [vmem:[#allocation8 + $0xa58] sm:$0xff]  ;;  %v6320_v3 = vcombine.high %v2227_v35, %v2231_v34 }
 0x329   :  { %5728 = vmatprep.subr.bf16.mxu0 %v6496_v45  ;;  %v2359_v61 = vld [vmem:[#allocation8 + $0xa78] sm:$0xff]  ;;  %v6327_v45 = vcombine.low %v2235_v32, %v2239_v0 }
 0x32a   :  { %v6448_v4 = vcombine.high %v2355_v43, %v2359_v61  ;;  %v2219_v5 = vld [vmem:[#allocation8 + $0x618] sm:$0xff]  ;;  %v6447_v50 = vcombine.low %v2355_v43, %v2359_v61 }
 0x32b   :  { %5688 = vmatpush2.bf16.msra.mxu1 %v6367_v13  ;;  %v2223_v13 = vld [vmem:[#allocation8 + $0x638] sm:$0xff] }
 0x32c   :  { %5729 = vmatpush2.bf16.msra.mxu0 %v6495_v37  ;;  %5689 = vmatprep.subr.bf16.mxu1 %v6360_v48  ;;  %v2347_v37 = vld [vmem:[#allocation8 + $0xa18] sm:$0xff]  ;;  %v6312_v51 = vcombine.high %v2219_v5, %v2223_v13 }
 0x32d   :  { %5730 = vmatprep.subr.bf16.mxu0 %v6488_v49  ;;  %v2351_v48 = vld [vmem:[#allocation8 + $0xa38] sm:$0xff]  ;;  %v6319_v49 = vcombine.low %v2227_v35, %v2231_v34 }
 0x32e   :  { %v6440_v54 = vcombine.high %v2347_v37, %v2351_v48  ;;  %v2459_v8 = vld [vmem:[#allocation8 + $0xd98] sm:$0xff] }
 0x32f   :  { %5690 = vmatpush2.bf16.msra.mxu1 %v6359_v55  ;;  %v2467_v55 = vld [vmem:[#allocation8 + $0xdd8] sm:$0xff] }
 0x330   :  { %5731 = vmatpush2.bf16.msra.mxu0 %v6487_v57  ;;  %5691 = vmatprep.subr.bf16.mxu1 %v6352_v58  ;;  %v2471_v57 = vld [vmem:[#allocation8 + $0xdf8] sm:$0xff]  ;;  %v6311_v58 = vcombine.low %v2219_v5, %v2223_v13 }
 0x331   :  { %5732 = vmatprep.subr.bf16.mxu0 %v6480_v60  ;;  %v6439_v60 = vcombine.low %v2347_v37, %v2351_v48  ;;  %v6560_v2 = vcombine.high %v2467_v55, %v2471_v57  ;;  %v2463_v10 = vld [vmem:[#allocation8 + $0xdb8] sm:$0xff] }
 0x332   :  { %v6552_v27 = vcombine.high %v2459_v8, %v2463_v10  ;;  %v6551_v28 = vcombine.low %v2459_v8, %v2463_v10  ;;  %v2427_v43 = vld [vmem:[#allocation8 + $0xc98] sm:$0xff] }
 0x333   :  { %5692 = vmatpush2.bf16.msra.mxu1 %v6351_v14  ;;  %v5380_v14 = vadd.f32 %v6994_v19, %v5339_v7  ;;  %v2431_v61 = vld [vmem:[#allocation8 + $0xcb8] sm:$0xff] }
 0x334   :  { %5733 = vmatpush2.bf16.msra.mxu0 %v6479_v17  ;;  %5693 = vmatprep.subr.bf16.mxu1 %v6344_v18  ;;  %v6559_v17 = vcombine.low %v2467_v55, %v2471_v57  ;;  %v2451_v18 = vld [vmem:[#allocation8 + $0xd58] sm:$0xff]  ;;  %v6519_v56 = vcombine.low %v2427_v43, %v2431_v61 }
 0x335   :  { %5734 = vmatprep.subr.bf16.mxu0 %v6472_v20  ;;  %v2455_v20 = vld [vmem:[#allocation8 + $0xd78] sm:$0xff]  ;;  %v5421_v21 = vadd.f32 %v6996_v15, %v5380_v14 }
 0x336   :  { %v6544_v23 = vcombine.high %v2451_v18, %v2455_v20  ;;  %v6543_v29 = vcombine.low %v2451_v18, %v2455_v20  ;;  %v2415_v5 = vld [vmem:[#allocation8 + $0xc38] sm:$0xff] }
 0x337   :  { %5694 = vmatpush2.bf16.msra.mxu1 %v6343_v12  ;;  %v2531_v48 = vld [vmem:[#allocation8 + $0xfd8] sm:$0xff] }
 0x338   :  { %5735 = vmatpush2.bf16.msra.mxu0 %v6471_v26  ;;  %5695 = vmatprep.subr.bf16.mxu1 %v6336_v24  ;;  %v2523_v52 = vld [vmem:[#allocation8 + $0xf98] sm:$0xff] }
 0x339   :  { %5736 = vmatprep.subr.bf16.mxu0 %v6464_v30  ;;  %v2443_v30 = vld [vmem:[#allocation8 + $0xd18] sm:$0xff] }
 0x33a   :  { %v2507_v8 = vld [vmem:[#allocation8 + $0xf18] sm:$0xff] }
 0x33b   :  { %5696 = vmatpush2.bf16.msra.mxu1 %v6335_v63  ;;  %v2511_v10 = vld [vmem:[#allocation8 + $0xf38] sm:$0xff] }
 0x33c   :  { %5737 = vmatpush2.bf16.msra.mxu0 %v6463_v40  ;;  %5697 = vmatprep.subr.bf16.mxu1 %v6328_v42  ;;  %v2435_v40 = vld [vmem:[#allocation8 + $0xcd8] sm:$0xff]  ;;  %v6599_v20 = vcombine.low %v2507_v8, %v2511_v10 }
 0x33d   :  { %5738 = vmatprep.subr.bf16.mxu0 %v6456_v33  ;;  %v2439_v42 = vld [vmem:[#allocation8 + $0xcf8] sm:$0xff] }
 0x33e   :  { %v6528_v34 = vcombine.high %v2435_v40, %v2439_v42  ;;  %v2503_v18 = vld [vmem:[#allocation8 + $0xef8] sm:$0xff] }
 0x33f   :  { %5698 = vmatpush2.bf16.msra.mxu1 %v6327_v45  ;;  %v6527_v45 = vcombine.low %v2435_v40, %v2439_v42 }
 0x340   :  { %5739 = vmatpush2.bf16.msra.mxu0 %v6455_v47  ;;  %5699 = vmatprep.subr.bf16.mxu1 %v6320_v3  ;;  %v6520_v47 = vcombine.high %v2427_v43, %v2431_v61  ;;  %v2419_v3 = vld [vmem:[#allocation8 + $0xc58] sm:$0xff] }
 0x341   :  { %5740 = vmatprep.subr.bf16.mxu0 %v6448_v4  ;;  %v2411_v4 = vld [vmem:[#allocation8 + $0xc18] sm:$0xff]  ;;  %v6511_v13 = vcombine.low %v2419_v3, %v2423_v22 }
 0x342   :  { %v6504_v37 = vcombine.high %v2411_v4, %v2415_v5 }
 0x343   :  { %5700 = vmatpush2.bf16.msra.mxu1 %v6319_v49  ;;  %v2535_v49 = vld [vmem:[#allocation8 + $0xff8] sm:$0xff] }
 0x344   :  { %5741 = vmatpush2.bf16.msra.mxu0 %v6447_v50  ;;  %5701 = vmatprep.subr.bf16.mxu1 %v6312_v51  ;;  %v6503_v50 = vcombine.low %v2411_v4, %v2415_v5  ;;  %v6624_v51 = vcombine.high %v2531_v48, %v2535_v49  ;;  %v6623_v55 = vcombine.low %v2531_v48, %v2535_v49 }
 0x345   :  { %5742 = vmatprep.subr.bf16.mxu0 %v6440_v54  ;;  %v2527_v54 = vld [vmem:[#allocation8 + $0xfb8] sm:$0xff] }
 0x346   :  { %v6616_v57 = vcombine.high %v2523_v52, %v2527_v54 }
 0x347   :  { %5702 = vmatpush2.bf16.msra.mxu1 %v6311_v58  ;;  %v2515_v58 = vld [vmem:[#allocation8 + $0xf58] sm:$0xff] }
 0x348   :  { %5743 = vmatpush2.bf16.msra.mxu0 %v6439_v60  ;;  %5753 = vmatprep.subr.bf16.mxu1 %v6560_v2  ;;  %v2519_v60 = vld [vmem:[#allocation8 + $0xf78] sm:$0xff]  ;;  %v6615_v2 = vcombine.low %v2523_v52, %v2527_v54 }
 0x349   :  { %v6608_v7 = vcombine.high %v2515_v58, %v2519_v60  ;;  %v6607_v14 = vcombine.low %v2515_v58, %v2519_v60  ;;  %v2565_v60 = vrot.slane %v6985_v1, %v394_v41 }
 0x34a   :  { %v5459_v11 = vpop.f32.mrf.mxu1  ;;  %5704 = vmatmul.mubr.bf16.vlgmr.msra.gmra.mxu1 %v6906_v6  ;;  %v2447_v6 = vld [vmem:[#allocation8 + $0xd38] sm:$0xff] }
 0x34b   :  { %v7008_v16 = vpop.f32.mrf.mxu0  ;;  %5745 = vmatmul.mubr.bf16.vlgmr.msra.gmra.mxu0 %v6924_v39  ;;  %5754 = vmatpush1.bf16.msra.mxu1 %v6559_v17  ;;  %v5460_v12 = vadd.f32 %v5459_v11, %v6998_v59  ;;  %v6536_v36 = vcombine.high %v2443_v30, %v2447_v6  ;;  %v6535_v33 = vcombine.low %v2443_v30, %v2447_v6 }
 0x34c   :  { %5785 = vmatprep.mubr.bf16.mxu1 %v6935_v25  ;;  %v5461_v19 = vpop.f32.mrf.mxu1  ;;  %5755 = vmatprep.subr.bf16.mxu1 %v6552_v27  ;;  %v5810_v25 = vrot.slane %v5802_v38, %v6822_v53  ;;  %v6512_v38 = vcombine.high %v2419_v3, %v2423_v22  ;;  %v6600_v17 = vcombine.high %v2507_v8, %v2511_v10  ;;  %v2499_v27 = vld [vmem:[#allocation8 + $0xed8] sm:$0xff] }
 0x34d   :  { %v5462_v26 = vadd.f32 %v5461_v19, %v5421_v21  ;;  %v7013_v24 = vpop.f32.mrf.mxu0  ;;  %v6592_v11 = vcombine.high %v2499_v27, %v2503_v18  ;;  %v2491_v21 = vld [vmem:[#allocation8 + $0xe98] sm:$0xff]  ;;  %v6591_v19 = vcombine.low %v2499_v27, %v2503_v18 }
 0x34e   :  { %v5463_v32 = vpop.f32.mrf.mxu1 }
 0x34f   :  { %v5803_v15 = vcombine.low %v5460_v12, %v5462_v26  ;;  %v5504_v0 = vpop.f32.mrf.mxu0  ;;  %5756 = vmatpush1.bf16.msra.mxu1 %v6551_v28  ;;  %v2495_v28 = vld [vmem:[#allocation8 + $0xeb8] sm:$0xff] }
 0x350   :  { %v5464_v39 = vpop.f32.mrf.mxu1  ;;  %5757 = vmatprep.subr.bf16.mxu1 %v6544_v23  ;;  %v6584_v23 = vcombine.high %v2491_v21, %v2495_v28  ;;  %v2483_v12 = vld [vmem:[#allocation8 + $0xe58] sm:$0xff]  ;;  %v6583_v30 = vcombine.low %v2491_v21, %v2495_v28 }
 0x351   :  { %v5817_v59 = vrot.slane %v5803_v15, %v6822_v53  ;;  %v5505_v63 = vpop.f32.mrf.mxu0  ;;  %v2487_v26 = vld [vmem:[#allocation8 + $0xe78] sm:$0xff] }
 0x352   :  { %v6576_v6 = vcombine.high %v2483_v12, %v2487_v26  ;;  %v2475_v32 = vld [vmem:[#allocation8 + $0xe18] sm:$0xff]  ;;  %v6575_v0 = vcombine.low %v2483_v12, %v2487_v26 }
 0x353   :  { %5758 = vmatpush1.bf16.msra.mxu1 %v6543_v29  ;;  %v5818_v35 = vcombine.low %v5810_v25, %v5817_v59  ;;  %v2479_v15 = vld [vmem:[#allocation8 + $0xe38] sm:$0xff]  ;;  %v2561_v25 = vrot.slane %v6985_v1, %v390_v9 }
 0x354   :  { %5759 = vmatprep.subr.bf16.mxu1 %v6536_v36  ;;  %v6568_v29 = vcombine.high %v2475_v32, %v2479_v15  ;;  %v6567_v39 = vcombine.low %v2475_v32, %v2479_v15  ;;  %v2557_v36 = vrot.slane %v6985_v1, %v386_v62 }
 0x355   :  { %5838 = vst [vmem:[#allocation11] sm:$0xff] %v5818_v35  ;;  %v5503_v40 = vadd.f32 %v7013_v24, %v2561_v25 }
 0x356   :  { %v5501_v59 = vadd.f32 %v7008_v16, %v2557_v36 }
 0x357   :  { %5760 = vmatpush1.bf16.msra.mxu1 %v6535_v33 }
 0x358   :  { %5761 = vmatprep.subr.bf16.mxu1 %v6528_v34 }
 0x35b   :  { %5762 = vmatpush1.bf16.msra.mxu1 %v6527_v45 }
 0x35c   :  { %5763 = vmatprep.subr.bf16.mxu1 %v6520_v47 }
 0x35f   :  { %5764 = vmatpush1.bf16.msra.mxu1 %v6519_v56 }
 0x360   :  { %5765 = vmatprep.subr.bf16.mxu1 %v6512_v38 }
 0x363   :  { %5766 = vmatpush1.bf16.msra.mxu1 %v6511_v13 }
 0x364   :  { %5767 = vmatprep.subr.bf16.mxu1 %v6504_v37 }
 0x367   :  { %5768 = vmatpush1.bf16.msra.mxu1 %v6503_v50 }
 0x368   :  { %5769 = vmatprep.subr.bf16.mxu1 %v6624_v51 }
 0x36b   :  { %5770 = vmatpush2.bf16.msra.mxu1 %v6623_v55 }
 0x36c   :  { %5771 = vmatprep.subr.bf16.mxu1 %v6616_v57 }
 0x36f   :  { %5772 = vmatpush2.bf16.msra.mxu1 %v6615_v2  ;;  %v2569_v2 = vrot.slane %v6985_v1, %v398_v46 }
 0x370   :  { %5773 = vmatprep.subr.bf16.mxu1 %v6608_v7 }
 0x373   :  { %5774 = vmatpush2.bf16.msra.mxu1 %v6607_v14 }
 0x374   :  { %5775 = vmatprep.subr.bf16.mxu1 %v6600_v17 }
 0x377   :  { %5776 = vmatpush2.bf16.msra.mxu1 %v6599_v20 }
 0x378   :  { %5777 = vmatprep.subr.bf16.mxu1 %v6592_v11 }
 0x37b   :  { %5778 = vmatpush2.bf16.msra.mxu1 %v6591_v19 }
 0x37c   :  { %5779 = vmatprep.subr.bf16.mxu1 %v6584_v23 }
 0x37f   :  { %5780 = vmatpush2.bf16.msra.mxu1 %v6583_v30 }
 0x380   :  { %5781 = vmatprep.subr.bf16.mxu1 %v6576_v6 }
 0x383   :  { %5782 = vmatpush2.bf16.msra.mxu1 %v6575_v0 }
 0x384   :  { %5783 = vmatprep.subr.bf16.mxu1 %v6568_v29 }
 0x387   :  { %5784 = vmatpush2.bf16.msra.mxu1 %v6567_v39 }
 0x38a   :  { %v5541_v63 = vpop.f32.mrf.mxu1  ;;  %5786 = vmatmul.mubr.bf16.vlgmr.msra.gmra.mxu1 %v6937_v31 }
 0x38b   :  { %v5542_v42 = vadd.f32 %v5541_v63, %v5501_v59  ;;  %v5582_v33 = vpop.f32.mrf.mxu0 }
 0x38c   :  { %v5543_v35 = vpop.f32.mrf.mxu1 }
 0x38d   :  { %v5583_v34 = vadd.f32 %v5582_v33, %v5542_v42  ;;  %v5544_v43 = vadd.f32 %v5543_v35, %v5503_v40  ;;  %v5584_v61 = vpop.f32.mrf.mxu0 }
 0x38e   :  { %v5545_v45 = vpop.f32.mrf.mxu1 }
 0x38f   :  { %v5585_v62 = vadd.f32 %v5584_v61, %v5544_v43  ;;  %v5586_v47 = vpop.f32.mrf.mxu0 }
 0x390   :  { %v5546_v3 = vpop.f32.mrf.mxu1 }
 0x391   :  { %v5587_v22 = vpop.f32.mrf.mxu0 }
 0x3ca   :  { %v5623_v9 = vpop.f32.mrf.mxu1 }
 0x3cb   :  { %v5624_v56 = vadd.f32 %v5623_v9, %v5583_v34  ;;  %v5664_v38 = vpop.f32.mrf.mxu0 }
 0x3cc   :  { %v5625_v16 = vpop.f32.mrf.mxu1  ;;  %v5665_v7 = vadd.f32 %v5664_v38, %v2565_v60 }
 0x3cd   :  { %v5626_v4 = vadd.f32 %v5625_v16, %v5585_v62  ;;  %v5666_v5 = vpop.f32.mrf.mxu0 }
 0x3ce   :  { %v5627_v31 = vpop.f32.mrf.mxu1  ;;  %v5667_v8 = vadd.f32 %v5666_v5, %v2569_v2 }
 0x3cf   :  { %v5819_v13 = vcombine.low %v5624_v56, %v5626_v4  ;;  %v5668_v24 = vpop.f32.mrf.mxu0 }
 0x3d0   :  { %v5628_v37 = vpop.f32.mrf.mxu1 }
 0x3d1   :  { %v5669_v48 = vpop.f32.mrf.mxu0  ;;  %v5827_v41 = vrot.slane %v5819_v13, %v6822_v53 }
 0x40a   :  { %v5705_v49 = vpop.f32.mrf.mxu1 }
 0x40b   :  { %v5746_v50 = vpop.f32.mrf.mxu0  ;;  %v5706_v10 = vadd.f32 %v5705_v49, %v5665_v7 }
 0x40c   :  { %v5707_v51 = vpop.f32.mrf.mxu1 }
 0x40d   :  { %v5748_v52 = vpop.f32.mrf.mxu0  ;;  %v5708_v14 = vadd.f32 %v5707_v51, %v5667_v8  ;;  %v5747_v27 = vadd.f32 %v5746_v50, %v5706_v10 }
 0x40e   :  { %v5709_v54 = vpop.f32.mrf.mxu1 }
 0x40f   :  { %v5750_v55 = vpop.f32.mrf.mxu0  ;;  %v5749_v18 = vadd.f32 %v5748_v52, %v5708_v14 }
 0x410   :  { %v5710_v57 = vpop.f32.mrf.mxu1 }
 0x411   :  { %v5751_v58 = vpop.f32.mrf.mxu0 }
 0x44a   :  { %v5787_v17 = vpop.f32.mrf.mxu1 }
 0x44b   :  { %v5788_v11 = vadd.f32 %v5787_v17, %v5747_v27 }
 0x44c   :  { %v5789_v20 = vpop.f32.mrf.mxu1 }
 0x44d   :  { %v5790_v21 = vadd.f32 %v5789_v20, %v5749_v18 }
 0x44e   :  { %v5791_v28 = vpop.f32.mrf.mxu1 }
 0x44f   :  { %v5820_v19 = vcombine.low %v5788_v11, %v5790_v21 }
 0x450   :  { %v5792_v23 = vpop.f32.mrf.mxu1 }
 0x451   :  { %v5834_v44 = vrot.slane %v5820_v19, %v6822_v53 }
 0x453   :  { %v5835_v46 = vcombine.low %v5827_v41, %v5834_v44 }
 0x455   :  { %5839 = vst [vmem:[#allocation11 + $0x8] sm:$0xff] %v5835_v46 }
 0x456   :  { %6748 = shalt.err (!%p6745_p1)
}
 0x457   :  { %5849 = dma.vmem_to_hbm [thread:$0]  %s5847_s4, 256, %s7045_s5, [#allocation4]  }
 0x458   :  { %6763 = dma.done.wait [#allocation4], 256  }
 0x459   :  { %6764 = vsyncadd [#allocation4], 4294967040 }
 0x45a   :  { %5853 = vsyncpa [#allocation3], 1 }
 0x45b   :  { %5854 = vsyncpa [#allocation6], 1 }
 0x45c   :  { %5855 = vsyncpa [#allocation9], 1 }
 0x45d   :  { %5856 = vsyncpa [#allocation4], 1 }

</bundles_post_ra>
